<compile_context>
chip_gen: v7x
topology: tpu7x:2x2x1
jax: 0.10.0
libtpu: 0.0.40
codegen_flags: <defaults>
</compile_context>

<pallas_src>
import jax
import jax.numpy as jnp
from jax import lax
from jax.experimental import pallas as pl
from jax.experimental.pallas import tpu as pltpu


def _round_up(x, m):
    return (x + m - 1) // m * m


def _roll_lanes(v, shift):
    """jnp.roll-style rotation along the lane axis (axis=1).

    Routed through a 32-bit bitcast view (pairs of sublane rows -> one u32 row) so
    the XLU rotate is always on a 32-bit type; lane association is preserved, so
    each bf16 row is rotated exactly like the u32 view.
    """
    if shift == 0:
        return v
    if v.dtype.itemsize == 4:
        return pltpu.roll(v, shift=shift, axis=1)
    assert v.shape[0] % 2 == 0, "need an even sublane count for the 32-bit view"
    v32 = pltpu.bitcast(v, jnp.uint32)           # (rows//2, S) u32
    v32 = pltpu.roll(v32, shift=shift, axis=1)
    return pltpu.bitcast(v32, v.dtype)           # back to (rows, S) bf16


def _make_kernel(cp, pp, d, h, w):
    """Kernel closure for padded channel counts cp/pp and volume (d, h, w)."""
    hw = h * w
    s = d * hw

    def im2col_group(src, g, cin, mask_ref, col_ref):
        """Write the 9 shifted+masked taps of kd-plane g (dz = g-1) into col_ref (bf16)."""
        dz = g - 1
        mg = mask_ref[g]                               # (9, S) bf16 {0,1}
        for t in range(9):
            dy, dx = t // 3 - 1, t % 3 - 1
            off = dz * hw + dy * w + dx                # shifted[:, f] = src[:, f + off]
            shifted = _roll_lanes(src, (-off) % s)
            if (dz, dy, dx) == (0, 0, 0):
                col_ref[pl.ds(t * cin, cin), :] = shifted           # center tap: no mask
            else:
                # Single bf16 vmul per tap (precomputed mask).  On v5e (no bf16 VALU)
                # this lowers with pack/unpack; if VALU ever saturates there, apply
                # the mask in f32 before the bf16 store instead.
                col_ref[pl.ds(t * cin, cin), :] = shifted * mg[t:t + 1, :]

    def kernel(x_ref, mask_ref, w1_ref, w2_ref, b1_ref, b2_ref, o_ref, col_ref):
        # x_ref : (Cp, S)  bf16          mask_ref: (3, 9, S) bf16 {0,1}
        # w1_ref: (3, Pp, 9*Cp) bf16     w2_ref : (3, Pp, 9*Pp) bf16  (BN scale folded)
        # b*_ref: (Pp, 1) f32            o_ref  : (Pp, S) bf16
        # col_ref: (9*Cp, S) bf16 VMEM scratch (per-kd-plane im2col slab, reused 6x)
        xb = x_ref[...]                                # bf16 source for conv1 im2col

        # conv1 (scale1 folded into w1): three accumulating matmuls, K = 9*Cp each.
        h1 = None
        for g in range(3):
            im2col_group(xb, g, cp, mask_ref, col_ref)
            part = jnp.dot(w1_ref[g], col_ref[...], preferred_element_type=jnp.float32)
            h1 = part if h1 is None else h1 + part
        h1 = jnp.maximum(h1 + b1_ref[...], 0.0)        # BN shift + ReLU (f32)
        h1b = h1.astype(jnp.bfloat16)                  # cast once before im2col

        # conv2 (scale2 folded into w2): Cp == Pp, so the same scratch is reused.
        out = None
        for g in range(3):
            im2col_group(h1b, g, pp, mask_ref, col_ref)
            part = jnp.dot(w2_ref[g], col_ref[...], preferred_element_type=jnp.float32)
            out = part if out is None else out + part

        # BN shift + residual (re-read x_ref; bf16 residual by design) + ReLU.
        out = out + b2_ref[...] + x_ref[...].astype(jnp.float32)
        o_ref[...] = jnp.maximum(out, 0.0).astype(o_ref.dtype)

    return kernel


def basic_3d_resnet_block(x, w1, w2, scale1, shift1, scale2, shift2):
    """x: (N, C, D, H, W); w1: (P, C, 3,3,3); w2: (P, P, 3,3,3); scale/shift: (P,).

    Returns bf16 (N, P, D, H, W) — ResNet blocks chain, so bf16 output halves HBM
    writeback; epilogue math stays f32.
    """
    n, c, d, h, w = x.shape
    p = w1.shape[0]
    # stride=1 / downsample=None scope: the residual is the input itself.
    assert c == p, "residual path requires inplanes == planes (stride=1, no downsample)"
    s = d * h * w
    # Lane-dense flattened spatial axis: roll-wrap + precomputed masks rely on it.
    assert s % 128 == 0, "D*H*W must be a multiple of 128 (pad the volume host-side)"
    cp = _round_up(c, 16)     # bf16 min sublane tile is (16, 128)
    pp = _round_up(p, 16)
    assert cp == pp

    # --------------------------- host-side glue (cheap, one-time) --------------------
    x_flat = jnp.pad(x.reshape(n, c, s), ((0, 0), (0, cp - c), (0, 0)))
    x_flat = x_flat.astype(jnp.bfloat16)               # bf16 operands -> half the DMA bytes

    # Fold BN scale into conv weights; only the per-channel shift stays in-kernel.
    w1f = scale1[:, None, None, None, None] * w1                 # (P, C, 3,3,3)
    w2f = scale2[:, None, None, None, None] * w2                 # (P, P, 3,3,3)
    w1f = jnp.pad(w1f, ((0, pp - p), (0, cp - c), (0, 0), (0, 0), (0, 0)))
    w2f = jnp.pad(w2f, ((0, pp - p), (0, pp - p), (0, 0), (0, 0), (0, 0)))
    # (Pout, Cin, kd,kh,kw) -> (Pout, kd, kh, kw, Cin) -> (kd, Pout, 9*Cin):
    # kd-major groups; within a group, columns are (kh,kw)-major / Cin-minor, which
    # matches the kernel's tap order t = (dy+1)*3 + (dx+1) and row offsets t*Cin.
    w1f = w1f.transpose(0, 2, 3, 4, 1).reshape(pp, 3, 9 * cp).transpose(1, 0, 2)
    w2f = w2f.transpose(0, 2, 3, 4, 1).reshape(pp, 3, 9 * pp).transpose(1, 0, 2)
    w1f = w1f.astype(jnp.bfloat16)
    w2f = w2f.astype(jnp.bfloat16)

    b1 = jnp.pad(shift1, (0, pp - p)).reshape(pp, 1).astype(jnp.float32)
    b2 = jnp.pad(shift2, (0, pp - p)).reshape(pp, 1).astype(jnp.float32)

    # Precomputed {0,1} boundary masks, one row per tap (grid-invariant, shared by
    # both convs and all batch elements) -> no in-kernel compares/ANDs.
    d_i = jnp.repeat(jnp.arange(d, dtype=jnp.int32), h * w)
    h_i = jnp.tile(jnp.repeat(jnp.arange(h, dtype=jnp.int32), w), d)
    w_i = jnp.tile(jnp.arange(w, dtype=jnp.int32), d * h)
    rows = []
    for dz in (-1, 0, 1):
        for dy in (-1, 0, 1):
            for dx in (-1, 0, 1):
                rows.append((d_i + dz >= 0) & (d_i + dz < d) &
                            (h_i + dy >= 0) & (h_i + dy < h) &
                            (w_i + dx >= 0) & (w_i + dx < w))
    mask = jnp.stack(rows, 0).reshape(3, 9, s).astype(jnp.bfloat16)

    kernel = _make_kernel(cp, pp, d, h, w)

    # Rough VMEM / cost bookkeeping (advisory).
    bpe = 2
    col_bytes = 9 * cp * s * bpe
    blk_bytes = (cp * s + pp * s + 27 * s + 3 * pp * 9 * cp + 3 * pp * 9 * pp) * bpe + 2 * pp * 4
    live_f32 = 2 * pp * s * 4                      # h1 / out f32 accumulators
    vmem_limit = int(min(max(2 * (col_bytes + 2 * blk_bytes + live_f32), 32 << 20), 64 << 20))
    flops = int(n * 2 * 2 * (27 * cp) * pp * s)    # 2 convs, 2*K*M*S each
    bytes_accessed = int(n * (cp * s + pp * s) * bpe
                         + (27 * s + 3 * pp * 9 * cp + 3 * pp * 9 * pp) * bpe)

    out_flat = pl.pallas_call(
        kernel,
        out_shape=jax.ShapeDtypeStruct((n, pp, s), jnp.bfloat16),
        grid_spec=pltpu.PrefetchScalarGridSpec(
            num_scalar_prefetch=0,
            grid=(n,),
            in_specs=[
                pl.BlockSpec((pl.Squeezed(), cp, s), lambda b: (b, 0, 0)),
                pl.BlockSpec((3, 9, s), lambda b: (0, 0, 0)),
                pl.BlockSpec((3, pp, 9 * cp), lambda b: (0, 0, 0)),
                pl.BlockSpec((3, pp, 9 * pp), lambda b: (0, 0, 0)),
                pl.BlockSpec((pp, 1), lambda b: (0, 0)),
                pl.BlockSpec((pp, 1), lambda b: (0, 0)),
            ],
            out_specs=pl.BlockSpec((pl.Squeezed(), pp, s), lambda b: (b, 0, 0)),
            scratch_shapes=[pltpu.VMEM((9 * cp, s), jnp.bfloat16)],
        ),
        compiler_params=pltpu.CompilerParams(
            # batch elements are independent -> split across TensorCores (v7x megacore)
            dimension_semantics=("parallel",),
            vmem_limit_bytes=vmem_limit,
        ),
        cost_estimate=pl.CostEstimate(flops=flops, transcendentals=0,
                                      bytes_accessed=bytes_accessed),
    )(x_flat, mask, w1f, w2f, b1, b2)

    return out_flat[:, :p, :].reshape(n, p, d, h, w)


# ------------------------------- references ---------------------------------------
def _bn_affine(y, scale, shift):
    return y * scale[None, :, None, None, None] + shift[None, :, None, None, None]


def reference_forward_f32(x, w1, w2, scale1, shift1, scale2, shift2):
    """Pure-f32 reference mirroring the PyTorch forward (eval-mode BN)."""
    dn = ("NCDHW", "OIDHW", "NCDHW")
    pad = ((1, 1), (1, 1), (1, 1))
    out = lax.conv_general_dilated(x, w1, (1, 1, 1), pad, dimension_numbers=dn)
    out = jnp.maximum(_bn_affine(out, scale1, shift1), 0.0)
    out = lax.conv_general_dilated(out, w2, (1, 1, 1), pad, dimension_numbers=dn)
    out = _bn_affine(out, scale2, shift2) + x
    return jnp.maximum(out, 0.0)


def reference_forward_bf16ops(x, w1, w2, scale1, shift1, scale2, shift2):
    """Reference matching the kernel's numerics: BN scale folded into the weights,
    bf16 conv operands, f32 accumulation, f32 elementwise epilogue, bf16 residual."""
    dn = ("NCDHW", "OIDHW", "NCDHW")
    pad = ((1, 1), (1, 1), (1, 1))
    xb = x.astype(jnp.bfloat16)
    w1f = (scale1[:, None, None, None, None] * w1).astype(jnp.bfloat16)
    w2f = (scale2[:, None, None, None, None] * w2).astype(jnp.bfloat16)
    hid = lax.conv_general_dilated(xb, w1f, (1, 1, 1), pad, dimension_numbers=dn,
                                   preferred_element_type=jnp.float32)
    hid = jnp.maximum(hid + shift1[None, :, None, None, None], 0.0)
    out = lax.conv_general_dilated(hid.astype(jnp.bfloat16), w2f, (1, 1, 1), pad,
                                   dimension_numbers=dn,
                                   preferred_element_type=jnp.float32)
    out = out + shift2[None, :, None, None, None] + xb.astype(jnp.float32)
    return jnp.maximum(out, 0.0)


if __name__ == "__main__":
    # Small shapes: batch=2, inplanes=planes=4, volume 4x8x16 (stride=1, no downsample).
    # D*H*W = 512 -> lane-dense (multiple of 128) flattened spatial axis.
    N, C, P, D, H, W = 2, 4, 4, 4, 8, 16
    key = jax.random.PRNGKey(0)
    (kx, kw1, kw2, kg1, kb1, km1, kv1, kg2, kb2, km2, kv2) = jax.random.split(key, 11)

    x = jax.random.normal(kx, (N, C, D, H, W), dtype=jnp.float32)

    # Conv3d weights: (out_planes, in_planes, 3, 3, 3), no bias.
    w1 = 0.2 * jax.random.normal(kw1, (P, C, 3, 3, 3), dtype=jnp.float32)
    w2 = 0.2 * jax.random.normal(kw2, (P, P, 3, 3, 3), dtype=jnp.float32)

    # BatchNorm3d params / running stats folded to per-channel scale & shift (eval mode).
    eps = 1e-5
    gamma1 = 1.0 + 0.1 * jax.random.normal(kg1, (P,), dtype=jnp.float32)
    beta1 = 0.1 * jax.random.normal(kb1, (P,), dtype=jnp.float32)
    rmean1 = 0.05 * jax.random.normal(km1, (P,), dtype=jnp.float32)
    rvar1 = 1.0 + 0.1 * jnp.abs(jax.random.normal(kv1, (P,), dtype=jnp.float32))
    gamma2 = 1.0 + 0.1 * jax.random.normal(kg2, (P,), dtype=jnp.float32)
    beta2 = 0.1 * jax.random.normal(kb2, (P,), dtype=jnp.float32)
    rmean2 = 0.05 * jax.random.normal(km2, (P,), dtype=jnp.float32)
    rvar2 = 1.0 + 0.1 * jnp.abs(jax.random.normal(kv2, (P,), dtype=jnp.float32))

    scale1 = gamma1 / jnp.sqrt(rvar1 + eps)
    shift1 = beta1 - rmean1 * scale1
    scale2 = gamma2 / jnp.sqrt(rvar2 + eps)
    shift2 = beta2 - rmean2 * scale2

    out = basic_3d_resnet_block(x, w1, w2, scale1, shift1, scale2, shift2)
    out = jax.block_until_ready(out)
    assert out.shape == (N, P, D, H, W)
    assert out.dtype == jnp.bfloat16
    out_f = out.astype(jnp.float32)

    # Tight check vs a reference that mirrors the kernel's numerics (bf16 MXU operands,
    # folded BN scale, f32 accumulation, bf16 residual); extra slack for the bf16 store.
    ref_b = reference_forward_bf16ops(x, w1, w2, scale1, shift1, scale2, shift2)
    assert jnp.allclose(out_f, ref_b, rtol=1e-2, atol=1e-2), "mismatch vs bf16-operand reference"

    # Sanity check vs the pure-f32 PyTorch-mirroring forward; differences are only the
    # bf16 quantization of matmul operands, residual and output.
    ref_f = reference_forward_f32(x, w1, w2, scale1, shift1, scale2, shift2)
    rel = jnp.linalg.norm(out_f - ref_f) / jnp.linalg.norm(ref_f)
    assert rel < 3e-2, f"relative error vs f32 reference too large: {rel}"

    print("KERNEL_OK")
</pallas_src>

<mosaic_0001>
module attributes {stable_mosaic.version = 11 : i64} {
  func.func @kernel(%arg0: i32, %arg1: memref<1x16x512xbf16, #tpu.memory_space<vmem>>, %arg2: memref<3x9x512xbf16, #tpu.memory_space<vmem>>, %arg3: memref<3x16x144xbf16, #tpu.memory_space<vmem>>, %arg4: memref<3x16x144xbf16, #tpu.memory_space<vmem>>, %arg5: memref<16x1xf32, #tpu.memory_space<vmem>>, %arg6: memref<16x1xf32, #tpu.memory_space<vmem>>, %arg7: memref<1x16x512xbf16, #tpu.memory_space<vmem>>, %arg8: memref<144x512xbf16, #tpu.memory_space<vmem>>) attributes {dimension_semantics = [#tpu.dimension_semantics<parallel>], iteration_bounds = array<i64: 2>, scalar_prefetch = 0 : i64, scratch_operands = 1 : i64, tpu.core_type = #tpu.core_type<tc>, window_params = [{transform_indices = @transform_0, window_bounds = array<i64: 1, 16, 512>}, {pipeline_mode = #tpu.pipeline_mode<synchronous>, transform_indices = @transform_1, window_bounds = array<i64: 3, 9, 512>}, {pipeline_mode = #tpu.pipeline_mode<synchronous>, transform_indices = @transform_2, window_bounds = array<i64: 3, 16, 144>}, {pipeline_mode = #tpu.pipeline_mode<synchronous>, transform_indices = @transform_3, window_bounds = array<i64: 3, 16, 144>}, {pipeline_mode = #tpu.pipeline_mode<synchronous>, transform_indices = @transform_4, window_bounds = array<i64: 16, 1>}, {pipeline_mode = #tpu.pipeline_mode<synchronous>, transform_indices = @transform_5, window_bounds = array<i64: 16, 1>}, {transform_indices = @transform_6, window_bounds = array<i64: 1, 16, 512>}]} {
    %c0 = arith.constant 0 : index
    %c0_0 = arith.constant 0 : index
    %c0_1 = arith.constant 0 : index
    %0 = vector.load %arg1[%c0, %c0_0, %c0_1] : memref<1x16x512xbf16, #tpu.memory_space<vmem>>, vector<1x16x512xbf16>
    %1 = vector.shape_cast %0 : vector<1x16x512xbf16> to vector<16x512xbf16>
    %c0_2 = arith.constant 0 : index
    %c0_3 = arith.constant 0 : index
    %c0_4 = arith.constant 0 : index
    %2 = vector.load %arg2[%c0_2, %c0_3, %c0_4] : memref<3x9x512xbf16, #tpu.memory_space<vmem>>, vector<1x9x512xbf16>
    %3 = vector.shape_cast %2 : vector<1x9x512xbf16> to vector<9x512xbf16>
    %4 = tpu.bitcast %1 : vector<16x512xbf16> -> vector<8x512xi32>
    %c145_i32 = arith.constant 145 : i32
    %5 = tpu.dynamic_rotate %4 by %c145_i32 dim 1 : vector<8x512xi32>, i32 -> vector<8x512xi32>
    %6 = tpu.bitcast %5 : vector<8x512xi32> -> vector<16x512xbf16>
    %7 = vector.extract_strided_slice %3 {offsets = [0, 0], sizes = [1, 512], strides = [1, 1]} : vector<9x512xbf16> to vector<1x512xbf16>
    %8 = vector.broadcast %7 : vector<1x512xbf16> to vector<16x512xbf16>
    %9 = arith.mulf %6, %8 : vector<16x512xbf16>
    %c0_5 = arith.constant 0 : index
    %c0_6 = arith.constant 0 : index
    %10 = vector.load %arg8[%c0_5, %c0_6] : memref<144x512xbf16, #tpu.memory_space<vmem>>, vector<16x512xbf16>
    tpu.vector_store %arg8[%c0_5, %c0_6], %9 {strides = array<i32>} : memref<144x512xbf16, #tpu.memory_space<vmem>>, vector<16x512xbf16>,
    %11 = tpu.bitcast %1 : vector<16x512xbf16> -> vector<8x512xi32>
    %c144_i32 = arith.constant 144 : i32
    %12 = tpu.dynamic_rotate %11 by %c144_i32 dim 1 : vector<8x512xi32>, i32 -> vector<8x512xi32>
    %13 = tpu.bitcast %12 : vector<8x512xi32> -> vector<16x512xbf16>
    %14 = vector.extract_strided_slice %3 {offsets = [1, 0], sizes = [1, 512], strides = [1, 1]} : vector<9x512xbf16> to vector<1x512xbf16>
    %15 = vector.broadcast %14 : vector<1x512xbf16> to vector<16x512xbf16>
    %16 = arith.mulf %13, %15 : vector<16x512xbf16>
    %c16 = arith.constant 16 : index
    %c0_7 = arith.constant 0 : index
    %17 = vector.load %arg8[%c16, %c0_7] : memref<144x512xbf16, #tpu.memory_space<vmem>>, vector<16x512xbf16>
    tpu.vector_store %arg8[%c16, %c0_7], %16 {strides = array<i32>} : memref<144x512xbf16, #tpu.memory_space<vmem>>, vector<16x512xbf16>,
    %18 = tpu.bitcast %1 : vector<16x512xbf16> -> vector<8x512xi32>
    %c143_i32 = arith.constant 143 : i32
    %19 = tpu.dynamic_rotate %18 by %c143_i32 dim 1 : vector<8x512xi32>, i32 -> vector<8x512xi32>
    %20 = tpu.bitcast %19 : vector<8x512xi32> -> vector<16x512xbf16>
    %21 = vector.extract_strided_slice %3 {offsets = [2, 0], sizes = [1, 512], strides = [1, 1]} : vector<9x512xbf16> to vector<1x512xbf16>
    %22 = vector.broadcast %21 : vector<1x512xbf16> to vector<16x512xbf16>
    %23 = arith.mulf %20, %22 : vector<16x512xbf16>
    %c32 = arith.constant 32 : index
    %c0_8 = arith.constant 0 : index
    %24 = vector.load %arg8[%c32, %c0_8] : memref<144x512xbf16, #tpu.memory_space<vmem>>, vector<16x512xbf16>
    tpu.vector_store %arg8[%c32, %c0_8], %23 {strides = array<i32>} : memref<144x512xbf16, #tpu.memory_space<vmem>>, vector<16x512xbf16>,
    %25 = tpu.bitcast %1 : vector<16x512xbf16> -> vector<8x512xi32>
    %c129_i32 = arith.constant 129 : i32
    %26 = tpu.dynamic_rotate %25 by %c129_i32 dim 1 : vector<8x512xi32>, i32 -> vector<8x512xi32>
    %27 = tpu.bitcast %26 : vector<8x512xi32> -> vector<16x512xbf16>
    %28 = vector.extract_strided_slice %3 {offsets = [3, 0], sizes = [1, 512], strides = [1, 1]} : vector<9x512xbf16> to vector<1x512xbf16>
    %29 = vector.broadcast %28 : vector<1x512xbf16> to vector<16x512xbf16>
    %30 = arith.mulf %27, %29 : vector<16x512xbf16>
    %c48 = arith.constant 48 : index
    %c0_9 = arith.constant 0 : index
    %31 = vector.load %arg8[%c48, %c0_9] : memref<144x512xbf16, #tpu.memory_space<vmem>>, vector<16x512xbf16>
    tpu.vector_store %arg8[%c48, %c0_9], %30 {strides = array<i32>} : memref<144x512xbf16, #tpu.memory_space<vmem>>, vector<16x512xbf16>,
    %32 = tpu.bitcast %1 : vector<16x512xbf16> -> vector<8x512xi32>
    %c128_i32 = arith.constant 128 : i32
    %33 = tpu.dynamic_rotate %32 by %c128_i32 dim 1 : vector<8x512xi32>, i32 -> vector<8x512xi32>
    %34 = tpu.bitcast %33 : vector<8x512xi32> -> vector<16x512xbf16>
    %35 = vector.extract_strided_slice %3 {offsets = [4, 0], sizes = [1, 512], strides = [1, 1]} : vector<9x512xbf16> to vector<1x512xbf16>
    %36 = vector.broadcast %35 : vector<1x512xbf16> to vector<16x512xbf16>
    %37 = arith.mulf %34, %36 : vector<16x512xbf16>
    %c64 = arith.constant 64 : index
    %c0_10 = arith.constant 0 : index
    %38 = vector.load %arg8[%c64, %c0_10] : memref<144x512xbf16, #tpu.memory_space<vmem>>, vector<16x512xbf16>
    tpu.vector_store %arg8[%c64, %c0_10], %37 {strides = array<i32>} : memref<144x512xbf16, #tpu.memory_space<vmem>>, vector<16x512xbf16>,
    %39 = tpu.bitcast %1 : vector<16x512xbf16> -> vector<8x512xi32>
    %c127_i32 = arith.constant 127 : i32
    %40 = tpu.dynamic_rotate %39 by %c127_i32 dim 1 : vector<8x512xi32>, i32 -> vector<8x512xi32>
    %41 = tpu.bitcast %40 : vector<8x512xi32> -> vector<16x512xbf16>
    %42 = vector.extract_strided_slice %3 {offsets = [5, 0], sizes = [1, 512], strides = [1, 1]} : vector<9x512xbf16> to vector<1x512xbf16>
    %43 = vector.broadcast %42 : vector<1x512xbf16> to vector<16x512xbf16>
    %44 = arith.mulf %41, %43 : vector<16x512xbf16>
    %c80 = arith.constant 80 : index
    %c0_11 = arith.constant 0 : index
    %45 = vector.load %arg8[%c80, %c0_11] : memref<144x512xbf16, #tpu.memory_space<vmem>>, vector<16x512xbf16>
    tpu.vector_store %arg8[%c80, %c0_11], %44 {strides = array<i32>} : memref<144x512xbf16, #tpu.memory_space<vmem>>, vector<16x512xbf16>,
    %46 = tpu.bitcast %1 : vector<16x512xbf16> -> vector<8x512xi32>
    %c113_i32 = arith.constant 113 : i32
    %47 = tpu.dynamic_rotate %46 by %c113_i32 dim 1 : vector<8x512xi32>, i32 -> vector<8x512xi32>
    %48 = tpu.bitcast %47 : vector<8x512xi32> -> vector<16x512xbf16>
    %49 = vector.extract_strided_slice %3 {offsets = [6, 0], sizes = [1, 512], strides = [1, 1]} : vector<9x512xbf16> to vector<1x512xbf16>
    %50 = vector.broadcast %49 : vector<1x512xbf16> to vector<16x512xbf16>
    %51 = arith.mulf %48, %50 : vector<16x512xbf16>
    %c96 = arith.constant 96 : index
    %c0_12 = arith.constant 0 : index
    %52 = vector.load %arg8[%c96, %c0_12] : memref<144x512xbf16, #tpu.memory_space<vmem>>, vector<16x512xbf16>
    tpu.vector_store %arg8[%c96, %c0_12], %51 {strides = array<i32>} : memref<144x512xbf16, #tpu.memory_space<vmem>>, vector<16x512xbf16>,
    %53 = tpu.bitcast %1 : vector<16x512xbf16> -> vector<8x512xi32>
    %c112_i32 = arith.constant 112 : i32
    %54 = tpu.dynamic_rotate %53 by %c112_i32 dim 1 : vector<8x512xi32>, i32 -> vector<8x512xi32>
    %55 = tpu.bitcast %54 : vector<8x512xi32> -> vector<16x512xbf16>
    %56 = vector.extract_strided_slice %3 {offsets = [7, 0], sizes = [1, 512], strides = [1, 1]} : vector<9x512xbf16> to vector<1x512xbf16>
    %57 = vector.broadcast %56 : vector<1x512xbf16> to vector<16x512xbf16>
    %58 = arith.mulf %55, %57 : vector<16x512xbf16>
    %c112 = arith.constant 112 : index
    %c0_13 = arith.constant 0 : index
    %59 = vector.load %arg8[%c112, %c0_13] : memref<144x512xbf16, #tpu.memory_space<vmem>>, vector<16x512xbf16>
    tpu.vector_store %arg8[%c112, %c0_13], %58 {strides = array<i32>} : memref<144x512xbf16, #tpu.memory_space<vmem>>, vector<16x512xbf16>,
    %60 = tpu.bitcast %1 : vector<16x512xbf16> -> vector<8x512xi32>
    %c111_i32 = arith.constant 111 : i32
    %61 = tpu.dynamic_rotate %60 by %c111_i32 dim 1 : vector<8x512xi32>, i32 -> vector<8x512xi32>
    %62 = tpu.bitcast %61 : vector<8x512xi32> -> vector<16x512xbf16>
    %63 = vector.extract_strided_slice %3 {offsets = [8, 0], sizes = [1, 512], strides = [1, 1]} : vector<9x512xbf16> to vector<1x512xbf16>
    %64 = vector.broadcast %63 : vector<1x512xbf16> to vector<16x512xbf16>
    %65 = arith.mulf %62, %64 : vector<16x512xbf16>
    %c128 = arith.constant 128 : index
    %c0_14 = arith.constant 0 : index
    %66 = vector.load %arg8[%c128, %c0_14] : memref<144x512xbf16, #tpu.memory_space<vmem>>, vector<16x512xbf16>
    tpu.vector_store %arg8[%c128, %c0_14], %65 {strides = array<i32>} : memref<144x512xbf16, #tpu.memory_space<vmem>>, vector<16x512xbf16>,
    %c0_15 = arith.constant 0 : index
    %c0_16 = arith.constant 0 : index
    %c0_17 = arith.constant 0 : index
    %67 = vector.load %arg3[%c0_15, %c0_16, %c0_17] : memref<3x16x144xbf16, #tpu.memory_space<vmem>>, vector<1x16x144xbf16>
    %68 = vector.shape_cast %67 : vector<1x16x144xbf16> to vector<16x144xbf16>
    %c0_18 = arith.constant 0 : index
    %c0_19 = arith.constant 0 : index
    %69 = vector.load %arg8[%c0_18, %c0_19] : memref<144x512xbf16, #tpu.memory_space<vmem>>, vector<144x512xbf16>
    %cst = arith.constant dense<0.000000e+00> : vector<16x512xf32>
    %70 = tpu.matmul %68, %69, %cst {dimension_numbers = #tpu.dot_dimension_numbers<[1], [0], [0], [1], [0, 0, 1, 1], [], []>} : vector<16x144xbf16>, vector<144x512xbf16>, vector<16x512xf32> -> vector<16x512xf32>
    %c1 = arith.constant 1 : index
    %c0_20 = arith.constant 0 : index
    %c0_21 = arith.constant 0 : index
    %71 = vector.load %arg2[%c1, %c0_20, %c0_21] : memref<3x9x512xbf16, #tpu.memory_space<vmem>>, vector<1x9x512xbf16>
    %72 = vector.shape_cast %71 : vector<1x9x512xbf16> to vector<9x512xbf16>
    %73 = tpu.bitcast %1 : vector<16x512xbf16> -> vector<8x512xi32>
    %c17_i32 = arith.constant 17 : i32
    %74 = tpu.dynamic_rotate %73 by %c17_i32 dim 1 : vector<8x512xi32>, i32 -> vector<8x512xi32>
    %75 = tpu.bitcast %74 : vector<8x512xi32> -> vector<16x512xbf16>
    %76 = vector.extract_strided_slice %72 {offsets = [0, 0], sizes = [1, 512], strides = [1, 1]} : vector<9x512xbf16> to vector<1x512xbf16>
    %77 = vector.broadcast %76 : vector<1x512xbf16> to vector<16x512xbf16>
    %78 = arith.mulf %75, %77 : vector<16x512xbf16>
    %c0_22 = arith.constant 0 : index
    %c0_23 = arith.constant 0 : index
    %79 = vector.load %arg8[%c0_22, %c0_23] : memref<144x512xbf16, #tpu.memory_space<vmem>>, vector<16x512xbf16>
    tpu.vector_store %arg8[%c0_22, %c0_23], %78 {strides = array<i32>} : memref<144x512xbf16, #tpu.memory_space<vmem>>, vector<16x512xbf16>,
    %80 = tpu.bitcast %1 : vector<16x512xbf16> -> vector<8x512xi32>
    %c16_i32 = arith.constant 16 : i32
    %81 = tpu.dynamic_rotate %80 by %c16_i32 dim 1 : vector<8x512xi32>, i32 -> vector<8x512xi32>
    %82 = tpu.bitcast %81 : vector<8x512xi32> -> vector<16x512xbf16>
    %83 = vector.extract_strided_slice %72 {offsets = [1, 0], sizes = [1, 512], strides = [1, 1]} : vector<9x512xbf16> to vector<1x512xbf16>
    %84 = vector.broadcast %83 : vector<1x512xbf16> to vector<16x512xbf16>
    %85 = arith.mulf %82, %84 : vector<16x512xbf16>
    %c16_24 = arith.constant 16 : index
    %c0_25 = arith.constant 0 : index
    %86 = vector.load %arg8[%c16_24, %c0_25] : memref<144x512xbf16, #tpu.memory_space<vmem>>, vector<16x512xbf16>
    tpu.vector_store %arg8[%c16_24, %c0_25], %85 {strides = array<i32>} : memref<144x512xbf16, #tpu.memory_space<vmem>>, vector<16x512xbf16>,
    %87 = tpu.bitcast %1 : vector<16x512xbf16> -> vector<8x512xi32>
    %c15_i32 = arith.constant 15 : i32
    %88 = tpu.dynamic_rotate %87 by %c15_i32 dim 1 : vector<8x512xi32>, i32 -> vector<8x512xi32>
    %89 = tpu.bitcast %88 : vector<8x512xi32> -> vector<16x512xbf16>
    %90 = vector.extract_strided_slice %72 {offsets = [2, 0], sizes = [1, 512], strides = [1, 1]} : vector<9x512xbf16> to vector<1x512xbf16>
    %91 = vector.broadcast %90 : vector<1x512xbf16> to vector<16x512xbf16>
    %92 = arith.mulf %89, %91 : vector<16x512xbf16>
    %c32_26 = arith.constant 32 : index
    %c0_27 = arith.constant 0 : index
    %93 = vector.load %arg8[%c32_26, %c0_27] : memref<144x512xbf16, #tpu.memory_space<vmem>>, vector<16x512xbf16>
    tpu.vector_store %arg8[%c32_26, %c0_27], %92 {strides = array<i32>} : memref<144x512xbf16, #tpu.memory_space<vmem>>, vector<16x512xbf16>,
    %94 = tpu.bitcast %1 : vector<16x512xbf16> -> vector<8x512xi32>
    %c1_i32 = arith.constant 1 : i32
    %95 = tpu.dynamic_rotate %94 by %c1_i32 dim 1 : vector<8x512xi32>, i32 -> vector<8x512xi32>
    %96 = tpu.bitcast %95 : vector<8x512xi32> -> vector<16x512xbf16>
    %97 = vector.extract_strided_slice %72 {offsets = [3, 0], sizes = [1, 512], strides = [1, 1]} : vector<9x512xbf16> to vector<1x512xbf16>
    %98 = vector.broadcast %97 : vector<1x512xbf16> to vector<16x512xbf16>
    %99 = arith.mulf %96, %98 : vector<16x512xbf16>
    %c48_28 = arith.constant 48 : index
    %c0_29 = arith.constant 0 : index
    %100 = vector.load %arg8[%c48_28, %c0_29] : memref<144x512xbf16, #tpu.memory_space<vmem>>, vector<16x512xbf16>
    tpu.vector_store %arg8[%c48_28, %c0_29], %99 {strides = array<i32>} : memref<144x512xbf16, #tpu.memory_space<vmem>>, vector<16x512xbf16>,
    %c64_30 = arith.constant 64 : index
    %c0_31 = arith.constant 0 : index
    %101 = vector.load %arg8[%c64_30, %c0_31] : memref<144x512xbf16, #tpu.memory_space<vmem>>, vector<16x512xbf16>
    tpu.vector_store %arg8[%c64_30, %c0_31], %1 {strides = array<i32>} : memref<144x512xbf16, #tpu.memory_space<vmem>>, vector<16x512xbf16>,
    %102 = tpu.bitcast %1 : vector<16x512xbf16> -> vector<8x512xi32>
    %c511_i32 = arith.constant 511 : i32
    %103 = tpu.dynamic_rotate %102 by %c511_i32 dim 1 : vector<8x512xi32>, i32 -> vector<8x512xi32>
    %104 = tpu.bitcast %103 : vector<8x512xi32> -> vector<16x512xbf16>
    %105 = vector.extract_strided_slice %72 {offsets = [5, 0], sizes = [1, 512], strides = [1, 1]} : vector<9x512xbf16> to vector<1x512xbf16>
    %106 = vector.broadcast %105 : vector<1x512xbf16> to vector<16x512xbf16>
    %107 = arith.mulf %104, %106 : vector<16x512xbf16>
    %c80_32 = arith.constant 80 : index
    %c0_33 = arith.constant 0 : index
    %108 = vector.load %arg8[%c80_32, %c0_33] : memref<144x512xbf16, #tpu.memory_space<vmem>>, vector<16x512xbf16>
    tpu.vector_store %arg8[%c80_32, %c0_33], %107 {strides = array<i32>} : memref<144x512xbf16, #tpu.memory_space<vmem>>, vector<16x512xbf16>,
    %109 = tpu.bitcast %1 : vector<16x512xbf16> -> vector<8x512xi32>
    %c497_i32 = arith.constant 497 : i32
    %110 = tpu.dynamic_rotate %109 by %c497_i32 dim 1 : vector<8x512xi32>, i32 -> vector<8x512xi32>
    %111 = tpu.bitcast %110 : vector<8x512xi32> -> vector<16x512xbf16>
    %112 = vector.extract_strided_slice %72 {offsets = [6, 0], sizes = [1, 512], strides = [1, 1]} : vector<9x512xbf16> to vector<1x512xbf16>
    %113 = vector.broadcast %112 : vector<1x512xbf16> to vector<16x512xbf16>
    %114 = arith.mulf %111, %113 : vector<16x512xbf16>
    %c96_34 = arith.constant 96 : index
    %c0_35 = arith.constant 0 : index
    %115 = vector.load %arg8[%c96_34, %c0_35] : memref<144x512xbf16, #tpu.memory_space<vmem>>, vector<16x512xbf16>
    tpu.vector_store %arg8[%c96_34, %c0_35], %114 {strides = array<i32>} : memref<144x512xbf16, #tpu.memory_space<vmem>>, vector<16x512xbf16>,
    %116 = tpu.bitcast %1 : vector<16x512xbf16> -> vector<8x512xi32>
    %c496_i32 = arith.constant 496 : i32
    %117 = tpu.dynamic_rotate %116 by %c496_i32 dim 1 : vector<8x512xi32>, i32 -> vector<8x512xi32>
    %118 = tpu.bitcast %117 : vector<8x512xi32> -> vector<16x512xbf16>
    %119 = vector.extract_strided_slice %72 {offsets = [7, 0], sizes = [1, 512], strides = [1, 1]} : vector<9x512xbf16> to vector<1x512xbf16>
    %120 = vector.broadcast %119 : vector<1x512xbf16> to vector<16x512xbf16>
    %121 = arith.mulf %118, %120 : vector<16x512xbf16>
    %c112_36 = arith.constant 112 : index
    %c0_37 = arith.constant 0 : index
    %122 = vector.load %arg8[%c112_36, %c0_37] : memref<144x512xbf16, #tpu.memory_space<vmem>>, vector<16x512xbf16>
    tpu.vector_store %arg8[%c112_36, %c0_37], %121 {strides = array<i32>} : memref<144x512xbf16, #tpu.memory_space<vmem>>, vector<16x512xbf16>,
    %123 = tpu.bitcast %1 : vector<16x512xbf16> -> vector<8x512xi32>
    %c495_i32 = arith.constant 495 : i32
    %124 = tpu.dynamic_rotate %123 by %c495_i32 dim 1 : vector<8x512xi32>, i32 -> vector<8x512xi32>
    %125 = tpu.bitcast %124 : vector<8x512xi32> -> vector<16x512xbf16>
    %126 = vector.extract_strided_slice %72 {offsets = [8, 0], sizes = [1, 512], strides = [1, 1]} : vector<9x512xbf16> to vector<1x512xbf16>
    %127 = vector.broadcast %126 : vector<1x512xbf16> to vector<16x512xbf16>
    %128 = arith.mulf %125, %127 : vector<16x512xbf16>
    %c128_38 = arith.constant 128 : index
    %c0_39 = arith.constant 0 : index
    %129 = vector.load %arg8[%c128_38, %c0_39] : memref<144x512xbf16, #tpu.memory_space<vmem>>, vector<16x512xbf16>
    tpu.vector_store %arg8[%c128_38, %c0_39], %128 {strides = array<i32>} : memref<144x512xbf16, #tpu.memory_space<vmem>>, vector<16x512xbf16>,
    %c1_40 = arith.constant 1 : index
    %c0_41 = arith.constant 0 : index
    %c0_42 = arith.constant 0 : index
    %130 = vector.load %arg3[%c1_40, %c0_41, %c0_42] : memref<3x16x144xbf16, #tpu.memory_space<vmem>>, vector<1x16x144xbf16>
    %131 = vector.shape_cast %130 : vector<1x16x144xbf16> to vector<16x144xbf16>
    %c0_43 = arith.constant 0 : index
    %c0_44 = arith.constant 0 : index
    %132 = vector.load %arg8[%c0_43, %c0_44] : memref<144x512xbf16, #tpu.memory_space<vmem>>, vector<144x512xbf16>
    %cst_45 = arith.constant dense<0.000000e+00> : vector<16x512xf32>
    %133 = tpu.matmul %131, %132, %cst_45 {dimension_numbers = #tpu.dot_dimension_numbers<[1], [0], [0], [1], [0, 0, 1, 1], [], []>} : vector<16x144xbf16>, vector<144x512xbf16>, vector<16x512xf32> -> vector<16x512xf32>
    %134 = arith.addf %70, %133 : vector<16x512xf32>
    %c2 = arith.constant 2 : index
    %c0_46 = arith.constant 0 : index
    %c0_47 = arith.constant 0 : index
    %135 = vector.load %arg2[%c2, %c0_46, %c0_47] : memref<3x9x512xbf16, #tpu.memory_space<vmem>>, vector<1x9x512xbf16>
    %136 = vector.shape_cast %135 : vector<1x9x512xbf16> to vector<9x512xbf16>
    %137 = tpu.bitcast %1 : vector<16x512xbf16> -> vector<8x512xi32>
    %c401_i32 = arith.constant 401 : i32
    %138 = tpu.dynamic_rotate %137 by %c401_i32 dim 1 : vector<8x512xi32>, i32 -> vector<8x512xi32>
    %139 = tpu.bitcast %138 : vector<8x512xi32> -> vector<16x512xbf16>
    %140 = vector.extract_strided_slice %136 {offsets = [0, 0], sizes = [1, 512], strides = [1, 1]} : vector<9x512xbf16> to vector<1x512xbf16>
    %141 = vector.broadcast %140 : vector<1x512xbf16> to vector<16x512xbf16>
    %142 = arith.mulf %139, %141 : vector<16x512xbf16>
    %c0_48 = arith.constant 0 : index
    %c0_49 = arith.constant 0 : index
    %143 = vector.load %arg8[%c0_48, %c0_49] : memref<144x512xbf16, #tpu.memory_space<vmem>>, vector<16x512xbf16>
    tpu.vector_store %arg8[%c0_48, %c0_49], %142 {strides = array<i32>} : memref<144x512xbf16, #tpu.memory_space<vmem>>, vector<16x512xbf16>,
    %144 = tpu.bitcast %1 : vector<16x512xbf16> -> vector<8x512xi32>
    %c400_i32 = arith.constant 400 : i32
    %145 = tpu.dynamic_rotate %144 by %c400_i32 dim 1 : vector<8x512xi32>, i32 -> vector<8x512xi32>
    %146 = tpu.bitcast %145 : vector<8x512xi32> -> vector<16x512xbf16>
    %147 = vector.extract_strided_slice %136 {offsets = [1, 0], sizes = [1, 512], strides = [1, 1]} : vector<9x512xbf16> to vector<1x512xbf16>
    %148 = vector.broadcast %147 : vector<1x512xbf16> to vector<16x512xbf16>
    %149 = arith.mulf %146, %148 : vector<16x512xbf16>
    %c16_50 = arith.constant 16 : index
    %c0_51 = arith.constant 0 : index
    %150 = vector.load %arg8[%c16_50, %c0_51] : memref<144x512xbf16, #tpu.memory_space<vmem>>, vector<16x512xbf16>
    tpu.vector_store %arg8[%c16_50, %c0_51], %149 {strides = array<i32>} : memref<144x512xbf16, #tpu.memory_space<vmem>>, vector<16x512xbf16>,
    %151 = tpu.bitcast %1 : vector<16x512xbf16> -> vector<8x512xi32>
    %c399_i32 = arith.constant 399 : i32
    %152 = tpu.dynamic_rotate %151 by %c399_i32 dim 1 : vector<8x512xi32>, i32 -> vector<8x512xi32>
    %153 = tpu.bitcast %152 : vector<8x512xi32> -> vector<16x512xbf16>
    %154 = vector.extract_strided_slice %136 {offsets = [2, 0], sizes = [1, 512], strides = [1, 1]} : vector<9x512xbf16> to vector<1x512xbf16>
    %155 = vector.broadcast %154 : vector<1x512xbf16> to vector<16x512xbf16>
    %156 = arith.mulf %153, %155 : vector<16x512xbf16>
    %c32_52 = arith.constant 32 : index
    %c0_53 = arith.constant 0 : index
    %157 = vector.load %arg8[%c32_52, %c0_53] : memref<144x512xbf16, #tpu.memory_space<vmem>>, vector<16x512xbf16>
    tpu.vector_store %arg8[%c32_52, %c0_53], %156 {strides = array<i32>} : memref<144x512xbf16, #tpu.memory_space<vmem>>, vector<16x512xbf16>,
    %158 = tpu.bitcast %1 : vector<16x512xbf16> -> vector<8x512xi32>
    %c385_i32 = arith.constant 385 : i32
    %159 = tpu.dynamic_rotate %158 by %c385_i32 dim 1 : vector<8x512xi32>, i32 -> vector<8x512xi32>
    %160 = tpu.bitcast %159 : vector<8x512xi32> -> vector<16x512xbf16>
    %161 = vector.extract_strided_slice %136 {offsets = [3, 0], sizes = [1, 512], strides = [1, 1]} : vector<9x512xbf16> to vector<1x512xbf16>
    %162 = vector.broadcast %161 : vector<1x512xbf16> to vector<16x512xbf16>
    %163 = arith.mulf %160, %162 : vector<16x512xbf16>
    %c48_54 = arith.constant 48 : index
    %c0_55 = arith.constant 0 : index
    %164 = vector.load %arg8[%c48_54, %c0_55] : memref<144x512xbf16, #tpu.memory_space<vmem>>, vector<16x512xbf16>
    tpu.vector_store %arg8[%c48_54, %c0_55], %163 {strides = array<i32>} : memref<144x512xbf16, #tpu.memory_space<vmem>>, vector<16x512xbf16>,
    %165 = tpu.bitcast %1 : vector<16x512xbf16> -> vector<8x512xi32>
    %c384_i32 = arith.constant 384 : i32
    %166 = tpu.dynamic_rotate %165 by %c384_i32 dim 1 : vector<8x512xi32>, i32 -> vector<8x512xi32>
    %167 = tpu.bitcast %166 : vector<8x512xi32> -> vector<16x512xbf16>
    %168 = vector.extract_strided_slice %136 {offsets = [4, 0], sizes = [1, 512], strides = [1, 1]} : vector<9x512xbf16> to vector<1x512xbf16>
    %169 = vector.broadcast %168 : vector<1x512xbf16> to vector<16x512xbf16>
    %170 = arith.mulf %167, %169 : vector<16x512xbf16>
    %c64_56 = arith.constant 64 : index
    %c0_57 = arith.constant 0 : index
    %171 = vector.load %arg8[%c64_56, %c0_57] : memref<144x512xbf16, #tpu.memory_space<vmem>>, vector<16x512xbf16>
    tpu.vector_store %arg8[%c64_56, %c0_57], %170 {strides = array<i32>} : memref<144x512xbf16, #tpu.memory_space<vmem>>, vector<16x512xbf16>,
    %172 = tpu.bitcast %1 : vector<16x512xbf16> -> vector<8x512xi32>
    %c383_i32 = arith.constant 383 : i32
    %173 = tpu.dynamic_rotate %172 by %c383_i32 dim 1 : vector<8x512xi32>, i32 -> vector<8x512xi32>
    %174 = tpu.bitcast %173 : vector<8x512xi32> -> vector<16x512xbf16>
    %175 = vector.extract_strided_slice %136 {offsets = [5, 0], sizes = [1, 512], strides = [1, 1]} : vector<9x512xbf16> to vector<1x512xbf16>
    %176 = vector.broadcast %175 : vector<1x512xbf16> to vector<16x512xbf16>
    %177 = arith.mulf %174, %176 : vector<16x512xbf16>
    %c80_58 = arith.constant 80 : index
    %c0_59 = arith.constant 0 : index
    %178 = vector.load %arg8[%c80_58, %c0_59] : memref<144x512xbf16, #tpu.memory_space<vmem>>, vector<16x512xbf16>
    tpu.vector_store %arg8[%c80_58, %c0_59], %177 {strides = array<i32>} : memref<144x512xbf16, #tpu.memory_space<vmem>>, vector<16x512xbf16>,
    %179 = tpu.bitcast %1 : vector<16x512xbf16> -> vector<8x512xi32>
    %c369_i32 = arith.constant 369 : i32
    %180 = tpu.dynamic_rotate %179 by %c369_i32 dim 1 : vector<8x512xi32>, i32 -> vector<8x512xi32>
    %181 = tpu.bitcast %180 : vector<8x512xi32> -> vector<16x512xbf16>
    %182 = vector.extract_strided_slice %136 {offsets = [6, 0], sizes = [1, 512], strides = [1, 1]} : vector<9x512xbf16> to vector<1x512xbf16>
    %183 = vector.broadcast %182 : vector<1x512xbf16> to vector<16x512xbf16>
    %184 = arith.mulf %181, %183 : vector<16x512xbf16>
    %c96_60 = arith.constant 96 : index
    %c0_61 = arith.constant 0 : index
    %185 = vector.load %arg8[%c96_60, %c0_61] : memref<144x512xbf16, #tpu.memory_space<vmem>>, vector<16x512xbf16>
    tpu.vector_store %arg8[%c96_60, %c0_61], %184 {strides = array<i32>} : memref<144x512xbf16, #tpu.memory_space<vmem>>, vector<16x512xbf16>,
    %186 = tpu.bitcast %1 : vector<16x512xbf16> -> vector<8x512xi32>
    %c368_i32 = arith.constant 368 : i32
    %187 = tpu.dynamic_rotate %186 by %c368_i32 dim 1 : vector<8x512xi32>, i32 -> vector<8x512xi32>
    %188 = tpu.bitcast %187 : vector<8x512xi32> -> vector<16x512xbf16>
    %189 = vector.extract_strided_slice %136 {offsets = [7, 0], sizes = [1, 512], strides = [1, 1]} : vector<9x512xbf16> to vector<1x512xbf16>
    %190 = vector.broadcast %189 : vector<1x512xbf16> to vector<16x512xbf16>
    %191 = arith.mulf %188, %190 : vector<16x512xbf16>
    %c112_62 = arith.constant 112 : index
    %c0_63 = arith.constant 0 : index
    %192 = vector.load %arg8[%c112_62, %c0_63] : memref<144x512xbf16, #tpu.memory_space<vmem>>, vector<16x512xbf16>
    tpu.vector_store %arg8[%c112_62, %c0_63], %191 {strides = array<i32>} : memref<144x512xbf16, #tpu.memory_space<vmem>>, vector<16x512xbf16>,
    %193 = tpu.bitcast %1 : vector<16x512xbf16> -> vector<8x512xi32>
    %c367_i32 = arith.constant 367 : i32
    %194 = tpu.dynamic_rotate %193 by %c367_i32 dim 1 : vector<8x512xi32>, i32 -> vector<8x512xi32>
    %195 = tpu.bitcast %194 : vector<8x512xi32> -> vector<16x512xbf16>
    %196 = vector.extract_strided_slice %136 {offsets = [8, 0], sizes = [1, 512], strides = [1, 1]} : vector<9x512xbf16> to vector<1x512xbf16>
    %197 = vector.broadcast %196 : vector<1x512xbf16> to vector<16x512xbf16>
    %198 = arith.mulf %195, %197 : vector<16x512xbf16>
    %c128_64 = arith.constant 128 : index
    %c0_65 = arith.constant 0 : index
    %199 = vector.load %arg8[%c128_64, %c0_65] : memref<144x512xbf16, #tpu.memory_space<vmem>>, vector<16x512xbf16>
    tpu.vector_store %arg8[%c128_64, %c0_65], %198 {strides = array<i32>} : memref<144x512xbf16, #tpu.memory_space<vmem>>, vector<16x512xbf16>,
    %c2_66 = arith.constant 2 : index
    %c0_67 = arith.constant 0 : index
    %c0_68 = arith.constant 0 : index
    %200 = vector.load %arg3[%c2_66, %c0_67, %c0_68] : memref<3x16x144xbf16, #tpu.memory_space<vmem>>, vector<1x16x144xbf16>
    %201 = vector.shape_cast %200 : vector<1x16x144xbf16> to vector<16x144xbf16>
    %c0_69 = arith.constant 0 : index
    %c0_70 = arith.constant 0 : index
    %202 = vector.load %arg8[%c0_69, %c0_70] : memref<144x512xbf16, #tpu.memory_space<vmem>>, vector<144x512xbf16>
    %cst_71 = arith.constant dense<0.000000e+00> : vector<16x512xf32>
    %203 = tpu.matmul %201, %202, %cst_71 {dimension_numbers = #tpu.dot_dimension_numbers<[1], [0], [0], [1], [0, 0, 1, 1], [], []>} : vector<16x144xbf16>, vector<144x512xbf16>, vector<16x512xf32> -> vector<16x512xf32>
    %204 = arith.addf %134, %203 : vector<16x512xf32>
    %c0_72 = arith.constant 0 : index
    %c0_73 = arith.constant 0 : index
    %205 = vector.load %arg5[%c0_72, %c0_73] : memref<16x1xf32, #tpu.memory_space<vmem>>, vector<16x1xf32>
    %206 = vector.broadcast %205 : vector<16x1xf32> to vector<16x512xf32>
    %207 = arith.addf %204, %206 : vector<16x512xf32>
    %cst_74 = arith.constant 0.000000e+00 : f32
    %208 = vector.broadcast %cst_74 : f32 to vector<16x512xf32>
    %209 = arith.maximumf %207, %208 : vector<16x512xf32>
    %210 = arith.truncf %209 : vector<16x512xf32> to vector<16x512xbf16>
    %c0_75 = arith.constant 0 : index
    %c0_76 = arith.constant 0 : index
    %c0_77 = arith.constant 0 : index
    %211 = vector.load %arg2[%c0_75, %c0_76, %c0_77] : memref<3x9x512xbf16, #tpu.memory_space<vmem>>, vector<1x9x512xbf16>
    %212 = vector.shape_cast %211 : vector<1x9x512xbf16> to vector<9x512xbf16>
    %213 = tpu.bitcast %210 : vector<16x512xbf16> -> vector<8x512xi32>
    %c145_i32_78 = arith.constant 145 : i32
    %214 = tpu.dynamic_rotate %213 by %c145_i32_78 dim 1 : vector<8x512xi32>, i32 -> vector<8x512xi32>
    %215 = tpu.bitcast %214 : vector<8x512xi32> -> vector<16x512xbf16>
    %216 = vector.extract_strided_slice %212 {offsets = [0, 0], sizes = [1, 512], strides = [1, 1]} : vector<9x512xbf16> to vector<1x512xbf16>
    %217 = vector.broadcast %216 : vector<1x512xbf16> to vector<16x512xbf16>
    %218 = arith.mulf %215, %217 : vector<16x512xbf16>
    %c0_79 = arith.constant 0 : index
    %c0_80 = arith.constant 0 : index
    %219 = vector.load %arg8[%c0_79, %c0_80] : memref<144x512xbf16, #tpu.memory_space<vmem>>, vector<16x512xbf16>
    tpu.vector_store %arg8[%c0_79, %c0_80], %218 {strides = array<i32>} : memref<144x512xbf16, #tpu.memory_space<vmem>>, vector<16x512xbf16>,
    %220 = tpu.bitcast %210 : vector<16x512xbf16> -> vector<8x512xi32>
    %c144_i32_81 = arith.constant 144 : i32
    %221 = tpu.dynamic_rotate %220 by %c144_i32_81 dim 1 : vector<8x512xi32>, i32 -> vector<8x512xi32>
    %222 = tpu.bitcast %221 : vector<8x512xi32> -> vector<16x512xbf16>
    %223 = vector.extract_strided_slice %212 {offsets = [1, 0], sizes = [1, 512], strides = [1, 1]} : vector<9x512xbf16> to vector<1x512xbf16>
    %224 = vector.broadcast %223 : vector<1x512xbf16> to vector<16x512xbf16>
    %225 = arith.mulf %222, %224 : vector<16x512xbf16>
    %c16_82 = arith.constant 16 : index
    %c0_83 = arith.constant 0 : index
    %226 = vector.load %arg8[%c16_82, %c0_83] : memref<144x512xbf16, #tpu.memory_space<vmem>>, vector<16x512xbf16>
    tpu.vector_store %arg8[%c16_82, %c0_83], %225 {strides = array<i32>} : memref<144x512xbf16, #tpu.memory_space<vmem>>, vector<16x512xbf16>,
    %227 = tpu.bitcast %210 : vector<16x512xbf16> -> vector<8x512xi32>
    %c143_i32_84 = arith.constant 143 : i32
    %228 = tpu.dynamic_rotate %227 by %c143_i32_84 dim 1 : vector<8x512xi32>, i32 -> vector<8x512xi32>
    %229 = tpu.bitcast %228 : vector<8x512xi32> -> vector<16x512xbf16>
    %230 = vector.extract_strided_slice %212 {offsets = [2, 0], sizes = [1, 512], strides = [1, 1]} : vector<9x512xbf16> to vector<1x512xbf16>
    %231 = vector.broadcast %230 : vector<1x512xbf16> to vector<16x512xbf16>
    %232 = arith.mulf %229, %231 : vector<16x512xbf16>
    %c32_85 = arith.constant 32 : index
    %c0_86 = arith.constant 0 : index
    %233 = vector.load %arg8[%c32_85, %c0_86] : memref<144x512xbf16, #tpu.memory_space<vmem>>, vector<16x512xbf16>
    tpu.vector_store %arg8[%c32_85, %c0_86], %232 {strides = array<i32>} : memref<144x512xbf16, #tpu.memory_space<vmem>>, vector<16x512xbf16>,
    %234 = tpu.bitcast %210 : vector<16x512xbf16> -> vector<8x512xi32>
    %c129_i32_87 = arith.constant 129 : i32
    %235 = tpu.dynamic_rotate %234 by %c129_i32_87 dim 1 : vector<8x512xi32>, i32 -> vector<8x512xi32>
    %236 = tpu.bitcast %235 : vector<8x512xi32> -> vector<16x512xbf16>
    %237 = vector.extract_strided_slice %212 {offsets = [3, 0], sizes = [1, 512], strides = [1, 1]} : vector<9x512xbf16> to vector<1x512xbf16>
    %238 = vector.broadcast %237 : vector<1x512xbf16> to vector<16x512xbf16>
    %239 = arith.mulf %236, %238 : vector<16x512xbf16>
    %c48_88 = arith.constant 48 : index
    %c0_89 = arith.constant 0 : index
    %240 = vector.load %arg8[%c48_88, %c0_89] : memref<144x512xbf16, #tpu.memory_space<vmem>>, vector<16x512xbf16>
    tpu.vector_store %arg8[%c48_88, %c0_89], %239 {strides = array<i32>} : memref<144x512xbf16, #tpu.memory_space<vmem>>, vector<16x512xbf16>,
    %241 = tpu.bitcast %210 : vector<16x512xbf16> -> vector<8x512xi32>
    %c128_i32_90 = arith.constant 128 : i32
    %242 = tpu.dynamic_rotate %241 by %c128_i32_90 dim 1 : vector<8x512xi32>, i32 -> vector<8x512xi32>
    %243 = tpu.bitcast %242 : vector<8x512xi32> -> vector<16x512xbf16>
    %244 = vector.extract_strided_slice %212 {offsets = [4, 0], sizes = [1, 512], strides = [1, 1]} : vector<9x512xbf16> to vector<1x512xbf16>
    %245 = vector.broadcast %244 : vector<1x512xbf16> to vector<16x512xbf16>
    %246 = arith.mulf %243, %245 : vector<16x512xbf16>
    %c64_91 = arith.constant 64 : index
    %c0_92 = arith.constant 0 : index
    %247 = vector.load %arg8[%c64_91, %c0_92] : memref<144x512xbf16, #tpu.memory_space<vmem>>, vector<16x512xbf16>
    tpu.vector_store %arg8[%c64_91, %c0_92], %246 {strides = array<i32>} : memref<144x512xbf16, #tpu.memory_space<vmem>>, vector<16x512xbf16>,
    %248 = tpu.bitcast %210 : vector<16x512xbf16> -> vector<8x512xi32>
    %c127_i32_93 = arith.constant 127 : i32
    %249 = tpu.dynamic_rotate %248 by %c127_i32_93 dim 1 : vector<8x512xi32>, i32 -> vector<8x512xi32>
    %250 = tpu.bitcast %249 : vector<8x512xi32> -> vector<16x512xbf16>
    %251 = vector.extract_strided_slice %212 {offsets = [5, 0], sizes = [1, 512], strides = [1, 1]} : vector<9x512xbf16> to vector<1x512xbf16>
    %252 = vector.broadcast %251 : vector<1x512xbf16> to vector<16x512xbf16>
    %253 = arith.mulf %250, %252 : vector<16x512xbf16>
    %c80_94 = arith.constant 80 : index
    %c0_95 = arith.constant 0 : index
    %254 = vector.load %arg8[%c80_94, %c0_95] : memref<144x512xbf16, #tpu.memory_space<vmem>>, vector<16x512xbf16>
    tpu.vector_store %arg8[%c80_94, %c0_95], %253 {strides = array<i32>} : memref<144x512xbf16, #tpu.memory_space<vmem>>, vector<16x512xbf16>,
    %255 = tpu.bitcast %210 : vector<16x512xbf16> -> vector<8x512xi32>
    %c113_i32_96 = arith.constant 113 : i32
    %256 = tpu.dynamic_rotate %255 by %c113_i32_96 dim 1 : vector<8x512xi32>, i32 -> vector<8x512xi32>
    %257 = tpu.bitcast %256 : vector<8x512xi32> -> vector<16x512xbf16>
    %258 = vector.extract_strided_slice %212 {offsets = [6, 0], sizes = [1, 512], strides = [1, 1]} : vector<9x512xbf16> to vector<1x512xbf16>
    %259 = vector.broadcast %258 : vector<1x512xbf16> to vector<16x512xbf16>
    %260 = arith.mulf %257, %259 : vector<16x512xbf16>
    %c96_97 = arith.constant 96 : index
    %c0_98 = arith.constant 0 : index
    %261 = vector.load %arg8[%c96_97, %c0_98] : memref<144x512xbf16, #tpu.memory_space<vmem>>, vector<16x512xbf16>
    tpu.vector_store %arg8[%c96_97, %c0_98], %260 {strides = array<i32>} : memref<144x512xbf16, #tpu.memory_space<vmem>>, vector<16x512xbf16>,
    %262 = tpu.bitcast %210 : vector<16x512xbf16> -> vector<8x512xi32>
    %c112_i32_99 = arith.constant 112 : i32
    %263 = tpu.dynamic_rotate %262 by %c112_i32_99 dim 1 : vector<8x512xi32>, i32 -> vector<8x512xi32>
    %264 = tpu.bitcast %263 : vector<8x512xi32> -> vector<16x512xbf16>
    %265 = vector.extract_strided_slice %212 {offsets = [7, 0], sizes = [1, 512], strides = [1, 1]} : vector<9x512xbf16> to vector<1x512xbf16>
    %266 = vector.broadcast %265 : vector<1x512xbf16> to vector<16x512xbf16>
    %267 = arith.mulf %264, %266 : vector<16x512xbf16>
    %c112_100 = arith.constant 112 : index
    %c0_101 = arith.constant 0 : index
    %268 = vector.load %arg8[%c112_100, %c0_101] : memref<144x512xbf16, #tpu.memory_space<vmem>>, vector<16x512xbf16>
    tpu.vector_store %arg8[%c112_100, %c0_101], %267 {strides = array<i32>} : memref<144x512xbf16, #tpu.memory_space<vmem>>, vector<16x512xbf16>,
    %269 = tpu.bitcast %210 : vector<16x512xbf16> -> vector<8x512xi32>
    %c111_i32_102 = arith.constant 111 : i32
    %270 = tpu.dynamic_rotate %269 by %c111_i32_102 dim 1 : vector<8x512xi32>, i32 -> vector<8x512xi32>
    %271 = tpu.bitcast %270 : vector<8x512xi32> -> vector<16x512xbf16>
    %272 = vector.extract_strided_slice %212 {offsets = [8, 0], sizes = [1, 512], strides = [1, 1]} : vector<9x512xbf16> to vector<1x512xbf16>
    %273 = vector.broadcast %272 : vector<1x512xbf16> to vector<16x512xbf16>
    %274 = arith.mulf %271, %273 : vector<16x512xbf16>
    %c128_103 = arith.constant 128 : index
    %c0_104 = arith.constant 0 : index
    %275 = vector.load %arg8[%c128_103, %c0_104] : memref<144x512xbf16, #tpu.memory_space<vmem>>, vector<16x512xbf16>
    tpu.vector_store %arg8[%c128_103, %c0_104], %274 {strides = array<i32>} : memref<144x512xbf16, #tpu.memory_space<vmem>>, vector<16x512xbf16>,
    %c0_105 = arith.constant 0 : index
    %c0_106 = arith.constant 0 : index
    %c0_107 = arith.constant 0 : index
    %276 = vector.load %arg4[%c0_105, %c0_106, %c0_107] : memref<3x16x144xbf16, #tpu.memory_space<vmem>>, vector<1x16x144xbf16>
    %277 = vector.shape_cast %276 : vector<1x16x144xbf16> to vector<16x144xbf16>
    %c0_108 = arith.constant 0 : index
    %c0_109 = arith.constant 0 : index
    %278 = vector.load %arg8[%c0_108, %c0_109] : memref<144x512xbf16, #tpu.memory_space<vmem>>, vector<144x512xbf16>
    %cst_110 = arith.constant dense<0.000000e+00> : vector<16x512xf32>
    %279 = tpu.matmul %277, %278, %cst_110 {dimension_numbers = #tpu.dot_dimension_numbers<[1], [0], [0], [1], [0, 0, 1, 1], [], []>} : vector<16x144xbf16>, vector<144x512xbf16>, vector<16x512xf32> -> vector<16x512xf32>
    %c1_111 = arith.constant 1 : index
    %c0_112 = arith.constant 0 : index
    %c0_113 = arith.constant 0 : index
    %280 = vector.load %arg2[%c1_111, %c0_112, %c0_113] : memref<3x9x512xbf16, #tpu.memory_space<vmem>>, vector<1x9x512xbf16>
    %281 = vector.shape_cast %280 : vector<1x9x512xbf16> to vector<9x512xbf16>
    %282 = tpu.bitcast %210 : vector<16x512xbf16> -> vector<8x512xi32>
    %c17_i32_114 = arith.constant 17 : i32
    %283 = tpu.dynamic_rotate %282 by %c17_i32_114 dim 1 : vector<8x512xi32>, i32 -> vector<8x512xi32>
    %284 = tpu.bitcast %283 : vector<8x512xi32> -> vector<16x512xbf16>
    %285 = vector.extract_strided_slice %281 {offsets = [0, 0], sizes = [1, 512], strides = [1, 1]} : vector<9x512xbf16> to vector<1x512xbf16>
    %286 = vector.broadcast %285 : vector<1x512xbf16> to vector<16x512xbf16>
    %287 = arith.mulf %284, %286 : vector<16x512xbf16>
    %c0_115 = arith.constant 0 : index
    %c0_116 = arith.constant 0 : index
    %288 = vector.load %arg8[%c0_115, %c0_116] : memref<144x512xbf16, #tpu.memory_space<vmem>>, vector<16x512xbf16>
    tpu.vector_store %arg8[%c0_115, %c0_116], %287 {strides = array<i32>} : memref<144x512xbf16, #tpu.memory_space<vmem>>, vector<16x512xbf16>,
    %289 = tpu.bitcast %210 : vector<16x512xbf16> -> vector<8x512xi32>
    %c16_i32_117 = arith.constant 16 : i32
    %290 = tpu.dynamic_rotate %289 by %c16_i32_117 dim 1 : vector<8x512xi32>, i32 -> vector<8x512xi32>
    %291 = tpu.bitcast %290 : vector<8x512xi32> -> vector<16x512xbf16>
    %292 = vector.extract_strided_slice %281 {offsets = [1, 0], sizes = [1, 512], strides = [1, 1]} : vector<9x512xbf16> to vector<1x512xbf16>
    %293 = vector.broadcast %292 : vector<1x512xbf16> to vector<16x512xbf16>
    %294 = arith.mulf %291, %293 : vector<16x512xbf16>
    %c16_118 = arith.constant 16 : index
    %c0_119 = arith.constant 0 : index
    %295 = vector.load %arg8[%c16_118, %c0_119] : memref<144x512xbf16, #tpu.memory_space<vmem>>, vector<16x512xbf16>
    tpu.vector_store %arg8[%c16_118, %c0_119], %294 {strides = array<i32>} : memref<144x512xbf16, #tpu.memory_space<vmem>>, vector<16x512xbf16>,
    %296 = tpu.bitcast %210 : vector<16x512xbf16> -> vector<8x512xi32>
    %c15_i32_120 = arith.constant 15 : i32
    %297 = tpu.dynamic_rotate %296 by %c15_i32_120 dim 1 : vector<8x512xi32>, i32 -> vector<8x512xi32>
    %298 = tpu.bitcast %297 : vector<8x512xi32> -> vector<16x512xbf16>
    %299 = vector.extract_strided_slice %281 {offsets = [2, 0], sizes = [1, 512], strides = [1, 1]} : vector<9x512xbf16> to vector<1x512xbf16>
    %300 = vector.broadcast %299 : vector<1x512xbf16> to vector<16x512xbf16>
    %301 = arith.mulf %298, %300 : vector<16x512xbf16>
    %c32_121 = arith.constant 32 : index
    %c0_122 = arith.constant 0 : index
    %302 = vector.load %arg8[%c32_121, %c0_122] : memref<144x512xbf16, #tpu.memory_space<vmem>>, vector<16x512xbf16>
    tpu.vector_store %arg8[%c32_121, %c0_122], %301 {strides = array<i32>} : memref<144x512xbf16, #tpu.memory_space<vmem>>, vector<16x512xbf16>,
    %303 = tpu.bitcast %210 : vector<16x512xbf16> -> vector<8x512xi32>
    %c1_i32_123 = arith.constant 1 : i32
    %304 = tpu.dynamic_rotate %303 by %c1_i32_123 dim 1 : vector<8x512xi32>, i32 -> vector<8x512xi32>
    %305 = tpu.bitcast %304 : vector<8x512xi32> -> vector<16x512xbf16>
    %306 = vector.extract_strided_slice %281 {offsets = [3, 0], sizes = [1, 512], strides = [1, 1]} : vector<9x512xbf16> to vector<1x512xbf16>
    %307 = vector.broadcast %306 : vector<1x512xbf16> to vector<16x512xbf16>
    %308 = arith.mulf %305, %307 : vector<16x512xbf16>
    %c48_124 = arith.constant 48 : index
    %c0_125 = arith.constant 0 : index
    %309 = vector.load %arg8[%c48_124, %c0_125] : memref<144x512xbf16, #tpu.memory_space<vmem>>, vector<16x512xbf16>
    tpu.vector_store %arg8[%c48_124, %c0_125], %308 {strides = array<i32>} : memref<144x512xbf16, #tpu.memory_space<vmem>>, vector<16x512xbf16>,
    %c64_126 = arith.constant 64 : index
    %c0_127 = arith.constant 0 : index
    %310 = vector.load %arg8[%c64_126, %c0_127] : memref<144x512xbf16, #tpu.memory_space<vmem>>, vector<16x512xbf16>
    tpu.vector_store %arg8[%c64_126, %c0_127], %210 {strides = array<i32>} : memref<144x512xbf16, #tpu.memory_space<vmem>>, vector<16x512xbf16>,
    %311 = tpu.bitcast %210 : vector<16x512xbf16> -> vector<8x512xi32>
    %c511_i32_128 = arith.constant 511 : i32
    %312 = tpu.dynamic_rotate %311 by %c511_i32_128 dim 1 : vector<8x512xi32>, i32 -> vector<8x512xi32>
    %313 = tpu.bitcast %312 : vector<8x512xi32> -> vector<16x512xbf16>
    %314 = vector.extract_strided_slice %281 {offsets = [5, 0], sizes = [1, 512], strides = [1, 1]} : vector<9x512xbf16> to vector<1x512xbf16>
    %315 = vector.broadcast %314 : vector<1x512xbf16> to vector<16x512xbf16>
    %316 = arith.mulf %313, %315 : vector<16x512xbf16>
    %c80_129 = arith.constant 80 : index
    %c0_130 = arith.constant 0 : index
    %317 = vector.load %arg8[%c80_129, %c0_130] : memref<144x512xbf16, #tpu.memory_space<vmem>>, vector<16x512xbf16>
    tpu.vector_store %arg8[%c80_129, %c0_130], %316 {strides = array<i32>} : memref<144x512xbf16, #tpu.memory_space<vmem>>, vector<16x512xbf16>,
    %318 = tpu.bitcast %210 : vector<16x512xbf16> -> vector<8x512xi32>
    %c497_i32_131 = arith.constant 497 : i32
    %319 = tpu.dynamic_rotate %318 by %c497_i32_131 dim 1 : vector<8x512xi32>, i32 -> vector<8x512xi32>
    %320 = tpu.bitcast %319 : vector<8x512xi32> -> vector<16x512xbf16>
    %321 = vector.extract_strided_slice %281 {offsets = [6, 0], sizes = [1, 512], strides = [1, 1]} : vector<9x512xbf16> to vector<1x512xbf16>
    %322 = vector.broadcast %321 : vector<1x512xbf16> to vector<16x512xbf16>
    %323 = arith.mulf %320, %322 : vector<16x512xbf16>
    %c96_132 = arith.constant 96 : index
    %c0_133 = arith.constant 0 : index
    %324 = vector.load %arg8[%c96_132, %c0_133] : memref<144x512xbf16, #tpu.memory_space<vmem>>, vector<16x512xbf16>
    tpu.vector_store %arg8[%c96_132, %c0_133], %323 {strides = array<i32>} : memref<144x512xbf16, #tpu.memory_space<vmem>>, vector<16x512xbf16>,
    %325 = tpu.bitcast %210 : vector<16x512xbf16> -> vector<8x512xi32>
    %c496_i32_134 = arith.constant 496 : i32
    %326 = tpu.dynamic_rotate %325 by %c496_i32_134 dim 1 : vector<8x512xi32>, i32 -> vector<8x512xi32>
    %327 = tpu.bitcast %326 : vector<8x512xi32> -> vector<16x512xbf16>
    %328 = vector.extract_strided_slice %281 {offsets = [7, 0], sizes = [1, 512], strides = [1, 1]} : vector<9x512xbf16> to vector<1x512xbf16>
    %329 = vector.broadcast %328 : vector<1x512xbf16> to vector<16x512xbf16>
    %330 = arith.mulf %327, %329 : vector<16x512xbf16>
    %c112_135 = arith.constant 112 : index
    %c0_136 = arith.constant 0 : index
    %331 = vector.load %arg8[%c112_135, %c0_136] : memref<144x512xbf16, #tpu.memory_space<vmem>>, vector<16x512xbf16>
    tpu.vector_store %arg8[%c112_135, %c0_136], %330 {strides = array<i32>} : memref<144x512xbf16, #tpu.memory_space<vmem>>, vector<16x512xbf16>,
    %332 = tpu.bitcast %210 : vector<16x512xbf16> -> vector<8x512xi32>
    %c495_i32_137 = arith.constant 495 : i32
    %333 = tpu.dynamic_rotate %332 by %c495_i32_137 dim 1 : vector<8x512xi32>, i32 -> vector<8x512xi32>
    %334 = tpu.bitcast %333 : vector<8x512xi32> -> vector<16x512xbf16>
    %335 = vector.extract_strided_slice %281 {offsets = [8, 0], sizes = [1, 512], strides = [1, 1]} : vector<9x512xbf16> to vector<1x512xbf16>
    %336 = vector.broadcast %335 : vector<1x512xbf16> to vector<16x512xbf16>
    %337 = arith.mulf %334, %336 : vector<16x512xbf16>
    %c128_138 = arith.constant 128 : index
    %c0_139 = arith.constant 0 : index
    %338 = vector.load %arg8[%c128_138, %c0_139] : memref<144x512xbf16, #tpu.memory_space<vmem>>, vector<16x512xbf16>
    tpu.vector_store %arg8[%c128_138, %c0_139], %337 {strides = array<i32>} : memref<144x512xbf16, #tpu.memory_space<vmem>>, vector<16x512xbf16>,
    %c1_140 = arith.constant 1 : index
    %c0_141 = arith.constant 0 : index
    %c0_142 = arith.constant 0 : index
    %339 = vector.load %arg4[%c1_140, %c0_141, %c0_142] : memref<3x16x144xbf16, #tpu.memory_space<vmem>>, vector<1x16x144xbf16>
    %340 = vector.shape_cast %339 : vector<1x16x144xbf16> to vector<16x144xbf16>
    %c0_143 = arith.constant 0 : index
    %c0_144 = arith.constant 0 : index
    %341 = vector.load %arg8[%c0_143, %c0_144] : memref<144x512xbf16, #tpu.memory_space<vmem>>, vector<144x512xbf16>
    %cst_145 = arith.constant dense<0.000000e+00> : vector<16x512xf32>
    %342 = tpu.matmul %340, %341, %cst_145 {dimension_numbers = #tpu.dot_dimension_numbers<[1], [0], [0], [1], [0, 0, 1, 1], [], []>} : vector<16x144xbf16>, vector<144x512xbf16>, vector<16x512xf32> -> vector<16x512xf32>
    %343 = arith.addf %279, %342 : vector<16x512xf32>
    %c2_146 = arith.constant 2 : index
    %c0_147 = arith.constant 0 : index
    %c0_148 = arith.constant 0 : index
    %344 = vector.load %arg2[%c2_146, %c0_147, %c0_148] : memref<3x9x512xbf16, #tpu.memory_space<vmem>>, vector<1x9x512xbf16>
    %345 = vector.shape_cast %344 : vector<1x9x512xbf16> to vector<9x512xbf16>
    %346 = tpu.bitcast %210 : vector<16x512xbf16> -> vector<8x512xi32>
    %c401_i32_149 = arith.constant 401 : i32
    %347 = tpu.dynamic_rotate %346 by %c401_i32_149 dim 1 : vector<8x512xi32>, i32 -> vector<8x512xi32>
    %348 = tpu.bitcast %347 : vector<8x512xi32> -> vector<16x512xbf16>
    %349 = vector.extract_strided_slice %345 {offsets = [0, 0], sizes = [1, 512], strides = [1, 1]} : vector<9x512xbf16> to vector<1x512xbf16>
    %350 = vector.broadcast %349 : vector<1x512xbf16> to vector<16x512xbf16>
    %351 = arith.mulf %348, %350 : vector<16x512xbf16>
    %c0_150 = arith.constant 0 : index
    %c0_151 = arith.constant 0 : index
    %352 = vector.load %arg8[%c0_150, %c0_151] : memref<144x512xbf16, #tpu.memory_space<vmem>>, vector<16x512xbf16>
    tpu.vector_store %arg8[%c0_150, %c0_151], %351 {strides = array<i32>} : memref<144x512xbf16, #tpu.memory_space<vmem>>, vector<16x512xbf16>,
    %353 = tpu.bitcast %210 : vector<16x512xbf16> -> vector<8x512xi32>
    %c400_i32_152 = arith.constant 400 : i32
    %354 = tpu.dynamic_rotate %353 by %c400_i32_152 dim 1 : vector<8x512xi32>, i32 -> vector<8x512xi32>
    %355 = tpu.bitcast %354 : vector<8x512xi32> -> vector<16x512xbf16>
    %356 = vector.extract_strided_slice %345 {offsets = [1, 0], sizes = [1, 512], strides = [1, 1]} : vector<9x512xbf16> to vector<1x512xbf16>
    %357 = vector.broadcast %356 : vector<1x512xbf16> to vector<16x512xbf16>
    %358 = arith.mulf %355, %357 : vector<16x512xbf16>
    %c16_153 = arith.constant 16 : index
    %c0_154 = arith.constant 0 : index
    %359 = vector.load %arg8[%c16_153, %c0_154] : memref<144x512xbf16, #tpu.memory_space<vmem>>, vector<16x512xbf16>
    tpu.vector_store %arg8[%c16_153, %c0_154], %358 {strides = array<i32>} : memref<144x512xbf16, #tpu.memory_space<vmem>>, vector<16x512xbf16>,
    %360 = tpu.bitcast %210 : vector<16x512xbf16> -> vector<8x512xi32>
    %c399_i32_155 = arith.constant 399 : i32
    %361 = tpu.dynamic_rotate %360 by %c399_i32_155 dim 1 : vector<8x512xi32>, i32 -> vector<8x512xi32>
    %362 = tpu.bitcast %361 : vector<8x512xi32> -> vector<16x512xbf16>
    %363 = vector.extract_strided_slice %345 {offsets = [2, 0], sizes = [1, 512], strides = [1, 1]} : vector<9x512xbf16> to vector<1x512xbf16>
    %364 = vector.broadcast %363 : vector<1x512xbf16> to vector<16x512xbf16>
    %365 = arith.mulf %362, %364 : vector<16x512xbf16>
    %c32_156 = arith.constant 32 : index
    %c0_157 = arith.constant 0 : index
    %366 = vector.load %arg8[%c32_156, %c0_157] : memref<144x512xbf16, #tpu.memory_space<vmem>>, vector<16x512xbf16>
    tpu.vector_store %arg8[%c32_156, %c0_157], %365 {strides = array<i32>} : memref<144x512xbf16, #tpu.memory_space<vmem>>, vector<16x512xbf16>,
    %367 = tpu.bitcast %210 : vector<16x512xbf16> -> vector<8x512xi32>
    %c385_i32_158 = arith.constant 385 : i32
    %368 = tpu.dynamic_rotate %367 by %c385_i32_158 dim 1 : vector<8x512xi32>, i32 -> vector<8x512xi32>
    %369 = tpu.bitcast %368 : vector<8x512xi32> -> vector<16x512xbf16>
    %370 = vector.extract_strided_slice %345 {offsets = [3, 0], sizes = [1, 512], strides = [1, 1]} : vector<9x512xbf16> to vector<1x512xbf16>
    %371 = vector.broadcast %370 : vector<1x512xbf16> to vector<16x512xbf16>
    %372 = arith.mulf %369, %371 : vector<16x512xbf16>
    %c48_159 = arith.constant 48 : index
    %c0_160 = arith.constant 0 : index
    %373 = vector.load %arg8[%c48_159, %c0_160] : memref<144x512xbf16, #tpu.memory_space<vmem>>, vector<16x512xbf16>
    tpu.vector_store %arg8[%c48_159, %c0_160], %372 {strides = array<i32>} : memref<144x512xbf16, #tpu.memory_space<vmem>>, vector<16x512xbf16>,
    %374 = tpu.bitcast %210 : vector<16x512xbf16> -> vector<8x512xi32>
    %c384_i32_161 = arith.constant 384 : i32
    %375 = tpu.dynamic_rotate %374 by %c384_i32_161 dim 1 : vector<8x512xi32>, i32 -> vector<8x512xi32>
    %376 = tpu.bitcast %375 : vector<8x512xi32> -> vector<16x512xbf16>
    %377 = vector.extract_strided_slice %345 {offsets = [4, 0], sizes = [1, 512], strides = [1, 1]} : vector<9x512xbf16> to vector<1x512xbf16>
    %378 = vector.broadcast %377 : vector<1x512xbf16> to vector<16x512xbf16>
    %379 = arith.mulf %376, %378 : vector<16x512xbf16>
    %c64_162 = arith.constant 64 : index
    %c0_163 = arith.constant 0 : index
    %380 = vector.load %arg8[%c64_162, %c0_163] : memref<144x512xbf16, #tpu.memory_space<vmem>>, vector<16x512xbf16>
    tpu.vector_store %arg8[%c64_162, %c0_163], %379 {strides = array<i32>} : memref<144x512xbf16, #tpu.memory_space<vmem>>, vector<16x512xbf16>,
    %381 = tpu.bitcast %210 : vector<16x512xbf16> -> vector<8x512xi32>
    %c383_i32_164 = arith.constant 383 : i32
    %382 = tpu.dynamic_rotate %381 by %c383_i32_164 dim 1 : vector<8x512xi32>, i32 -> vector<8x512xi32>
    %383 = tpu.bitcast %382 : vector<8x512xi32> -> vector<16x512xbf16>
    %384 = vector.extract_strided_slice %345 {offsets = [5, 0], sizes = [1, 512], strides = [1, 1]} : vector<9x512xbf16> to vector<1x512xbf16>
    %385 = vector.broadcast %384 : vector<1x512xbf16> to vector<16x512xbf16>
    %386 = arith.mulf %383, %385 : vector<16x512xbf16>
    %c80_165 = arith.constant 80 : index
    %c0_166 = arith.constant 0 : index
    %387 = vector.load %arg8[%c80_165, %c0_166] : memref<144x512xbf16, #tpu.memory_space<vmem>>, vector<16x512xbf16>
    tpu.vector_store %arg8[%c80_165, %c0_166], %386 {strides = array<i32>} : memref<144x512xbf16, #tpu.memory_space<vmem>>, vector<16x512xbf16>,
    %388 = tpu.bitcast %210 : vector<16x512xbf16> -> vector<8x512xi32>
    %c369_i32_167 = arith.constant 369 : i32
    %389 = tpu.dynamic_rotate %388 by %c369_i32_167 dim 1 : vector<8x512xi32>, i32 -> vector<8x512xi32>
    %390 = tpu.bitcast %389 : vector<8x512xi32> -> vector<16x512xbf16>
    %391 = vector.extract_strided_slice %345 {offsets = [6, 0], sizes = [1, 512], strides = [1, 1]} : vector<9x512xbf16> to vector<1x512xbf16>
    %392 = vector.broadcast %391 : vector<1x512xbf16> to vector<16x512xbf16>
    %393 = arith.mulf %390, %392 : vector<16x512xbf16>
    %c96_168 = arith.constant 96 : index
    %c0_169 = arith.constant 0 : index
    %394 = vector.load %arg8[%c96_168, %c0_169] : memref<144x512xbf16, #tpu.memory_space<vmem>>, vector<16x512xbf16>
    tpu.vector_store %arg8[%c96_168, %c0_169], %393 {strides = array<i32>} : memref<144x512xbf16, #tpu.memory_space<vmem>>, vector<16x512xbf16>,
    %395 = tpu.bitcast %210 : vector<16x512xbf16> -> vector<8x512xi32>
    %c368_i32_170 = arith.constant 368 : i32
    %396 = tpu.dynamic_rotate %395 by %c368_i32_170 dim 1 : vector<8x512xi32>, i32 -> vector<8x512xi32>
    %397 = tpu.bitcast %396 : vector<8x512xi32> -> vector<16x512xbf16>
    %398 = vector.extract_strided_slice %345 {offsets = [7, 0], sizes = [1, 512], strides = [1, 1]} : vector<9x512xbf16> to vector<1x512xbf16>
    %399 = vector.broadcast %398 : vector<1x512xbf16> to vector<16x512xbf16>
    %400 = arith.mulf %397, %399 : vector<16x512xbf16>
    %c112_171 = arith.constant 112 : index
    %c0_172 = arith.constant 0 : index
    %401 = vector.load %arg8[%c112_171, %c0_172] : memref<144x512xbf16, #tpu.memory_space<vmem>>, vector<16x512xbf16>
    tpu.vector_store %arg8[%c112_171, %c0_172], %400 {strides = array<i32>} : memref<144x512xbf16, #tpu.memory_space<vmem>>, vector<16x512xbf16>,
    %402 = tpu.bitcast %210 : vector<16x512xbf16> -> vector<8x512xi32>
    %c367_i32_173 = arith.constant 367 : i32
    %403 = tpu.dynamic_rotate %402 by %c367_i32_173 dim 1 : vector<8x512xi32>, i32 -> vector<8x512xi32>
    %404 = tpu.bitcast %403 : vector<8x512xi32> -> vector<16x512xbf16>
    %405 = vector.extract_strided_slice %345 {offsets = [8, 0], sizes = [1, 512], strides = [1, 1]} : vector<9x512xbf16> to vector<1x512xbf16>
    %406 = vector.broadcast %405 : vector<1x512xbf16> to vector<16x512xbf16>
    %407 = arith.mulf %404, %406 : vector<16x512xbf16>
    %c128_174 = arith.constant 128 : index
    %c0_175 = arith.constant 0 : index
    %408 = vector.load %arg8[%c128_174, %c0_175] : memref<144x512xbf16, #tpu.memory_space<vmem>>, vector<16x512xbf16>
    tpu.vector_store %arg8[%c128_174, %c0_175], %407 {strides = array<i32>} : memref<144x512xbf16, #tpu.memory_space<vmem>>, vector<16x512xbf16>,
    %c2_176 = arith.constant 2 : index
    %c0_177 = arith.constant 0 : index
    %c0_178 = arith.constant 0 : index
    %409 = vector.load %arg4[%c2_176, %c0_177, %c0_178] : memref<3x16x144xbf16, #tpu.memory_space<vmem>>, vector<1x16x144xbf16>
    %410 = vector.shape_cast %409 : vector<1x16x144xbf16> to vector<16x144xbf16>
    %c0_179 = arith.constant 0 : index
    %c0_180 = arith.constant 0 : index
    %411 = vector.load %arg8[%c0_179, %c0_180] : memref<144x512xbf16, #tpu.memory_space<vmem>>, vector<144x512xbf16>
    %cst_181 = arith.constant dense<0.000000e+00> : vector<16x512xf32>
    %412 = tpu.matmul %410, %411, %cst_181 {dimension_numbers = #tpu.dot_dimension_numbers<[1], [0], [0], [1], [0, 0, 1, 1], [], []>} : vector<16x144xbf16>, vector<144x512xbf16>, vector<16x512xf32> -> vector<16x512xf32>
    %413 = arith.addf %343, %412 : vector<16x512xf32>
    %c0_182 = arith.constant 0 : index
    %c0_183 = arith.constant 0 : index
    %414 = vector.load %arg6[%c0_182, %c0_183] : memref<16x1xf32, #tpu.memory_space<vmem>>, vector<16x1xf32>
    %415 = vector.broadcast %414 : vector<16x1xf32> to vector<16x512xf32>
    %416 = arith.addf %413, %415 : vector<16x512xf32>
    %c0_184 = arith.constant 0 : index
    %c0_185 = arith.constant 0 : index
    %c0_186 = arith.constant 0 : index
    %417 = vector.load %arg1[%c0_184, %c0_185, %c0_186] : memref<1x16x512xbf16, #tpu.memory_space<vmem>>, vector<1x16x512xbf16>
    %418 = vector.shape_cast %417 : vector<1x16x512xbf16> to vector<16x512xbf16>
    %419 = arith.extf %418 : vector<16x512xbf16> to vector<16x512xf32>
    %420 = arith.addf %416, %419 : vector<16x512xf32>
    %cst_187 = arith.constant 0.000000e+00 : f32
    %421 = vector.broadcast %cst_187 : f32 to vector<16x512xf32>
    %422 = arith.maximumf %420, %421 : vector<16x512xf32>
    %423 = arith.truncf %422 : vector<16x512xf32> to vector<16x512xbf16>
    %c0_188 = arith.constant 0 : index
    %c0_189 = arith.constant 0 : index
    %c0_190 = arith.constant 0 : index
    %424 = vector.load %arg7[%c0_188, %c0_189, %c0_190] : memref<1x16x512xbf16, #tpu.memory_space<vmem>>, vector<1x16x512xbf16>
    %425 = vector.shape_cast %424 : vector<1x16x512xbf16> to vector<16x512xbf16>
    %426 = vector.shape_cast %423 : vector<16x512xbf16> to vector<1x16x512xbf16>
    tpu.vector_store %arg7[%c0_188, %c0_189, %c0_190], %426 {strides = array<i32>} : memref<1x16x512xbf16, #tpu.memory_space<vmem>>, vector<1x16x512xbf16>,
    return
  }
  func.func @transform_0(%arg0: i32) -> (i32, i32, i32) {
    %c0_i32 = arith.constant 0 : i32
    %c0_i32_0 = arith.constant 0 : i32
    %c0_i32_1 = arith.constant 0 : i32
    return %arg0, %c0_i32, %c0_i32_0 : i32, i32, i32
  }
  func.func @transform_1(%arg0: i32) -> (i32, i32, i32) {
    %c0_i32 = arith.constant 0 : i32
    %c0_i32_0 = arith.constant 0 : i32
    %c0_i32_1 = arith.constant 0 : i32
    %c0_i32_2 = arith.constant 0 : i32
    return %c0_i32, %c0_i32_0, %c0_i32_1 : i32, i32, i32
  }
  func.func @transform_2(%arg0: i32) -> (i32, i32, i32) {
    %c0_i32 = arith.constant 0 : i32
    %c0_i32_0 = arith.constant 0 : i32
    %c0_i32_1 = arith.constant 0 : i32
    %c0_i32_2 = arith.constant 0 : i32
    return %c0_i32, %c0_i32_0, %c0_i32_1 : i32, i32, i32
  }
  func.func @transform_3(%arg0: i32) -> (i32, i32, i32) {
    %c0_i32 = arith.constant 0 : i32
    %c0_i32_0 = arith.constant 0 : i32
    %c0_i32_1 = arith.constant 0 : i32
    %c0_i32_2 = arith.constant 0 : i32
    return %c0_i32, %c0_i32_0, %c0_i32_1 : i32, i32, i32
  }
  func.func @transform_4(%arg0: i32) -> (i32, i32) {
    %c0_i32 = arith.constant 0 : i32
    %c0_i32_0 = arith.constant 0 : i32
    %c0_i32_1 = arith.constant 0 : i32
    return %c0_i32, %c0_i32_0 : i32, i32
  }
  func.func @transform_5(%arg0: i32) -> (i32, i32) {
    %c0_i32 = arith.constant 0 : i32
    %c0_i32_0 = arith.constant 0 : i32
    %c0_i32_1 = arith.constant 0 : i32
    return %c0_i32, %c0_i32_0 : i32, i32
  }
  func.func @transform_6(%arg0: i32) -> (i32, i32, i32) {
    %c0_i32 = arith.constant 0 : i32
    %c0_i32_0 = arith.constant 0 : i32
    %c0_i32_1 = arith.constant 0 : i32
    return %arg0, %c0_i32, %c0_i32_0 : i32, i32, i32
  }
}

</mosaic_0001>

<bundles_post_ra>
// kernel: tpu_custom_call.1
= control target key start
LH: loop header
LB: loop body
LE: loop exit
PB: predicated region body
PF: predicated region fallthrough
CT: control target
= control target key end

     0   :  { %11 = vsyncpa [#allocation4], 0  ;;  %s4963_s0 = inlined_call_operand.vmem [shape: bf16[2,16,512], index: 0, kind: input, shape index: {}]   ;;  %s4964_s1 = inlined_call_operand.vmem [shape: bf16[3,9,512], index: 1, kind: input, shape index: {}]   ;;  %s4965_s2 = inlined_call_operand.vmem [shape: bf16[3,16,144], index: 2, kind: input, shape index: {}]   ;;  %s4966_s3 = inlined_call_operand.vmem [shape: bf16[3,16,144], index: 3, kind: input, shape index: {}]   ;;  %s4967_s4 = inlined_call_operand.vmem [shape: f32[16,1], index: 4, kind: input, shape index: {}]   ;;  %s4968_s5 = inlined_call_operand.vmem [shape: f32[16,1], index: 5, kind: input, shape index: {}]   ;;  %s4969_s6 = inlined_call_operand.hbm [shape: bf16[2,16,512], index: 6, kind: output, shape index: {}]  }
   0x1   :  { %13 = vsyncpa [#allocation4 + $0x1], 0  ;;  %s3575_s21 = smov 0   ;;  %s3577_s22 = smov 0  }
   0x2   :  { %s3579_s23 = smov 0   ;;  %s3581_s24 = smov 0  }
   0x3 LB: > { %s3596_s25 = sadd.s32 4294967295, %s3527_s24   ;;  %s3188_s26 = sadd.s32 4294967294, %s3527_s24   ;;  %s3527_s24 = sphi %s3581_s24, %s5013_s24   ;;  %s3523_s23 = sphi %s3579_s23, %s5012_s23   ;;  %s3519_s22 = sphi %s3577_s22, %s5011_s22   ;;  %s3515_s21 = sphi %s3575_s21, %s5010_s21  }
   0x4   : > { %s3600_s27 = sadd.s32 1, %s3527_s24   ;;  %s157_s28 = sadd.s32 1, %s3523_s23 }
   0x5   : > { %s154_s29 = ssub.s32 %s3527_s24, %s3600_s27  ;;  %p167_p0 = scmp.ne.s32.totalorder %s3523_s23, %s3519_s22 }
   0x6   : > { %p155_p1 = scmp.eq.s32.totalorder %s154_s29, 0  ;;  %p168_p2 = scmp.eq.s32.totalorder %s3596_s25, 1 }
   0x7   : > { %p173_p3 = scmp.ne.s32.totalorder %s3519_s22, %s3515_s21  ;;  %p174_p4 = scmp.eq.s32.totalorder %s3188_s26, 1 }
   0x8   : > { %s3611_s30 = scalar_select %p155_p1, %s3523_s23, %s157_s28  }
   0x9   : > { %p3613_p5 = por %p168_p2, %p167_p0  ;;  %p3617_p6 = por %p174_p4, %p173_p3 }
   0xa   : > { %p3191_p7 = scmp.ge.s32.totalorder %s3527_s24, 1  ;;  %p215_p8 = scmp.lt.s32.totalorder %s3527_s24, 3 }
   0xc   : > { %p216_p9 = pnand %p3191_p7, %p215_p8 }
   0xe   : > { %219 = sbr.rel (%p216_p9) target bundleno = 995 (0x3e3), region = 44 }
  0x15   : > { %p245_p10 = scmp.lt.s32.totalorder %s3596_s25, 1  ;;  %s3529_s14 = smov 17   ;;  %v3419_v4 = vld [vmem:[%s4965_s2 + $0x14] ss:$8 sps:$4 sm:$0xff]   ;;  %vm1036_vm0 = vcmask 130048   ;;  %v291_v5 = vlaneseq  ;;  %v3208_v6 = vld [vmem:[%s4964_s1 + $0x28] sm:$0xff] }
  0x16   : > { %s3530_s15 = smov 16   ;;  %s3531_s16 = smov 15   ;;  %3223 = vmatprep.mubr.msk.bf16.mxu0 %vm1036_vm0, %v3419_v4  ;;  %3224 = vmatprep.mubr.msk.bf16.mxu1 %vm1036_vm0, %v3419_v4  ;;  %v3207_v7 = vld [vmem:[%s4964_s1 + $0x20] sm:$0xff]  ;;  %v3214_v9 = vcombine.high %v3208_v6, %v3208_v6  ;;  %v3213_v12 = vcombine.low %v3208_v6, %v3208_v6  ;;  %v3537_v59 = vmov 0   ;;  %v1647_v60 = vld [vmem:[%s4967_s4 + $0x8] sm:$0xff] }
  0x17   : > { %s246_s9 = scalar_select %p245_p10, %s3596_s25, 1  ;;  %v3717_v8 = vshrl.u32 %v291_v5, 7  ;;  %v3212_v10 = vcombine.high %v3207_v7, %v3207_v7  ;;  %v3211_v11 = vcombine.low %v3207_v7, %v3207_v7  ;;  %v3719_v13 = vand.u32 127, %v291_v5  ;;  %v1646_v55 = vld [vmem:[%s4967_s4] sm:$0xff]  ;;  %3391 = vset.pattern.permute.xlu0 %v3537_v59  ;;  %3392 = vset.pattern.permute.xlu1 %v3537_v59 }
  0x18   : > { %s3532_s17 = smov 1   ;;  %s3533_s18 = smov 127   ;;  %v3724_v15 = vpack.i.b16 %v3214_v9, %v3214_v9  ;;  %v3730_v20 = vpack.i.b16 %v3213_v12, %v3213_v12  ;;  %v803_v22 = vshrl.u32 %v3214_v9, 16  ;;  %v796_v27 = vshrl.u32 %v3213_v12, 16 }
  0x19   : > { %s3304_s10 = sshll.u32 %s246_s9, 5  ;;  %s3534_s19 = smov 113   ;;  %4988 = vst [vmem:[#allocation8_spill] sm:$0xff] %v3719_v13  ;;  %v3722_v14 = vsub.s32 0, %v3717_v8  ;;  %v3726_v16 = vpack.i.b16 %v3212_v10, %v3212_v10  ;;  %v789_v17 = vshrl.u32 %v3212_v10, 16  ;;  %v3728_v19 = vpack.i.b16 %v3211_v11, %v3211_v11 }
  0x1a   : > { %s3628_s13 = scalar_lea.vmem %s4963_s0, %s3304_s10  ;;  %s3535_s20 = smov 112   ;;  %vm293_vm1 = vcmp.lt.s32.totalorder %v3719_v13, 17  ;;  %v782_v23 = vshrl.u32 %v3211_v11, 16  ;;  %v3751_v34 = vpack.i.b16 %v803_v22, %v803_v22  ;;  %vm356_vm2 = vcmp.lt.s32.totalorder %v3719_v13, 16 }
  0x1b   : > { %v3631_v0 = vld [vmem:[%s3628_s13 + $0x8] ss:$16 sps:$4 sm:$0xff]   ;;  %v3634_v1 = vld [vmem:[%s3628_s13] ss:$16 sps:$4 sm:$0xff]   ;;  %v3639_v2 = vld [vmem:[%s3628_s13 + $0xc] ss:$16 sps:$4 sm:$0xff]   ;;  %v773_v24 = vrot.slane %v3724_v15, %v3722_v14  ;;  %v759_v25 = vrot.slane %v3726_v16, %v3722_v14  ;;  %v3737_v26 = vpack.i.b16 %v789_v17, %v789_v17  ;;  %v752_v29 = vrot.slane %v3728_v19, %v3722_v14 }
  0x1c   : > { %287 = vrot.lane.b32.xlu1 %v3631_v0, %s3529_s14  ;;  %4986 = vst [vmem:[#allocation6_spill] sm:$0xff] %v3639_v2  ;;  %v3642_v3 = vld [vmem:[%s3628_s13 + $0x4] ss:$16 sps:$4 sm:$0xff]   ;;  %283 = vrot.lane.b32.xlu0 %v3634_v1, %s3529_s14  ;;  %s3536_s29 = smov 111   ;;  %v766_v30 = vrot.slane %v3730_v20, %v3722_v14  ;;  %v3762_v37 = vpack.i.b16 %v782_v23, %v782_v23  ;;  %v3779_v48 = vsub.s32 1, %v3717_v8  ;;  %vm409_vm3 = vcmp.lt.s32.totalorder %v3719_v13, 15 }
  0x1d   : > { %4987 = vst [vmem:[#allocation7_spill] sm:$0xff] %v3642_v3  ;;  %v3766_v40 = vpack.i.b16 %v796_v27, %v796_v27  ;;  %v795_v41 = vrot.slane %v3737_v26, %v3722_v14  ;;  %v809_v50 = vrot.slane %v3751_v34, %v3722_v14  ;;  %vm450_vm4 = vcmp.lt.s32.totalorder %v3719_v13, 1  ;;  %s3538_s28 = smov [#allocation3]  }
  0x1e   : > { %v788_v47 = vrot.slane %v3762_v37, %v3722_v14  ;;  %v825_v63 = vrot.slane %v3726_v16, %v3779_v48  ;;  %v821_v7 = vrot.slane %v3728_v19, %v3779_v48  ;;  %v833_v10 = vrot.slane %v3724_v15, %v3779_v48 }
  0x1f   : > { %v802_v51 = vrot.slane %v3766_v40, %v3722_v14  ;;  %v829_v11 = vrot.slane %v3730_v20, %v3779_v48  ;;  %v849_v27 = vrot.slane %v3737_v26, %v3779_v48  ;;  %vm515_vm5 = vcmp.lt.s32.totalorder %v3719_v13, 127 }
  0x20   : > { %289 = vrot.lane.b32.xlu1 %v3639_v2, %s3529_s14  ;;  %285 = vrot.lane.b32.xlu0 %v3642_v3, %s3529_s14  ;;  %vm556_vm6 = vcmp.lt.s32.totalorder %v3719_v13, 113  ;;  %vm597_vm7 = vcmp.lt.s32.totalorder %v3719_v13, 112  ;;  %vm638_vm8 = vcmp.lt.s32.totalorder %v3719_v13, 111 }
  0x24   : > { %350 = vrot.lane.b32.xlu1 %v3642_v3, %s3530_s15  ;;  %348 = vrot.lane.b32.xlu0 %v3634_v1, %s3530_s15 }
  0x28   : > { %354 = vrot.lane.b32.xlu1 %v3639_v2, %s3530_s15  ;;  %352 = vrot.lane.b32.xlu0 %v3631_v0, %s3530_s15 }
  0x2c   : > { %403 = vrot.lane.b32.xlu1 %v3642_v3, %s3531_s16  ;;  %401 = vrot.lane.b32.xlu0 %v3634_v1, %s3531_s16 }
  0x30   : > { %407 = vrot.lane.b32.xlu1 %v3639_v2, %s3531_s16  ;;  %405 = vrot.lane.b32.xlu0 %v3631_v0, %s3531_s16 }
  0x34   : > { %444 = vrot.lane.b32.xlu1 %v3642_v3, %s3532_s17  ;;  %442 = vrot.lane.b32.xlu0 %v3634_v1, %s3532_s17 }
  0x38   : > { %448 = vrot.lane.b32.xlu1 %v3639_v2, %s3532_s17  ;;  %446 = vrot.lane.b32.xlu0 %v3631_v0, %s3532_s17 }
  0x3c   : > { %509 = vrot.lane.b32.xlu1 %v3642_v3, %s3533_s18  ;;  %507 = vrot.lane.b32.xlu0 %v3634_v1, %s3533_s18 }
  0x40   : > { %513 = vrot.lane.b32.xlu1 %v3639_v2, %s3533_s18  ;;  %511 = vrot.lane.b32.xlu0 %v3631_v0, %s3533_s18 }
  0x44   : > { %550 = vrot.lane.b32.xlu1 %v3642_v3, %s3534_s19  ;;  %548 = vrot.lane.b32.xlu0 %v3634_v1, %s3534_s19 }
  0x48   : > { %554 = vrot.lane.b32.xlu1 %v3639_v2, %s3534_s19  ;;  %552 = vrot.lane.b32.xlu0 %v3631_v0, %s3534_s19 }
  0x4c   : > { %591 = vrot.lane.b32.xlu1 %v3642_v3, %s3535_s20  ;;  %589 = vrot.lane.b32.xlu0 %v3634_v1, %s3535_s20 }
  0x50   : > { %595 = vrot.lane.b32.xlu1 %v3639_v2, %s3535_s20  ;;  %593 = vrot.lane.b32.xlu0 %v3631_v0, %s3535_s20 }
  0x54   : > { %632 = vrot.lane.b32.xlu1 %v3642_v3, %s3536_s29  ;;  %630 = vrot.lane.b32.xlu0 %v3634_v1, %s3536_s29 }
  0x58   : > { %636 = vrot.lane.b32.xlu1 %v3639_v2, %s3536_s29  ;;  %634 = vrot.lane.b32.xlu0 %v3631_v0, %s3536_s29 }
  0x5c   : > { %1650 = vperm.xlu0 %3391, %v1646_v55   ;;  %1655 = vperm.xlu1 %3392, %v1647_v60  }
  0x8e   : > { %v288_v18 = vpop.permute.xlu1 %287  ;;  %v284_v21 = vpop.permute.xlu0 %283 }
  0x92   : > { %v290_v28 = vpop.permute.xlu1 %289  ;;  %v286_v33 = vpop.permute.xlu0 %285 }
  0x93   : > { %v3745_v31 = vsel %vm293_vm1, %v288_v18, %v290_v28  ;;  %v3749_v32 = vsel %vm293_vm1, %v290_v28, %v284_v21  ;;  %v3755_v35 = vsel %vm293_vm1, %v286_v33, %v288_v18  ;;  %v3759_v36 = vsel %vm293_vm1, %v284_v21, %v286_v33 }
  0x94   : > { %v777_v38 = vmul.bf16 %v773_v24, %v3745_v31  ;;  %v775_v39 = vmul.bf16 %v759_v25, %v3759_v36  ;;  %v774_v43 = vmul.bf16 %v752_v29, %v3749_v32  ;;  %v776_v44 = vmul.bf16 %v766_v30, %v3755_v35 }
  0x95   : > { %v845_v33 = vrot.slane %v3762_v37, %v3779_v48 }
  0x96   : > { %v351_v42 = vpop.permute.xlu1 %350  ;;  %1083 = vmatprep.subr.bf16.mxu1 %v777_v38  ;;  %1040 = vmatprep.subr.bf16.mxu0 %v775_v39  ;;  %v349_v45 = vpop.permute.xlu0 %348  ;;  %v857_v39 = vrot.slane %v3751_v34, %v3779_v48 }
  0x97   : > { %v3774_v46 = vsel %vm356_vm2, %v349_v45, %v351_v42  ;;  %1041 = vmatpush1.bf16.msra.mxu0 %v774_v43  ;;  %1084 = vmatpush1.bf16.msra.mxu1 %v776_v44 }
  0x98   : > { %v811_v49 = vmul.bf16 %v795_v41, %v3774_v46  ;;  %v853_v41 = vrot.slane %v3766_v40, %v3779_v48 }
  0x9a   : > { %v355_v52 = vpop.permute.xlu1 %354  ;;  %1042 = vmatprep.subr.bf16.mxu0 %v811_v49  ;;  %v353_v54 = vpop.permute.xlu0 %352 }
  0x9b   : > { %v3788_v53 = vsel %vm356_vm2, %v355_v52, %v349_v45  ;;  %v3795_v56 = vsel %vm356_vm2, %v353_v54, %v355_v52  ;;  %v3799_v57 = vsel %vm356_vm2, %v351_v42, %v353_v54  ;;  %v3866_v52 = vsub.s32 2, %v3717_v8 }
  0x9c   : > { %v810_v58 = vmul.bf16 %v788_v47, %v3788_v53  ;;  %v813_v61 = vmul.bf16 %v809_v50, %v3795_v56  ;;  %v812_v62 = vmul.bf16 %v802_v51, %v3799_v57 }
  0x9d   : > { %v885_v59 = vrot.slane %v3751_v34, %v3866_v52 }
  0x9e   : > { %v404_v4 = vpop.permute.xlu1 %403  ;;  %1043 = vmatpush1.bf16.msra.mxu0 %v810_v58  ;;  %1085 = vmatprep.subr.bf16.mxu1 %v813_v61  ;;  %v402_v5 = vpop.permute.xlu0 %401  ;;  %v877_v58 = vrot.slane %v3737_v26, %v3866_v52  ;;  %v873_v61 = vrot.slane %v3762_v37, %v3866_v52 }
  0x9f   : > { %v3812_v6 = vsel %vm409_vm3, %v402_v5, %v404_v4  ;;  %1086 = vmatpush1.bf16.msra.mxu1 %v812_v62  ;;  %v881_v62 = vrot.slane %v3766_v40, %v3866_v52 }
  0xa0   : > { %v835_v9 = vmul.bf16 %v825_v63, %v3812_v6 }
  0xa2   : > { %v408_v12 = vpop.permute.xlu1 %407  ;;  %1044 = vmatprep.subr.bf16.mxu0 %v835_v9  ;;  %v406_v18 = vpop.permute.xlu0 %405 }
  0xa3   : > { %v3823_v17 = vsel %vm409_vm3, %v408_v12, %v402_v5  ;;  %v3827_v21 = vsel %vm409_vm3, %v406_v18, %v408_v12  ;;  %v3831_v22 = vsel %vm409_vm3, %v404_v4, %v406_v18  ;;  %v3900_v12 = vsub.s32 3, %v3717_v8 }
  0xa4   : > { %v834_v23 = vmul.bf16 %v821_v7, %v3823_v17  ;;  %v837_v24 = vmul.bf16 %v833_v10, %v3827_v21  ;;  %v836_v25 = vmul.bf16 %v829_v11, %v3831_v22 }
  0xa6   : > { %v445_v28 = vpop.permute.xlu1 %444  ;;  %1045 = vmatpush1.bf16.msra.mxu0 %v834_v23  ;;  %1087 = vmatprep.subr.bf16.mxu1 %v837_v24  ;;  %v443_v29 = vpop.permute.xlu0 %442 }
  0xa7   : > { %v3841_v30 = vsel %vm450_vm4, %v443_v29, %v445_v28  ;;  %1088 = vmatpush1.bf16.msra.mxu1 %v836_v25 }
  0xa8   : > { %4989 = vst [vmem:[#allocation9_spill] sm:$0xff] %v3841_v30  ;;  %v859_v38 = vmul.bf16 %v849_v27, %v3841_v30  ;;  %v901_v27 = vrot.slane %v3726_v16, %v3900_v12 }
  0xaa   : > { %v449_v42 = vpop.permute.xlu1 %448  ;;  %1046 = vmatprep.subr.bf16.mxu0 %v859_v38  ;;  %v447_v44 = vpop.permute.xlu0 %446 }
  0xab   : > { %v3852_v43 = vsel %vm450_vm4, %v449_v42, %v443_v29  ;;  %v3856_v45 = vsel %vm450_vm4, %v447_v44, %v449_v42  ;;  %v3860_v47 = vsel %vm450_vm4, %v445_v28, %v447_v44  ;;  %v909_v28 = vrot.slane %v3724_v15, %v3900_v12 }
  0xac   : > { %4990 = vst [vmem:[#allocation10_spill] sm:$0xff] %v3856_v45  ;;  %v858_v49 = vmul.bf16 %v845_v33, %v3852_v43  ;;  %v861_v50 = vmul.bf16 %v857_v39, %v3856_v45  ;;  %v860_v51 = vmul.bf16 %v853_v41, %v3860_v47  ;;  %v897_v29 = vrot.slane %v3728_v19, %v3900_v12  ;;  %v255_v19 = vld [vmem:[%s4964_s1] sm:$0xff] }
  0xad   : > { %v905_v33 = vrot.slane %v3730_v20, %v3900_v12 }
  0xae   : > { %v510_v54 = vpop.permute.xlu1 %509  ;;  %1047 = vmatpush1.bf16.msra.mxu0 %v858_v49  ;;  %1089 = vmatprep.subr.bf16.mxu1 %v861_v50  ;;  %v508_v55 = vpop.permute.xlu0 %507 }
  0xaf   : > { %1048 = vmatprep.subr.bf16.mxu0 %v3642_v3  ;;  %1090 = vmatpush1.bf16.msra.mxu1 %v860_v51  ;;  %v3882_v63 = vsel %vm515_vm5, %v508_v55, %v510_v54  ;;  %v3210_v51 = vld [vmem:[%s4964_s1 + $0x38] sm:$0x11] }
  0xb0   : > { %1091 = vmatprep.subr.bf16.mxu1 %v3639_v2  ;;  %4991 = vst [vmem:[#allocation11_spill] sm:$0xff] %v3882_v63  ;;  %v886_v23 = vmul.bf16 %v873_v61, %v3882_v63  ;;  %v925_v61 = vrot.slane %v3737_v26, %v3900_v12 }
  0xb2   : > { %v514_v60 = vpop.permute.xlu1 %513  ;;  %1049 = vmatpush1.bf16.msra.mxu0 %v3634_v1  ;;  %v512_v5 = vpop.permute.xlu0 %511 }
  0xb3   : > { %v3886_v4 = vsel %vm515_vm5, %v514_v60, %v508_v55  ;;  %v3890_v7 = vsel %vm515_vm5, %v512_v5, %v514_v60  ;;  %v3894_v9 = vsel %vm515_vm5, %v510_v54, %v512_v5  ;;  %1092 = vmatpush1.bf16.msra.mxu1 %v3631_v0  ;;  %v3209_v55 = vld [vmem:[%s4964_s1 + $0x30] sm:$0x11]  ;;  %v3200_v60 = vcombine.high %v255_v19, %v255_v19 }
  0xb4   : > { %v887_v10 = vmul.bf16 %v877_v58, %v3894_v9  ;;  %v889_v11 = vmul.bf16 %v885_v59, %v3886_v4  ;;  %v888_v24 = vmul.bf16 %v881_v62, %v3890_v7  ;;  %v3942_v58 = vcombine.low %v255_v19, %v255_v19  ;;  %v256_v59 = vld [vmem:[%s4964_s1 + $0x8] sm:$0xff] }
  0xb5   : > { %v933_v62 = vrot.slane %v3751_v34, %v3900_v12  ;;  %v3216_v5 = vcombine.high %v3209_v55, %v3209_v55 }
  0xb6   : > { %v551_v18 = vpop.permute.xlu1 %550  ;;  %1050 = vmatprep.subr.bf16.mxu0 %v887_v10  ;;  %1093 = vmatprep.subr.bf16.mxu1 %v889_v11  ;;  %v549_v25 = vpop.permute.xlu0 %548  ;;  %v3218_v10 = vcombine.high %v3210_v51, %v3210_v51 }
  0xb7   : > { %1051 = vmatpush1.bf16.msra.mxu0 %v886_v23  ;;  %1094 = vmatpush1.bf16.msra.mxu1 %v888_v24  ;;  %v3915_v38 = vsel %vm556_vm6, %v549_v25, %v551_v18  ;;  %v929_v23 = vrot.slane %v3766_v40, %v3900_v12  ;;  %v3215_v24 = vcombine.low %v3209_v55, %v3209_v55 }
  0xb8   : > { %v910_v49 = vmul.bf16 %v897_v29, %v3915_v38  ;;  %v3972_v40 = vpack.i.b16 %v3200_v60, %v3200_v60 }
  0xba   : > { %v555_v8 = vpop.permute.xlu1 %554  ;;  %v553_v41 = vpop.permute.xlu0 %552 }
  0xbb   : > { %v3919_v39 = vsel %vm556_vm6, %v555_v8, %v549_v25  ;;  %v3923_v16 = vsel %vm556_vm6, %v553_v41, %v555_v8  ;;  %v3927_v15 = vsel %vm556_vm6, %v551_v18, %v553_v41  ;;  %v921_v18 = vrot.slane %v3762_v37, %v3900_v12 }
  0xbc   : > { %v911_v20 = vmul.bf16 %v901_v27, %v3927_v15  ;;  %v913_v42 = vmul.bf16 %v909_v28, %v3919_v39  ;;  %v912_v50 = vmul.bf16 %v905_v33, %v3923_v16  ;;  %v3217_v25 = vcombine.low %v3210_v51, %v3210_v51 }
  0xbd   : > { %v3201_v27 = vcombine.low %v256_v59, %v256_v59  ;;  %v3202_v8 = vcombine.high %v256_v59, %v256_v59  ;;  %v372_v33 = vshrl.u32 %v3200_v60, 16  ;;  %v3982_v60 = vpack.i.b16 %v3942_v58, %v3942_v58 }
  0xbe   : > { %v592_v44 = vpop.permute.xlu1 %591  ;;  %1052 = vmatprep.subr.bf16.mxu0 %v911_v20  ;;  %1095 = vmatprep.subr.bf16.mxu1 %v913_v42  ;;  %v590_v54 = vpop.permute.xlu0 %589  ;;  %v960_v20 = vpack.i.b16 %v3216_v5, %v3216_v5  ;;  %v974_v42 = vpack.i.b16 %v3218_v10, %v3218_v10  ;;  %v967_v55 = vpack.i.b16 %v3217_v25, %v3217_v25  ;;  %v365_v5 = vshrl.u32 %v3942_v58, 16 }
  0xbf   : > { %1053 = vmatpush1.bf16.msra.mxu0 %v910_v49  ;;  %1096 = vmatpush1.bf16.msra.mxu1 %v912_v50  ;;  %v3958_v28 = vsel %vm597_vm7, %v590_v54, %v592_v44  ;;  %v3978_v59 = vpack.i.b16 %v3202_v8, %v3202_v8 }
  0xc0   : > { %v934_v50 = vmul.bf16 %v921_v18, %v3958_v28  ;;  %v965_v10 = vrot.slane %v960_v20, %v3722_v14  ;;  %v979_v18 = vrot.slane %v974_v42, %v3722_v14  ;;  %v972_v25 = vrot.slane %v967_v55, %v3722_v14 }
  0xc1   : > { %v318_v42 = vrot.slane %v3982_v60, %v3722_v14 }
  0xc2   : > { %v596_v11 = vpop.permute.xlu1 %595  ;;  %v594_v34 = vpop.permute.xlu0 %593 }
  0xc3   : > { %v3962_v26 = vsel %vm597_vm7, %v596_v11, %v590_v54  ;;  %v3966_v29 = vsel %vm597_vm7, %v594_v34, %v596_v11  ;;  %v3970_v37 = vsel %vm597_vm7, %v592_v44, %v594_v34  ;;  %v953_v54 = vpack.i.b16 %v3215_v24, %v3215_v24 }
  0xc4   : > { %4992 = vst [vmem:[#allocation12_spill] sm:$0xff] %v3970_v37  ;;  %v935_v41 = vmul.bf16 %v925_v61, %v3970_v37  ;;  %v937_v19 = vmul.bf16 %v933_v62, %v3962_v26  ;;  %v936_v51 = vmul.bf16 %v929_v23, %v3966_v29  ;;  %v386_v11 = vshrl.u32 %v3202_v8, 16 }
  0xc5   : > { %v3984_v61 = vpack.i.b16 %v3201_v27, %v3201_v27  ;;  %v379_v62 = vshrl.u32 %v3201_v27, 16  ;;  %v958_v24 = vrot.slane %v953_v54, %v3722_v14  ;;  %v325_v34 = vrot.slane %v3972_v40, %v3722_v14 }
  0xc6   : > { %v633_v49 = vpop.permute.xlu1 %632  ;;  %1054 = vmatprep.subr.bf16.mxu0 %v935_v41  ;;  %1097 = vmatprep.subr.bf16.mxu1 %v937_v19  ;;  %v631_v44 = vpop.permute.xlu0 %630  ;;  %v3994_v8 = vpack.i.b16 %v372_v33, %v372_v33  ;;  %v339_v19 = vrot.slane %v3978_v59, %v3722_v14  ;;  %v4006_v20 = vpack.i.b16 %v386_v11, %v386_v11 }
  0xc7   : > { %1055 = vmatpush1.bf16.msra.mxu0 %v934_v50  ;;  %1098 = vmatpush1.bf16.msra.mxu1 %v936_v51  ;;  %v3998_v41 = vsel %vm638_vm8, %v631_v44, %v633_v49  ;;  %v332_v51 = vrot.slane %v3984_v61, %v3722_v14  ;;  %v4020_v54 = vpack.i.b16 %v379_v62, %v379_v62 }
  0xc8   : > { %v4024_v11 = vpack.i.b16 %v365_v5, %v365_v5  ;;  %v980_v37 = vmul.bf16 %v958_v24, %v3998_v41  ;;  %v378_v13 = vrot.slane %v3994_v8, %v3722_v14  ;;  %v343_v62 = vmul.bf16 %v339_v19, %v3755_v35 }
  0xc9   : > { %v392_v5 = vrot.slane %v4006_v20, %v3722_v14  ;;  %v340_v24 = vmul.bf16 %v318_v42, %v3745_v31  ;;  %v433_v42 = vrot.slane %v3978_v59, %v3779_v48 }
  0xca   : > { %v637_v23 = vpop.permute.xlu1 %636  ;;  %v635_v27 = vpop.permute.xlu0 %634  ;;  %v394_v19 = vmul.bf16 %v378_v13, %v3788_v53 }
  0xcb   : > { %v4002_v58 = vsel %vm638_vm8, %v637_v23, %v631_v44  ;;  %v4012_v33 = vsel %vm638_vm8, %v635_v27, %v637_v23  ;;  %v4016_v50 = vsel %vm638_vm8, %v633_v49, %v635_v27  ;;  %v341_v49 = vmul.bf16 %v325_v34, %v3749_v32 }
  0xcc   : > { %v981_v55 = vmul.bf16 %v965_v10, %v4016_v50  ;;  %v983_v44 = vmul.bf16 %v979_v18, %v4002_v58  ;;  %v982_v23 = vmul.bf16 %v972_v25, %v4012_v33  ;;  %v3417_v10 = vld [vmem:[%s4965_s2 + $0x10] ss:$8 sps:$4 sm:$0xff]   ;;  %v385_v18 = vrot.slane %v4020_v54, %v3722_v14 }
  0xcd   : > { %v342_v25 = vmul.bf16 %v332_v51, %v3759_v36  ;;  %v371_v34 = vrot.slane %v4024_v11, %v3722_v14  ;;  %v425_v27 = vrot.slane %v3972_v40, %v3779_v48  ;;  %v429_v51 = vrot.slane %v3984_v61, %v3779_v48 }
  0xce   : > { %1056 = vmatprep.subr.bf16.mxu0 %v981_v55  ;;  %1099 = vmatprep.subr.bf16.mxu1 %v983_v44  ;;  %v396_v55 = vmul.bf16 %v392_v5, %v3799_v57  ;;  %v395_v44 = vmul.bf16 %v385_v18, %v3774_v46  ;;  %v474_v5 = vrot.slane %v4006_v20, %v3779_v48 }
  0xcf   : > { %1057 = vmatpush1.bf16.msra.mxu0 %v980_v37  ;;  %1100 = vmatpush1.bf16.msra.mxu1 %v982_v23  ;;  %v3424_v37 = vld [vmem:[%s4965_s2 + $0x4] ss:$8 sps:$4 sm:$0xff]   ;;  %v393_v23 = vmul.bf16 %v371_v34, %v3795_v56  ;;  %v435_v13 = vmul.bf16 %v425_v27, %v3823_v17  ;;  %v490_v18 = vrot.slane %v3972_v40, %v3866_v52 }
  0xd0   : > { %1138 = vmatprep.subr.bf16.mxu0 %v341_v49  ;;  %1181 = vmatprep.subr.bf16.mxu1 %v343_v62  ;;  %v421_v49 = vrot.slane %v3982_v60, %v3779_v48  ;;  %v437_v62 = vmul.bf16 %v433_v42, %v3831_v22  ;;  %v470_v27 = vrot.slane %v4020_v54, %v3779_v48 }
  0xd1   : > { %v486_v42 = vrot.slane %v3982_v60, %v3866_v52 }
  0xd2   : > { %1073 = vmatmul.mubr.bf16.vlgmr.msra.gmra.mrb[0].mxu0 %v3417_v10  ;;  %1116 = vmatmul.mubr.bf16.vlgmr.msra.gmra.mrb[0].mxu1 %v3417_v10  ;;  %v466_v10 = vrot.slane %v3994_v8, %v3779_v48  ;;  %v434_v34 = vmul.bf16 %v421_v49, %v3827_v21  ;;  %v3230_v49 = vld [vmem:[%s4964_s1 + $0x48] sm:$0xff] }
  0xd3   : > { %1139 = vmatpush1.bf16.msra.mxu0 %v340_v24  ;;  %1182 = vmatpush1.bf16.msra.mxu1 %v342_v25  ;;  %v498_v24 = vrot.slane %v3978_v59, %v3866_v52  ;;  %v436_v25 = vmul.bf16 %v429_v51, %v3812_v6  ;;  %v494_v51 = vrot.slane %v3984_v61, %v3866_v52 }
  0xd4   : > { %1140 = vmatprep.subr.bf16.mxu0 %v394_v19  ;;  %1183 = vmatprep.subr.bf16.mxu1 %v396_v55  ;;  %v476_v19 = vmul.bf16 %v466_v10, %v3852_v43  ;;  %v478_v55 = vmul.bf16 %v474_v5, %v3860_v47  ;;  %v531_v10 = vrot.slane %v3994_v8, %v3866_v52 }
  0xd5   : > { %3227 = vmatprep.mubr.msk.bf16.mxu0 %vm1036_vm0, %v3424_v37  ;;  %3228 = vmatprep.mubr.msk.bf16.mxu1 %vm1036_vm0, %v3424_v37  ;;  %v462_v37 = vrot.slane %v4024_v11, %v3779_v48  ;;  %v539_v5 = vrot.slane %v4006_v20, %v3866_v52 }
  0xd7   : > { %1141 = vmatpush1.bf16.msra.mxu0 %v393_v23  ;;  %1184 = vmatpush1.bf16.msra.mxu1 %v395_v44  ;;  %v500_v44 = vmul.bf16 %v3634_v1, %v490_v18  ;;  %v502_v23 = vmul.bf16 %v3631_v0, %v498_v24  ;;  %v257_v18 = vld [vmem:[%s4964_s1 + $0x10] sm:$0x11]  ;;  %v258_v24 = vld [vmem:[%s4964_s1 + $0x18] sm:$0x11] }
  0xd8   : > { %1142 = vmatprep.subr.bf16.mxu0 %v435_v13  ;;  %1185 = vmatprep.subr.bf16.mxu1 %v437_v62  ;;  %v477_v13 = vmul.bf16 %v470_v27, %v3841_v30  ;;  %v475_v62 = vmul.bf16 %v462_v37, %v3856_v45  ;;  %v4101_v27 = vcombine.low %v3230_v49, %v3230_v49  ;;  %v3229_v37 = vld [vmem:[%s4964_s1 + $0x40] sm:$0xff] }
  0xd9   : > { %v3236_v45 = vcombine.high %v3230_v49, %v3230_v49  ;;  %v576_v30 = vrot.slane %v3984_v61, %v3900_v12 }
  0xdb   : > { %1143 = vmatpush1.bf16.msra.mxu0 %v434_v34  ;;  %1186 = vmatpush1.bf16.msra.mxu1 %v436_v25  ;;  %v499_v25 = vmul.bf16 %v3639_v2, %v486_v42  ;;  %v501_v34 = vmul.bf16 %v3642_v3, %v494_v51  ;;  %v580_v42 = vrot.slane %v3978_v59, %v3900_v12 }
  0xdc   : > { %1144 = vmatprep.subr.bf16.mxu0 %v476_v19  ;;  %1187 = vmatprep.subr.bf16.mxu1 %v478_v55  ;;  %v527_v19 = vrot.slane %v4024_v11, %v3866_v52  ;;  %v535_v55 = vrot.slane %v4020_v54, %v3866_v52  ;;  %v541_v51 = vmul.bf16 %v531_v10, %v3882_v63 }
  0xdd   : > { %v3204_v2 = vcombine.high %v257_v18, %v257_v18  ;;  %v3206_v3 = vcombine.high %v258_v24, %v258_v24  ;;  %v621_v59 = vrot.slane %v4006_v20, %v3900_v12  ;;  %v584_v49 = vmul.bf16 %v580_v42, %v3923_v16 }
  0xde   : > { %v540_v10 = vmul.bf16 %v527_v19, %v3886_v4  ;;  %v609_v20 = vrot.slane %v4024_v11, %v3900_v12  ;;  %v1296_v19 = vshrl.u32 %v3236_v45, 16 }
  0xdf   : > { %1145 = vmatpush1.bf16.msra.mxu0 %v475_v62  ;;  %1188 = vmatpush1.bf16.msra.mxu1 %v477_v13  ;;  %v572_v13 = vrot.slane %v3972_v40, %v3900_v12  ;;  %v543_v62 = vmul.bf16 %v539_v5, %v3890_v7  ;;  %v613_v40 = vrot.slane %v3994_v8, %v3900_v12 }
  0xe0   : > { %1146 = vmatprep.subr.bf16.mxu0 %v500_v44  ;;  %1189 = vmatprep.subr.bf16.mxu1 %v502_v23  ;;  %v568_v44 = vrot.slane %v3982_v60, %v3900_v12  ;;  %v3234_v23 = vcombine.high %v3229_v37, %v3229_v37  ;;  %v542_v5 = vmul.bf16 %v535_v55, %v3894_v9 }
  0xe1   : > { %v3203_v60 = vcombine.low %v257_v18, %v257_v18  ;;  %v665_v63 = vpack.i.b16 %v3204_v2, %v3204_v2  ;;  %v679_v61 = vpack.i.b16 %v3206_v3, %v3206_v3  ;;  %v4130_v8 = vpack.i.b16 %v3236_v45, %v3236_v45 }
  0xe2   : > { %v617_v18 = vrot.slane %v4020_v54, %v3900_v12  ;;  %v581_v2 = vmul.bf16 %v568_v44, %v3919_v39  ;;  %v583_v3 = vmul.bf16 %v576_v30, %v3927_v15  ;;  %v625_v42 = vmul.bf16 %v621_v59, %v3966_v29  ;;  %v4993_v59 = vld [vmem:[#allocation12_spill] sm:$0xff] }
  0xe3   : > { %1147 = vmatpush1.bf16.msra.mxu0 %v499_v25  ;;  %1190 = vmatpush1.bf16.msra.mxu1 %v501_v34  ;;  %v3205_v25 = vcombine.low %v258_v24, %v258_v24  ;;  %v582_v34 = vmul.bf16 %v572_v13, %v3915_v38  ;;  %v1282_v24 = vshrl.u32 %v3234_v23, 16  ;;  %v623_v13 = vmul.bf16 %v613_v40, %v3958_v28 }
  0xe4   : > { %1148 = vmatprep.subr.bf16.mxu0 %v541_v51  ;;  %1191 = vmatprep.subr.bf16.mxu1 %v543_v62  ;;  %v3233_v51 = vcombine.low %v3229_v37, %v3229_v37  ;;  %v4128_v62 = vpack.i.b16 %v3234_v23, %v3234_v23  ;;  %v658_v37 = vpack.i.b16 %v3203_v60, %v3203_v60  ;;  %v1289_v30 = vshrl.u32 %v4101_v27, 16 }
  0xe5   : > { %v672_v55 = vpack.i.b16 %v3205_v25, %v3205_v25  ;;  %v684_v11 = vrot.slane %v679_v61, %v3722_v14  ;;  %v4144_v54 = vpack.i.b16 %v4101_v27, %v4101_v27  ;;  %v622_v40 = vmul.bf16 %v609_v20, %v3962_v26 }
  0xe6   : > { %v4146_v23 = vpack.i.b16 %v3233_v51, %v3233_v51  ;;  %v1275_v45 = vshrl.u32 %v3233_v51, 16  ;;  %v1252_v44 = vrot.slane %v4128_v62, %v3722_v14  ;;  %v663_v60 = vrot.slane %v658_v37, %v3722_v14 }
  0xe7   : > { %1149 = vmatpush1.bf16.msra.mxu0 %v540_v10  ;;  %1192 = vmatpush1.bf16.msra.mxu1 %v542_v5  ;;  %v670_v10 = vrot.slane %v665_v63, %v3722_v14  ;;  %v1266_v63 = vrot.slane %v4130_v8, %v3722_v14  ;;  %v624_v5 = vmul.bf16 %v617_v18, %v4993_v59 }
  0xe8   : > { %1150 = vmatprep.subr.bf16.mxu0 %v582_v34  ;;  %1193 = vmatprep.subr.bf16.mxu1 %v584_v49  ;;  %v677_v25 = vrot.slane %v672_v55, %v3722_v14  ;;  %v688_v27 = vmul.bf16 %v684_v11, %v4012_v33  ;;  %v4159_v49 = vpack.i.b16 %v1282_v24, %v1282_v24  ;;  %v3426_v55 = vld [vmem:[%s4965_s2] ss:$8 sps:$4 sm:$0xff]  }
  0xe9   : > { %v686_v34 = vmul.bf16 %v670_v10, %v3998_v41  ;;  %v4161_v61 = vpack.i.b16 %v1296_v19, %v1296_v19  ;;  %v1259_v51 = vrot.slane %v4144_v54, %v3722_v14  ;;  %v4165_v20 = vpack.i.b16 %v1275_v45, %v1275_v45 }
  0xea   : > { %v1245_v18 = vrot.slane %v4146_v23, %v3722_v14  ;;  %v687_v24 = vmul.bf16 %v677_v25, %v4016_v50  ;;  %v1268_v19 = vmul.bf16 %v1252_v44, %v3755_v35  ;;  %v1270_v37 = vmul.bf16 %v1266_v63, %v3749_v32 }
  0xeb   : > { %1151 = vmatpush1.bf16.msra.mxu0 %v581_v2  ;;  %1194 = vmatpush1.bf16.msra.mxu1 %v583_v3  ;;  %v4169_v2 = vpack.i.b16 %v1289_v30, %v1289_v30  ;;  %v685_v3 = vmul.bf16 %v663_v60, %v4002_v58  ;;  %v1281_v10 = vrot.slane %v4165_v20, %v3722_v14  ;;  %v3429_v30 = vld [vmem:[%s4965_s2 + $0x24] ss:$8 sps:$4 sm:$0xff]  }
  0xec   : > { %1152 = vmatprep.subr.bf16.mxu0 %v623_v13  ;;  %1195 = vmatprep.subr.bf16.mxu1 %v625_v42  ;;  %v1288_v13 = vrot.slane %v4159_v49, %v3722_v14  ;;  %v1302_v42 = vrot.slane %v4161_v61, %v3722_v14  ;;  %v1269_v35 = vmul.bf16 %v1259_v51, %v3745_v31 }
  0xed   : > { %v1267_v32 = vmul.bf16 %v1245_v18, %v3759_v36  ;;  %v1295_v11 = vrot.slane %v4169_v2, %v3722_v14  ;;  %v1318_v45 = vrot.slane %v4128_v62, %v3779_v48  ;;  %v1326_v31 = vrot.slane %v4130_v8, %v3779_v48 }
  0xee   : > { %v1304_v44 = vmul.bf16 %v1288_v13, %v3799_v57  ;;  %v1306_v63 = vmul.bf16 %v1302_v42, %v3788_v53  ;;  %v1314_v36 = vrot.slane %v4146_v23, %v3779_v48  ;;  %v1322_v60 = vrot.slane %v4144_v54, %v3779_v48  ;;  %v4995_v13 = vld [vmem:[#allocation10_spill] sm:$0xff] }
  0xef   : > { %1153 = vmatpush1.bf16.msra.mxu0 %v622_v40  ;;  %1196 = vmatpush1.bf16.msra.mxu1 %v624_v5  ;;  %v1303_v40 = vmul.bf16 %v1281_v10, %v3774_v46  ;;  %v1305_v5 = vmul.bf16 %v1295_v11, %v3795_v56  ;;  %v1328_v53 = vmul.bf16 %v1318_v45, %v3831_v22  ;;  %v3232_v10 = vld [vmem:[%s4964_s1 + $0x58] sm:$0x11] }
  0xf0   : > { %1154 = vmatprep.subr.bf16.mxu0 %v686_v34  ;;  %1197 = vmatprep.subr.bf16.mxu1 %v688_v27  ;;  %v1330_v57 = vmul.bf16 %v1326_v31, %v3823_v17  ;;  %v1342_v25 = vrot.slane %v4159_v49, %v3779_v48  ;;  %v1350_v34 = vrot.slane %v4161_v61, %v3779_v48 }
  0xf1   : > { %v1366_v46 = vrot.slane %v4128_v62, %v3866_v52  ;;  %v1374_v56 = vrot.slane %v4130_v8, %v3866_v52  ;;  %v1327_v22 = vmul.bf16 %v1314_v36, %v3812_v6  ;;  %v1329_v17 = vmul.bf16 %v1322_v60, %v3827_v21  ;;  %v4998_v36 = vld [vmem:[#allocation11_spill] sm:$0xff] }
  0xf2   : > { %v1338_v27 = vrot.slane %v4165_v20, %v3779_v48  ;;  %v1346_v51 = vrot.slane %v4169_v2, %v3779_v48  ;;  %v1352_v18 = vmul.bf16 %v1342_v25, %v3860_v47  ;;  %v1370_v6 = vrot.slane %v4144_v54, %v3866_v52 }
  0xf3   : > { %1155 = vmatpush1.bf16.msra.mxu0 %v685_v3  ;;  %1198 = vmatpush1.bf16.msra.mxu1 %v687_v24  ;;  %v1354_v3 = vmul.bf16 %v1350_v34, %v3852_v43  ;;  %v1362_v24 = vrot.slane %v4146_v23, %v3866_v52  ;;  %v1376_v21 = vmul.bf16 %v3631_v0, %v1366_v46  ;;  %v3231_v0 = vld [vmem:[%s4964_s1 + $0x50] sm:$0x11] }
  0xf4   : > { %1552 = vmatprep.subr.bf16.mxu0 %v1268_v19  ;;  %1595 = vmatprep.subr.bf16.mxu1 %v1270_v37  ;;  %v1378_v19 = vmul.bf16 %v3634_v1, %v1374_v56  ;;  %v4994_v37 = vld [vmem:[#allocation9_spill] sm:$0xff]  ;;  %v1353_v47 = vmul.bf16 %v1346_v51, %v4995_v13  ;;  %v1390_v43 = vrot.slane %v4159_v49, %v3866_v52  ;;  %v4996_v1 = vld [vmem:[#allocation7_spill] sm:$0xff] }
  0xf5   : > { %v1398_v42 = vrot.slane %v4161_v61, %v3866_v52  ;;  %v1394_v45 = vrot.slane %v4169_v2, %v3866_v52  ;;  %v3240_v60 = vcombine.high %v3232_v10, %v3232_v10  ;;  %v3239_v34 = vcombine.low %v3232_v10, %v3232_v10 }
  0xf6   : > { %1171 = vmatmul.mubr.bf16.vlgmr.msra.gmra.mrb[0].mxu0 %v3426_v55  ;;  %1214 = vmatmul.mubr.bf16.vlgmr.msra.gmra.mrb[0].mxu1 %v3426_v55  ;;  %v1351_v55 = vmul.bf16 %v1338_v27, %v4994_v37  ;;  %v1400_v31 = vmul.bf16 %v1390_v43, %v3890_v7  ;;  %v1446_v7 = vrot.slane %v4161_v61, %v3900_v12 }
  0xf7   : > { %1553 = vmatpush1.bf16.msra.mxu0 %v1267_v32  ;;  %1596 = vmatpush1.bf16.msra.mxu1 %v1269_v35  ;;  %v1375_v35 = vmul.bf16 %v4996_v1, %v1362_v24  ;;  %v4997_v32 = vld [vmem:[#allocation6_spill] sm:$0xff]  ;;  %v3237_v46 = vcombine.low %v3231_v0, %v3231_v0  ;;  %v1434_v61 = vrot.slane %v4165_v20, %v3900_v12 }
  0xf8   : > { %1554 = vmatprep.subr.bf16.mxu0 %v1304_v44  ;;  %1597 = vmatprep.subr.bf16.mxu1 %v1306_v63  ;;  %v1377_v11 = vmul.bf16 %v4997_v32, %v1370_v6  ;;  %v1414_v44 = vrot.slane %v4128_v62, %v3900_v12  ;;  %v1422_v63 = vrot.slane %v4130_v8, %v3900_v12 }
  0xf9   : > { %3245 = vmatprep.mubr.msk.bf16.mxu0 %vm1036_vm0, %v3429_v30  ;;  %3246 = vmatprep.mubr.msk.bf16.mxu1 %vm1036_vm0, %v3429_v30  ;;  %v1386_v30 = vrot.slane %v4165_v20, %v3866_v52  ;;  %v1438_v62 = vrot.slane %v4159_v49, %v3900_v12  ;;  %v1401_v8 = vmul.bf16 %v1394_v45, %v3886_v4 }
  0xfa   : > { %v1426_v56 = vmul.bf16 %v1422_v63, %v3915_v38  ;;  %v1442_v49 = vrot.slane %v4169_v2, %v3900_v12  ;;  %v1450_v27 = vmul.bf16 %v1446_v7, %v3958_v28  ;;  %v3037_v7 = vld [vmem:[%s4968_s5 + $0x8] sm:$0xff] }
  0xfb   : > { %1555 = vmatpush1.bf16.msra.mxu0 %v1303_v40  ;;  %1598 = vmatpush1.bf16.msra.mxu1 %v1305_v5  ;;  %v1402_v40 = vmul.bf16 %v1398_v42, %v4998_v36  ;;  %v3238_v5 = vcombine.high %v3231_v0, %v3231_v0  ;;  %v1399_v25 = vmul.bf16 %v1386_v30, %v3894_v9 }
  0xfc   : > { %1556 = vmatprep.subr.bf16.mxu0 %v1328_v53  ;;  %1599 = vmatprep.subr.bf16.mxu1 %v1330_v57  ;;  %v1418_v53 = vrot.slane %v4144_v54, %v3900_v12  ;;  %v1410_v57 = vrot.slane %v4146_v23, %v3900_v12  ;;  %v1424_v54 = vmul.bf16 %v1414_v44, %v3923_v16 }
  0xfd   : > { %v1487_v23 = vpack.i.b16 %v3240_v60, %v3240_v60  ;;  %v1466_v16 = vpack.i.b16 %v3237_v46, %v3237_v46  ;;  %v1448_v38 = vmul.bf16 %v1438_v62, %v3966_v29  ;;  %v1449_v20 = vmul.bf16 %v1442_v49, %v3962_v26  ;;  %v3431_v26 = vld [vmem:[%s4965_s2 + $0x20] ss:$8 sps:$4 sm:$0xff]  }
  0xfe   : > { %v1425_v4 = vmul.bf16 %v1418_v53, %v3919_v39  ;;  %v1423_v9 = vmul.bf16 %v1410_v57, %v3927_v15  ;;  %v1447_v39 = vmul.bf16 %v1434_v61, %v4993_v59  ;;  %v1651_v59 = vpop.permute.xlu0 %1650  ;;  %v3450_v57 = vld [vmem:[%s4966_s3 + $0x14] ss:$8 sps:$4 sm:$0xff]   ;;  %v3036_v62 = vld [vmem:[%s4968_s5] sm:$0xff] }
  0xff   : > { %1557 = vmatpush1.bf16.msra.mxu0 %v1327_v22  ;;  %1600 = vmatpush1.bf16.msra.mxu1 %v1329_v17  ;;  %v1473_v22 = vpack.i.b16 %v3238_v5, %v3238_v5  ;;  %v1480_v17 = vpack.i.b16 %v3239_v34, %v3239_v34  ;;  %v1471_v2 = vrot.slane %v1466_v16, %v3722_v14  ;;  %v3256_v34 = vld [vmem:[%s4964_s1 + $0x28] sm:$0xff] }
 0x100   : > { %1558 = vmatprep.subr.bf16.mxu0 %v1352_v18  ;;  %1601 = vmatprep.subr.bf16.mxu1 %v1354_v3  ;;  %v1492_v18 = vrot.slane %v1487_v23, %v3722_v14 }
 0x101   : > { %v1478_v51 = vrot.slane %v1473_v22, %v3722_v14  ;;  %v1485_v15 = vrot.slane %v1480_v17, %v3722_v14  ;;  %v1493_v24 = vmul.bf16 %v1471_v2, %v4016_v50  ;;  %v3261_v22 = vcombine.low %v3256_v34, %v3256_v34 }
 0x102   : > { %v1496_v28 = vmul.bf16 %v1492_v18, %v3998_v41 }
 0x103   : > { %1559 = vmatpush1.bf16.msra.mxu0 %v1351_v55  ;;  %1602 = vmatpush1.bf16.msra.mxu1 %v1353_v47  ;;  %v1494_v29 = vmul.bf16 %v1478_v51, %v4012_v33  ;;  %v1495_v3 = vmul.bf16 %v1485_v15, %v4002_v58  ;;  %v1656_v33 = vpop.permute.xlu1 %1655  ;;  %v4383_v17 = vpack.i.b16 %v3261_v22, %v3261_v22 }
 0x104   : > { %1560 = vmatprep.subr.bf16.mxu0 %v1376_v21  ;;  %1603 = vmatprep.subr.bf16.mxu1 %v1378_v19 }
 0x107   : > { %1561 = vmatpush1.bf16.msra.mxu0 %v1375_v35  ;;  %1604 = vmatpush1.bf16.msra.mxu1 %v1377_v11 }
 0x108   : > { %1562 = vmatprep.subr.bf16.mxu0 %v1400_v31  ;;  %1605 = vmatprep.subr.bf16.mxu1 %v1402_v40 }
 0x10b   : > { %1563 = vmatpush1.bf16.msra.mxu0 %v1399_v25  ;;  %1606 = vmatpush1.bf16.msra.mxu1 %v1401_v8  ;;  %v3255_v8 = vld [vmem:[%s4964_s1 + $0x20] sm:$0xff] }
 0x10c   : > { %1564 = vmatprep.subr.bf16.mxu0 %v1424_v54  ;;  %1607 = vmatprep.subr.bf16.mxu1 %v1426_v56  ;;  %v3260_v25 = vcombine.high %v3255_v8, %v3255_v8  ;;  %v3259_v46 = vcombine.low %v3255_v8, %v3255_v8  ;;  %v3262_v56 = vcombine.high %v3256_v34, %v3256_v34 }
 0x10d   : > { %v2221_v34 = vrot.slane %v4383_v17, %v3779_v48 }
 0x10e   : > { %v4375_v54 = vpack.i.b16 %v3260_v25, %v3260_v25  ;;  %v4377_v23 = vpack.i.b16 %v3259_v46, %v3259_v46  ;;  %v2181_v49 = vshrl.u32 %v3260_v25, 16  ;;  %v2174_v15 = vshrl.u32 %v3259_v46, 16 }
 0x10f   : > { %1565 = vmatpush1.bf16.msra.mxu0 %v1423_v9  ;;  %1608 = vmatpush1.bf16.msra.mxu1 %v1425_v4  ;;  %v4381_v4 = vpack.i.b16 %v3262_v56, %v3262_v56  ;;  %v2195_v2 = vshrl.u32 %v3262_v56, 16 }
 0x110   : > { %1566 = vmatprep.subr.bf16.mxu0 %v1448_v38  ;;  %1609 = vmatprep.subr.bf16.mxu1 %v1450_v27  ;;  %v2151_v61 = vrot.slane %v4375_v54, %v3722_v14  ;;  %v2144_v51 = vrot.slane %v4377_v23, %v3722_v14  ;;  %v4391_v18 = vpack.i.b16 %v2181_v49, %v2181_v49 }
 0x111   : > { %v2213_v8 = vrot.slane %v4377_v23, %v3779_v48  ;;  %v2225_v25 = vrot.slane %v4381_v4, %v3779_v48 }
 0x113   : > { %1567 = vmatpush1.bf16.msra.mxu0 %v1447_v39  ;;  %1610 = vmatpush1.bf16.msra.mxu1 %v1449_v20  ;;  %v2165_v39 = vrot.slane %v4381_v4, %v3722_v14 }
 0x114   : > { %1568 = vmatprep.subr.bf16.mxu0 %v1494_v29  ;;  %1611 = vmatprep.subr.bf16.mxu1 %v1496_v28  ;;  %v2158_v29 = vrot.slane %v4383_v17, %v3722_v14 }
 0x117   : > { %1569 = vmatpush1.bf16.msra.mxu0 %v1493_v24  ;;  %1612 = vmatpush1.bf16.msra.mxu1 %v1495_v3  ;;  %v2188_v3 = vshrl.u32 %v3261_v22, 16 }
 0x11a   : > { %1585 = vmatmul.mubr.bf16.vlgmr.msra.gmra.mrb[0].mxu0 %v3431_v26  ;;  %1628 = vmatmul.mubr.bf16.vlgmr.msra.gmra.mrb[0].mxu1 %v3431_v26 }
 0x11b   : > { %3271 = vmatprep.mubr.msk.bf16.mxu0 %vm1036_vm0, %v3450_v57  ;;  %3272 = vmatprep.mubr.msk.bf16.mxu1 %vm1036_vm0, %v3450_v57 }
 0x1ed   : > { %v1586_v6 = vpop.f32.mrb[0].mxu0  ;;  %v1629_v41 = vpop.f32.mrb[0].mxu1 }
 0x1ee   : > { %v1658_v21 = vadd.f32 %v1651_v59, %v1586_v6  ;;  %v1660_v19 = vadd.f32 %v1651_v59, %v1629_v41  ;;  %v1588_v37 = vpop.f32.mrb[1].mxu0  ;;  %v1631_v55 = vpop.f32.mrb[1].mxu1  ;;  %v2187_v6 = vrot.slane %v4391_v18, %v3722_v14 }
 0x1ef   : > { %v1659_v13 = vadd.f32 %v1651_v59, %v1588_v37  ;;  %v1661_v58 = vadd.f32 %v1651_v59, %v1631_v55  ;;  %v1590_v47 = vpop.f32.mrb[2].mxu0  ;;  %v1633_v50 = vpop.f32.mrb[2].mxu1  ;;  %v4416_v37 = vpack.i.b16 %v2195_v2, %v2195_v2 }
 0x1f0   : > { %v1662_v43 = vadd.f32 %v1656_v33, %v1590_v47  ;;  %v1664_v42 = vadd.f32 %v1656_v33, %v1633_v50  ;;  %v1592_v10 = vpop.f32.mrb[3].mxu0  ;;  %v1635_v0 = vpop.f32.mrb[3].mxu1  ;;  %v1666_v32 = vmax.f32 %v1658_v21, 0.0  ;;  %v1668_v11 = vmax.f32 %v1660_v19, 0.0 }
 0x1f1   : > { %v1663_v1 = vadd.f32 %v1656_v33, %v1592_v10  ;;  %v1665_v35 = vadd.f32 %v1656_v33, %v1635_v0  ;;  %v1667_v44 = vmax.f32 %v1659_v13, 0.0  ;;  %v1669_v63 = vmax.f32 %v1661_v58, 0.0 }
 0x1f2   : > { %v1670_v45 = vmax.f32 %v1662_v43, 0.0  ;;  %v1672_v30 = vmax.f32 %v1664_v42, 0.0  ;;  %v4414_v19 = vpack.i.b16 %v2174_v15, %v2174_v15  ;;  %v4419_v58 = vpack.i.b16 %v2188_v3, %v2188_v3 }
 0x1f3   : > { %v1671_v31 = vmax.f32 %v1663_v1, 0.0  ;;  %v1673_v36 = vmax.f32 %v1665_v35, 0.0  ;;  %v2201_v10 = vrot.slane %v4416_v37, %v3722_v14  ;;  %v2249_v3 = vrot.slane %v4416_v37, %v3779_v48 }
 0x1f4   : > { %v4286_v40 = vpack.c.bf16 %v1670_v45, %v1666_v32  ;;  %v4288_v5 = vpack.c.bf16 %v1672_v30, %v1668_v11  ;;  %v2180_v42 = vrot.slane %v4414_v19, %v3722_v14  ;;  %v2194_v0 = vrot.slane %v4419_v58, %v3722_v14 }
 0x1f5   : > { %v4290_v60 = vpack.c.bf16 %v1671_v31, %v1667_v44  ;;  %v4292_v53 = vpack.c.bf16 %v1673_v36, %v1669_v63  ;;  %v2217_v63 = vrot.slane %v4375_v54, %v3779_v48 }
 0x1f6   : > { %4999 = vst [vmem:[#allocation12_spill] sm:$0xff] %v4286_v40  ;;  %1686 = vrot.lane.b32.xlu1 %v4286_v40, %s3529_s14 }
 0x1f7   : > { %5000 = vst [vmem:[#allocation9_spill] sm:$0xff] %v4292_v53  ;;  %1688 = vrot.lane.b32.xlu0 %v4290_v60, %s3529_s14 }
 0x1fa   : > { %1690 = vrot.lane.b32.xlu1 %v4288_v5, %s3529_s14 }
 0x1fb   : > { %1692 = vrot.lane.b32.xlu0 %v4292_v53, %s3529_s14 }
 0x1fe   : > { %1748 = vrot.lane.b32.xlu1 %v4286_v40, %s3530_s15 }
 0x1ff   : > { %1750 = vrot.lane.b32.xlu0 %v4290_v60, %s3530_s15 }
 0x202   : > { %1752 = vrot.lane.b32.xlu1 %v4288_v5, %s3530_s15 }
 0x203   : > { %1754 = vrot.lane.b32.xlu0 %v4292_v53, %s3530_s15 }
 0x206   : > { %1800 = vrot.lane.b32.xlu1 %v4286_v40, %s3531_s16 }
 0x207   : > { %1802 = vrot.lane.b32.xlu0 %v4290_v60, %s3531_s16 }
 0x20a   : > { %1804 = vrot.lane.b32.xlu1 %v4288_v5, %s3531_s16 }
 0x20b   : > { %1806 = vrot.lane.b32.xlu0 %v4292_v53, %s3531_s16  ;;  %s242_s16 = sand.u32 1, %s3519_s22  }
 0x20e   : > { %1840 = vrot.lane.b32.xlu1 %v4286_v40, %s3532_s17 }
 0x20f   : > { %1842 = vrot.lane.b32.xlu0 %v4290_v60, %s3532_s17 }
 0x212   : > { %1844 = vrot.lane.b32.xlu1 %v4288_v5, %s3532_s17 }
 0x213   : > { %1846 = vrot.lane.b32.xlu0 %v4292_v53, %s3532_s17 }
 0x216   : > { %1904 = vrot.lane.b32.xlu1 %v4286_v40, %s3533_s18 }
 0x217   : > { %1906 = vrot.lane.b32.xlu0 %v4290_v60, %s3533_s18 }
 0x21a   : > { %1908 = vrot.lane.b32.xlu1 %v4288_v5, %s3533_s18 }
 0x21b   : > { %1910 = vrot.lane.b32.xlu0 %v4292_v53, %s3533_s18 }
 0x21e   : > { %1944 = vrot.lane.b32.xlu1 %v4286_v40, %s3534_s19 }
 0x21f   : > { %1946 = vrot.lane.b32.xlu0 %v4290_v60, %s3534_s19 }
 0x222   : > { %1948 = vrot.lane.b32.xlu1 %v4288_v5, %s3534_s19 }
 0x223   : > { %1950 = vrot.lane.b32.xlu0 %v4292_v53, %s3534_s19  ;;  %s3309_s19 = sshll.u32 %s3596_s25, 9  ;;  %s4921_s25 = scalar_lea.sflag [#allocation4], %s242_s16 }
 0x224   : > { %s4917_s12 = scalar_lea.hbm %s4969_s6, %s3309_s19 }
 0x226   : > { %1984 = vrot.lane.b32.xlu1 %v4286_v40, %s3535_s20 }
 0x227   : > { %1986 = vrot.lane.b32.xlu0 %v4290_v60, %s3535_s20 }
 0x22a   : > { %1988 = vrot.lane.b32.xlu1 %v4288_v5, %s3535_s20 }
 0x22b   : > { %1990 = vrot.lane.b32.xlu0 %v4292_v53, %s3535_s20 }
 0x22e   : > { %2024 = vrot.lane.b32.xlu1 %v4286_v40, %s3536_s29 }
 0x22f   : > { %2026 = vrot.lane.b32.xlu0 %v4290_v60, %s3536_s29 }
 0x232   : > { %2028 = vrot.lane.b32.xlu1 %v4288_v5, %s3536_s29 }
 0x233   : > { %2030 = vrot.lane.b32.xlu0 %v4292_v53, %s3536_s29  ;;  %s3469_s29 = sshll.u32 %s3538_s28, 4  ;;  %s3470_s29 = int_to_ptr.vmem [resolvable:$false] %s3469_s29 }
 0x234   : > { %s3471_s9 = scalar_lea.vmem %s3470_s29, 1024 }
 0x236   : > { %3040 = vperm.xlu1 %3392, %v3036_v62  }
 0x237   : > { %3045 = vperm.xlu0 %3391, %v3037_v7  }
 0x268   : > { %v1687_v9 = vpop.permute.xlu1 %1686 }
 0x269   : > { %v1689_v16 = vpop.permute.xlu0 %1688 }
 0x26a   : > { %v4387_v27 = vsel %vm293_vm1, %v1687_v9, %v1689_v16 }
 0x26b   : > { %v2167_v20 = vmul.bf16 %v2151_v61, %v4387_v27 }
 0x26c   : > { %v1691_v28 = vpop.permute.xlu1 %1690 }
 0x26d   : > { %v4400_v24 = vsel %vm293_vm1, %v1689_v16, %v1691_v28  ;;  %2431 = vmatprep.subr.bf16.mxu0 %v2167_v20  ;;  %v1693_v26 = vpop.permute.xlu0 %1692 }
 0x26e   : > { %v4404_v59 = vsel %vm293_vm1, %v1691_v28, %v1693_v26  ;;  %v4408_v33 = vsel %vm293_vm1, %v1693_v26, %v1687_v9  ;;  %v2168_v55 = vmul.bf16 %v2158_v29, %v4400_v24  ;;  %v2237_v28 = vrot.slane %v4414_v19, %v3779_v48 }
 0x26f   : > { %v2166_v41 = vmul.bf16 %v2144_v51, %v4408_v33  ;;  %v2169_v21 = vmul.bf16 %v2165_v39, %v4404_v59  ;;  %v2241_v51 = vrot.slane %v4391_v18, %v3779_v48  ;;  %v2245_v26 = vrot.slane %v4419_v58, %v3779_v48 }
 0x270   : > { %v1749_v13 = vpop.permute.xlu1 %1748 }
 0x271   : > { %2432 = vmatpush1.bf16.msra.mxu0 %v2166_v41  ;;  %2474 = vmatprep.subr.bf16.mxu1 %v2169_v21  ;;  %v1751_v47 = vpop.permute.xlu0 %1750 }
 0x272   : > { %v4423_v50 = vsel %vm356_vm2, %v1749_v13, %v1751_v47  ;;  %2475 = vmatpush1.bf16.msra.mxu1 %v2168_v55 }
 0x273   : > { %v2203_v43 = vmul.bf16 %v2187_v6, %v4423_v50 }
 0x274   : > { %v1753_v1 = vpop.permute.xlu1 %1752 }
 0x275   : > { %v4434_v35 = vsel %vm356_vm2, %v1751_v47, %v1753_v1  ;;  %2433 = vmatprep.subr.bf16.mxu0 %v2203_v43  ;;  %v1755_v32 = vpop.permute.xlu0 %1754 }
 0x276   : > { %v4438_v11 = vsel %vm356_vm2, %v1753_v1, %v1755_v32  ;;  %v4442_v45 = vsel %vm356_vm2, %v1755_v32, %v1749_v13  ;;  %v2204_v31 = vmul.bf16 %v2194_v0, %v4434_v35  ;;  %v2273_v1 = vrot.slane %v4419_v58, %v3866_v52 }
 0x277   : > { %v2202_v30 = vmul.bf16 %v2180_v42, %v4442_v45  ;;  %v2205_v44 = vmul.bf16 %v2201_v10, %v4438_v11  ;;  %v2269_v32 = vrot.slane %v4391_v18, %v3866_v52 }
 0x278   : > { %v1801_v36 = vpop.permute.xlu1 %1800 }
 0x279   : > { %2434 = vmatpush1.bf16.msra.mxu0 %v2202_v30  ;;  %2476 = vmatprep.subr.bf16.mxu1 %v2205_v44  ;;  %v1803_v57 = vpop.permute.xlu0 %1802  ;;  %v2265_v30 = vrot.slane %v4414_v19, %v3866_v52 }
 0x27a   : > { %v4451_v62 = vsel %vm409_vm3, %v1801_v36, %v1803_v57  ;;  %2477 = vmatpush1.bf16.msra.mxu1 %v2204_v31 }
 0x27b   : > { %v2227_v7 = vmul.bf16 %v2217_v63, %v4451_v62  ;;  %v2277_v63 = vrot.slane %v4416_v37, %v3866_v52 }
 0x27c   : > { %v1805_v46 = vpop.permute.xlu1 %1804 }
 0x27d   : > { %v4462_v56 = vsel %vm409_vm3, %v1803_v57, %v1805_v46  ;;  %2435 = vmatprep.subr.bf16.mxu0 %v2227_v7  ;;  %v1807_v22 = vpop.permute.xlu0 %1806 }
 0x27e   : > { %v4466_v49 = vsel %vm409_vm3, %v1805_v46, %v1807_v22  ;;  %v4470_v61 = vsel %vm409_vm3, %v1807_v22, %v1801_v36  ;;  %v2228_v20 = vmul.bf16 %v2221_v34, %v4462_v56 }
 0x27f   : > { %v2226_v9 = vmul.bf16 %v2213_v8, %v4470_v61  ;;  %v2229_v16 = vmul.bf16 %v2225_v25, %v4466_v49 }
 0x280   : > { %v1841_v39 = vpop.permute.xlu1 %1840 }
 0x281   : > { %2436 = vmatpush1.bf16.msra.mxu0 %v2226_v9  ;;  %2478 = vmatprep.subr.bf16.mxu1 %v2229_v16  ;;  %v1843_v15 = vpop.permute.xlu0 %1842 }
 0x282   : > { %v4479_v2 = vsel %vm450_vm4, %v1841_v39, %v1843_v15  ;;  %2479 = vmatpush1.bf16.msra.mxu1 %v2228_v20  ;;  %v2293_v20 = vrot.slane %v4375_v54, %v3900_v12 }
 0x283   : > { %v2251_v29 = vmul.bf16 %v2241_v51, %v4479_v2  ;;  %v2297_v51 = vrot.slane %v4383_v17, %v3900_v12 }
 0x284   : > { %v1845_v6 = vpop.permute.xlu1 %1844 }
 0x285   : > { %v4490_v41 = vsel %vm450_vm4, %v1843_v15, %v1845_v6  ;;  %2437 = vmatprep.subr.bf16.mxu0 %v2251_v29  ;;  %v1847_v21 = vpop.permute.xlu0 %1846  ;;  %v2301_v29 = vrot.slane %v4381_v4, %v3900_v12 }
 0x286   : > { %v4494_v55 = vsel %vm450_vm4, %v1845_v6, %v1847_v21  ;;  %v4498_v13 = vsel %vm450_vm4, %v1847_v21, %v1841_v39  ;;  %v2252_v42 = vmul.bf16 %v2245_v26, %v4490_v41  ;;  %v2289_v39 = vrot.slane %v4377_v23, %v3900_v12 }
 0x287   : > { %v2250_v47 = vmul.bf16 %v2237_v28, %v4498_v13  ;;  %v2253_v43 = vmul.bf16 %v2249_v3, %v4494_v55 }
 0x288   : > { %v1905_v10 = vpop.permute.xlu1 %1904 }
 0x289   : > { %2438 = vmatpush1.bf16.msra.mxu0 %v2250_v47  ;;  %2480 = vmatprep.subr.bf16.mxu1 %v2253_v43  ;;  %v1907_v0 = vpop.permute.xlu0 %1906  ;;  %v3258_v43 = vld [vmem:[%s4964_s1 + $0x38] sm:$0x11] }
 0x28a   : > { %2439 = vmatprep.subr.bf16.mxu0 %v4290_v60  ;;  %2481 = vmatpush1.bf16.msra.mxu1 %v2252_v42  ;;  %v4515_v31 = vsel %vm515_vm5, %v1905_v10, %v1907_v0 }
 0x28b   : > { %2482 = vmatprep.subr.bf16.mxu1 %v4292_v53  ;;  %5002 = vst [vmem:[#allocation10_spill] sm:$0xff] %v4515_v31  ;;  %v2278_v46 = vmul.bf16 %v2265_v30, %v4515_v31  ;;  %v2317_v30 = vrot.slane %v4391_v18, %v3900_v12 }
 0x28c   : > { %v1909_v44 = vpop.permute.xlu1 %1908 }
 0x28d   : > { %v4519_v36 = vsel %vm515_vm5, %v1907_v0, %v1909_v44  ;;  %2440 = vmatpush1.bf16.msra.mxu0 %v4286_v40  ;;  %v1911_v57 = vpop.permute.xlu0 %1910  ;;  %v1678_v0 = vld [vmem:[%s4964_s1] sm:$0xff] }
 0x28e   : > { %v4524_v7 = vsel %vm515_vm5, %v1909_v44, %v1911_v57  ;;  %v4528_v8 = vsel %vm515_vm5, %v1911_v57, %v1905_v10  ;;  %2483 = vmatpush1.bf16.msra.mxu1 %v4288_v5  ;;  %v2279_v34 = vmul.bf16 %v2269_v32, %v4519_v36  ;;  %v3257_v10 = vld [vmem:[%s4964_s1 + $0x30] sm:$0x11]  ;;  %v2321_v32 = vrot.slane %v4419_v58, %v3900_v12 }
 0x28f   : > { %5003 = vst [vmem:[#allocation7_spill] sm:$0xff] %v4524_v7  ;;  %5004 = vst [vmem:[#allocation6_spill] sm:$0xff] %v4528_v8  ;;  %v2280_v25 = vmul.bf16 %v2273_v1, %v4524_v7  ;;  %v2281_v9 = vmul.bf16 %v2277_v63, %v4528_v8  ;;  %v1679_v1 = vld [vmem:[%s4964_s1 + $0x8] sm:$0xff]  ;;  %v3265_v44 = vcombine.low %v3258_v43, %v3258_v43 }
 0x290   : > { %v1945_v22 = vpop.permute.xlu1 %1944  ;;  %2441 = vmatprep.subr.bf16.mxu0 %v2279_v34  ;;  %v3264_v63 = vcombine.high %v3257_v10, %v3257_v10  ;;  %v2313_v57 = vrot.slane %v4414_v19, %v3900_v12  ;;  %v2325_v34 = vrot.slane %v4416_v37, %v3900_v12 }
 0x291   : > { %v1947_v16 = vpop.permute.xlu0 %1946  ;;  %2442 = vmatpush1.bf16.msra.mxu0 %v2278_v46  ;;  %2484 = vmatprep.subr.bf16.mxu1 %v2281_v9  ;;  %v3263_v46 = vcombine.low %v3257_v10, %v3257_v10 }
 0x292   : > { %2485 = vmatpush1.bf16.msra.mxu1 %v2280_v25  ;;  %v4545_v28 = vsel %vm556_vm6, %v1945_v22, %v1947_v16 }
 0x293   : > { %v2302_v6 = vmul.bf16 %v2289_v39, %v4545_v28 }
 0x294   : > { %v1949_v15 = vpop.permute.xlu1 %1948 }
 0x295   : > { %v4549_v3 = vsel %vm556_vm6, %v1947_v16, %v1949_v15  ;;  %v1951_v26 = vpop.permute.xlu0 %1950  ;;  %v3248_v16 = vcombine.high %v1678_v0, %v1678_v0 }
 0x296   : > { %v4553_v17 = vsel %vm556_vm6, %v1949_v15, %v1951_v26  ;;  %v4557_v54 = vsel %vm556_vm6, %v1951_v26, %v1945_v22  ;;  %v2303_v4 = vmul.bf16 %v2293_v20, %v4549_v3  ;;  %v3266_v22 = vcombine.high %v3258_v43, %v3258_v43 }
 0x297   : > { %v2304_v23 = vmul.bf16 %v2297_v51, %v4553_v17  ;;  %v2305_v47 = vmul.bf16 %v2301_v29, %v4557_v54  ;;  %v3247_v51 = vcombine.low %v1678_v0, %v1678_v0  ;;  %v3250_v20 = vcombine.high %v1679_v1, %v1679_v1 }
 0x298   : > { %v1985_v21 = vpop.permute.xlu1 %1984  ;;  %2443 = vmatprep.subr.bf16.mxu0 %v2303_v4  ;;  %v2359_v29 = vpack.i.b16 %v3265_v44, %v3265_v44  ;;  %v2352_v26 = vpack.i.b16 %v3264_v63, %v3264_v63  ;;  %v2366_v43 = vpack.i.b16 %v3266_v22, %v3266_v22  ;;  %v1771_v10 = vshrl.u32 %v3248_v16, 16 }
 0x299   : > { %v1987_v42 = vpop.permute.xlu0 %1986  ;;  %2444 = vmatpush1.bf16.msra.mxu0 %v2302_v6  ;;  %2486 = vmatprep.subr.bf16.mxu1 %v2305_v47  ;;  %v2345_v47 = vpack.i.b16 %v3263_v46, %v3263_v46  ;;  %v3249_v0 = vcombine.low %v1679_v1, %v1679_v1  ;;  %v4609_v63 = vpack.i.b16 %v3250_v20, %v3250_v20 }
 0x29a   : > { %2487 = vmatpush1.bf16.msra.mxu1 %v2304_v23  ;;  %v4585_v9 = vsel %vm597_vm7, %v1985_v21, %v1987_v42  ;;  %v2357_v44 = vrot.slane %v2352_v26, %v3722_v14  ;;  %v2371_v1 = vrot.slane %v2366_v43, %v3722_v14 }
 0x29b   : > { %v2326_v23 = vmul.bf16 %v2313_v57, %v4585_v9  ;;  %v1778_v57 = vshrl.u32 %v3249_v0, 16  ;;  %v2350_v46 = vrot.slane %v2345_v47, %v3722_v14  ;;  %v1739_v26 = vrot.slane %v4609_v63, %v3722_v14 }
 0x29c   : > { %v1989_v25 = vpop.permute.xlu1 %1988 }
 0x29d   : > { %v4589_v58 = vsel %vm597_vm7, %v1987_v42, %v1989_v25  ;;  %v1991_v18 = vpop.permute.xlu0 %1990 }
 0x29e   : > { %v4593_v19 = vsel %vm597_vm7, %v1989_v25, %v1991_v18  ;;  %v4597_v37 = vsel %vm597_vm7, %v1991_v18, %v1985_v21  ;;  %v2327_v15 = vmul.bf16 %v2317_v30, %v4589_v58  ;;  %v4603_v21 = vpack.i.b16 %v3248_v16, %v3248_v16 }
 0x29f   : > { %v2328_v39 = vmul.bf16 %v2321_v32, %v4593_v19  ;;  %v2329_v6 = vmul.bf16 %v2325_v34, %v4597_v37  ;;  %v1785_v32 = vshrl.u32 %v3250_v20, 16  ;;  %v4605_v25 = vpack.i.b16 %v3247_v51, %v3247_v51 }
 0x2a0   : > { %v2025_v4 = vpop.permute.xlu1 %2024  ;;  %2445 = vmatprep.subr.bf16.mxu0 %v2327_v15  ;;  %v2364_v30 = vrot.slane %v2359_v29, %v3722_v14  ;;  %v1764_v34 = vshrl.u32 %v3247_v51, 16  ;;  %v1725_v20 = vrot.slane %v4603_v21, %v3722_v14  ;;  %v4623_v15 = vpack.i.b16 %v1771_v10, %v1771_v10 }
 0x2a1   : > { %v2027_v42 = vpop.permute.xlu0 %2026  ;;  %2446 = vmatpush1.bf16.msra.mxu0 %v2326_v23  ;;  %2488 = vmatprep.subr.bf16.mxu1 %v2329_v6  ;;  %v4635_v23 = vpack.i.b16 %v1785_v32, %v1785_v32  ;;  %v4637_v6 = vpack.i.b16 %v3249_v0, %v3249_v0  ;;  %v4649_v32 = vpack.i.b16 %v1778_v57, %v1778_v57 }
 0x2a2   : > { %2489 = vmatpush1.bf16.msra.mxu1 %v2328_v39  ;;  %v4615_v18 = vsel %vm638_vm8, %v2025_v4, %v2027_v42  ;;  %v4643_v10 = vpack.i.b16 %v1764_v34, %v1764_v34  ;;  %v1741_v0 = vmul.bf16 %v1725_v20, %v4408_v33  ;;  %v1743_v34 = vmul.bf16 %v1739_v26, %v4400_v24 }
 0x2a3   : > { %v2372_v38 = vmul.bf16 %v2350_v46, %v4615_v18  ;;  %v1791_v46 = vrot.slane %v4635_v23, %v3722_v14  ;;  %v1784_v26 = vrot.slane %v4649_v32, %v3722_v14 }
 0x2a4   : > { %v2029_v22 = vpop.permute.xlu1 %2028 }
 0x2a5   : > { %v4619_v16 = vsel %vm638_vm8, %v2027_v42, %v2029_v22  ;;  %v2031_v39 = vpop.permute.xlu0 %2030  ;;  %v1718_v42 = vrot.slane %v4605_v25, %v3722_v14 }
 0x2a6   : > { %v4627_v51 = vsel %vm638_vm8, %v2029_v22, %v2031_v39  ;;  %v4631_v29 = vsel %vm638_vm8, %v2031_v39, %v2025_v4  ;;  %v2373_v43 = vmul.bf16 %v2357_v44, %v4619_v16  ;;  %v1732_v22 = vrot.slane %v4637_v6, %v3722_v14  ;;  %v3457_v39 = vld [vmem:[%s4966_s3 + $0x4] ss:$8 sps:$4 sm:$0xff]  }
 0x2a7   : > { %v2374_v47 = vmul.bf16 %v2364_v30, %v4627_v51  ;;  %v2375_v4 = vmul.bf16 %v2371_v1, %v4631_v29  ;;  %v3452_v30 = vld [vmem:[%s4966_s3 + $0x10] ss:$8 sps:$4 sm:$0xff]   ;;  %v1777_v44 = vrot.slane %v4623_v15, %v3722_v14  ;;  %v1740_v57 = vmul.bf16 %v1718_v42, %v4404_v59 }
 0x2a8   : > { %2447 = vmatprep.subr.bf16.mxu0 %v2373_v43  ;;  %v1770_v1 = vrot.slane %v4643_v10, %v3722_v14  ;;  %v1742_v20 = vmul.bf16 %v1732_v22, %v4387_v27  ;;  %v1795_v42 = vmul.bf16 %v1791_v46, %v4434_v35  ;;  %v1819_v22 = vrot.slane %v4605_v25, %v3779_v48 }
 0x2a9   : > { %2448 = vmatpush1.bf16.msra.mxu0 %v2372_v38  ;;  %2490 = vmatprep.subr.bf16.mxu1 %v2375_v4  ;;  %v1793_v43 = vmul.bf16 %v1777_v44, %v4442_v45  ;;  %v1831_v38 = vrot.slane %v4609_v63, %v3779_v48 }
 0x2aa   : > { %2491 = vmatpush1.bf16.msra.mxu1 %v2374_v47  ;;  %2529 = vmatprep.subr.bf16.mxu0 %v1741_v0  ;;  %v1823_v47 = vrot.slane %v4603_v21, %v3779_v48  ;;  %v1792_v4 = vmul.bf16 %v1770_v1, %v4438_v11  ;;  %v1794_v0 = vmul.bf16 %v1784_v26, %v4423_v50 }
 0x2ab   : > { %2572 = vmatprep.subr.bf16.mxu1 %v1743_v34  ;;  %v1863_v34 = vrot.slane %v4623_v15, %v3779_v48  ;;  %v1835_v46 = vmul.bf16 %v1831_v38, %v4462_v56  ;;  %v1832_v1 = vmul.bf16 %v1819_v22, %v4466_v49  ;;  %v1895_v38 = vrot.slane %v4609_v63, %v3866_v52 }
 0x2ac   : > { %2464 = vmatmul.mubr.bf16.vlgmr.msra.gmra.mrb[4].mxu0 %v3452_v30  ;;  %v1833_v44 = vmul.bf16 %v1823_v47, %v4470_v61  ;;  %v1887_v47 = vrot.slane %v4603_v21, %v3866_v52  ;;  %v1883_v22 = vrot.slane %v4605_v25, %v3866_v52 }
 0x2ad   : > { %2530 = vmatpush1.bf16.msra.mxu0 %v1740_v57  ;;  %2507 = vmatmul.mubr.bf16.vlgmr.msra.gmra.mrb[4].mxu1 %v3452_v30  ;;  %v1827_v30 = vrot.slane %v4637_v6, %v3779_v48  ;;  %v1871_v57 = vrot.slane %v4635_v23, %v3779_v48 }
 0x2ae   : > { %2531 = vmatprep.subr.bf16.mxu0 %v1793_v43  ;;  %2573 = vmatpush1.bf16.msra.mxu1 %v1742_v20  ;;  %v1859_v20 = vrot.slane %v4643_v10, %v3779_v48  ;;  %v1867_v43 = vrot.slane %v4649_v32, %v3779_v48 }
 0x2af   : > { %2574 = vmatprep.subr.bf16.mxu1 %v1795_v42  ;;  %3275 = vmatprep.mubr.msk.bf16.mxu0 %vm1036_vm0, %v3457_v39  ;;  %v1834_v26 = vmul.bf16 %v1827_v30, %v4451_v62  ;;  %v1875_v42 = vmul.bf16 %v1871_v57, %v4490_v41  ;;  %v1899_v57 = vmul.bf16 %v1895_v38, %v4288_v5 }
 0x2b0   : > { %3276 = vmatprep.mubr.msk.bf16.mxu1 %vm1036_vm0, %v3457_v39  ;;  %v1873_v39 = vmul.bf16 %v1863_v34, %v4498_v13  ;;  %v1874_v30 = vmul.bf16 %v1867_v43, %v4479_v2  ;;  %v1927_v34 = vrot.slane %v4623_v15, %v3866_v52  ;;  %v1923_v43 = vrot.slane %v4643_v10, %v3866_v52 }
 0x2b1   : > { %2532 = vmatpush1.bf16.msra.mxu0 %v1792_v4  ;;  %v1872_v4 = vmul.bf16 %v1859_v20, %v4494_v55  ;;  %v1681_v20 = vld [vmem:[%s4964_s1 + $0x18] sm:$0x11] }
 0x2b2   : > { %2533 = vmatprep.subr.bf16.mxu0 %v1833_v44  ;;  %2575 = vmatpush1.bf16.msra.mxu1 %v1794_v0  ;;  %v1891_v0 = vrot.slane %v4637_v6, %v3866_v52  ;;  %v1897_v44 = vmul.bf16 %v1887_v47, %v4286_v40  ;;  %v1937_v38 = vmul.bf16 %v1927_v34, %v4515_v31  ;;  %v3278_v34 = vld [vmem:[%s4964_s1 + $0x48] sm:$0xff] }
 0x2b3   : > { %2576 = vmatprep.subr.bf16.mxu1 %v1835_v46  ;;  %v1680_v46 = vld [vmem:[%s4964_s1 + $0x10] sm:$0x11]  ;;  %v1975_v40 = vrot.slane %v4609_v63, %v3900_v12  ;;  %v2007_v63 = vrot.slane %v4623_v15, %v3900_v12 }
 0x2b4   : > { %v1898_v47 = vmul.bf16 %v1891_v0, %v4290_v60 }
 0x2b5   : > { %2534 = vmatpush1.bf16.msra.mxu0 %v1832_v1  ;;  %v1935_v1 = vrot.slane %v4635_v23, %v3866_v52 }
 0x2b6   : > { %2535 = vmatprep.subr.bf16.mxu0 %v1873_v39  ;;  %2577 = vmatpush1.bf16.msra.mxu1 %v1834_v26  ;;  %v3277_v26 = vld [vmem:[%s4964_s1 + $0x40] sm:$0xff]  ;;  %v1896_v39 = vmul.bf16 %v1883_v22, %v4292_v53  ;;  %v1971_v22 = vrot.slane %v4637_v6, %v3900_v12  ;;  %v3253_v6 = vcombine.low %v1681_v20, %v1681_v20 }
 0x2b7   : > { %2578 = vmatprep.subr.bf16.mxu1 %v1875_v42  ;;  %v1931_v42 = vrot.slane %v4649_v32, %v3866_v52  ;;  %v3282_v0 = vcombine.high %v3277_v26, %v3277_v26  ;;  %v3281_v53 = vcombine.low %v3277_v26, %v3277_v26  ;;  %v2017_v26 = vmul.bf16 %v2007_v63, %v4585_v9 }
 0x2b9   : > { %2536 = vmatpush1.bf16.msra.mxu0 %v1872_v4  ;;  %v1967_v4 = vrot.slane %v4603_v21, %v3900_v12  ;;  %v1936_v21 = vmul.bf16 %v1923_v43, %v4528_v8  ;;  %v1938_v31 = vmul.bf16 %v1931_v42, %v4519_v36  ;;  %v2015_v43 = vrot.slane %v4635_v23, %v3900_v12 }
 0x2ba   : > { %2537 = vmatprep.subr.bf16.mxu0 %v1897_v44  ;;  %2579 = vmatpush1.bf16.msra.mxu1 %v1874_v30  ;;  %v3252_v30 = vcombine.high %v1680_v46, %v1680_v46  ;;  %v1939_v44 = vmul.bf16 %v1935_v1, %v4524_v7  ;;  %v3251_v1 = vcombine.low %v1680_v46, %v1680_v46 }
 0x2bb   : > { %2580 = vmatprep.subr.bf16.mxu1 %v1899_v57  ;;  %v3254_v57 = vcombine.high %v1681_v20, %v1681_v20  ;;  %v1979_v7 = vmul.bf16 %v1975_v40, %v4553_v17  ;;  %v3284_v46 = vcombine.high %v3278_v34, %v3278_v34  ;;  %v2011_v20 = vrot.slane %v4649_v32, %v3900_v12 }
 0x2bc   : > { %v2003_v42 = vrot.slane %v4643_v10, %v3900_v12  ;;  %v1978_v40 = vmul.bf16 %v1971_v22, %v4549_v3  ;;  %v2065_v23 = vpack.i.b16 %v3253_v6, %v3253_v6  ;;  %v2665_v10 = vshrl.u32 %v3281_v53, 16 }
 0x2bd   : > { %2538 = vmatpush1.bf16.msra.mxu0 %v1896_v39  ;;  %v1963_v39 = vrot.slane %v4605_v25, %v3900_v12  ;;  %v2072_v8 = vpack.i.b16 %v3254_v57, %v3254_v57  ;;  %v3283_v25 = vcombine.low %v3278_v34, %v3278_v34  ;;  %v4759_v34 = vpack.i.b16 %v3282_v0, %v3282_v0 }
 0x2be   : > { %2539 = vmatprep.subr.bf16.mxu0 %v1937_v38  ;;  %2581 = vmatpush1.bf16.msra.mxu1 %v1898_v47  ;;  %v1977_v47 = vmul.bf16 %v1967_v4, %v4545_v28  ;;  %v2058_v38 = vpack.i.b16 %v3252_v30, %v3252_v30  ;;  %v2051_v4 = vpack.i.b16 %v3251_v1, %v3251_v1  ;;  %v2686_v32 = vshrl.u32 %v3284_v46, 16 }
 0x2bf   : > { %2582 = vmatprep.subr.bf16.mxu1 %v1939_v44  ;;  %v2672_v44 = vshrl.u32 %v3282_v0, 16  ;;  %v1976_v15 = vmul.bf16 %v1963_v39, %v4557_v54  ;;  %v2077_v57 = vrot.slane %v2072_v8, %v3722_v14  ;;  %v2679_v22 = vshrl.u32 %v3283_v25, 16 }
 0x2c0   : > { %v2063_v30 = vrot.slane %v2058_v38, %v3722_v14  ;;  %v2016_v39 = vmul.bf16 %v2003_v42, %v4597_v37  ;;  %v2056_v1 = vrot.slane %v2051_v4, %v3722_v14  ;;  %v2642_v63 = vrot.slane %v4759_v34, %v3722_v14 }
 0x2c1   : > { %2540 = vmatpush1.bf16.msra.mxu0 %v1936_v21  ;;  %v4761_v21 = vpack.i.b16 %v3281_v53, %v3281_v53  ;;  %v2018_v8 = vmul.bf16 %v2011_v20, %v4589_v58  ;;  %v2070_v0 = vrot.slane %v2065_v23, %v3722_v14  ;;  %v4772_v53 = vpack.i.b16 %v2672_v44, %v2672_v44  ;;  %v3459_v23 = vld [vmem:[%s4966_s3] ss:$8 sps:$4 sm:$0xff]  }
 0x2c2   : > { %2541 = vmatprep.subr.bf16.mxu0 %v1977_v47  ;;  %2583 = vmatpush1.bf16.msra.mxu1 %v1938_v31  ;;  %v2019_v31 = vmul.bf16 %v2015_v43, %v4593_v19  ;;  %v2079_v6 = vmul.bf16 %v2063_v30, %v4615_v18  ;;  %v4774_v47 = vpack.i.b16 %v3283_v25, %v3283_v25 }
 0x2c3   : > { %2584 = vmatprep.subr.bf16.mxu1 %v1979_v7  ;;  %v4763_v7 = vpack.i.b16 %v3284_v46, %v3284_v46  ;;  %v2081_v38 = vmul.bf16 %v2077_v57, %v4627_v51  ;;  %v4779_v46 = vpack.i.b16 %v2686_v32, %v2686_v32  ;;  %v4785_v44 = vpack.i.b16 %v2665_v10, %v2665_v10  ;;  %v3462_v32 = vld [vmem:[%s4966_s3 + $0x24] ss:$8 sps:$4 sm:$0xff]  }
 0x2c4   : > { %v2649_v20 = vrot.slane %v4774_v47, %v3722_v14  ;;  %v2078_v25 = vmul.bf16 %v2056_v1, %v4631_v29  ;;  %v4788_v42 = vpack.i.b16 %v2679_v22, %v2679_v22  ;;  %v2080_v4 = vmul.bf16 %v2070_v0, %v4619_v16 }
 0x2c5   : > { %2542 = vmatpush1.bf16.msra.mxu0 %v1976_v15  ;;  %v2656_v43 = vrot.slane %v4763_v7, %v3722_v14  ;;  %v2635_v15 = vrot.slane %v4761_v21, %v3722_v14  ;;  %v2716_v1 = vrot.slane %v4763_v7, %v3779_v48  ;;  %v2732_v0 = vrot.slane %v4772_v53, %v3779_v48 }
 0x2c6   : > { %2543 = vmatprep.subr.bf16.mxu0 %v2017_v26  ;;  %2585 = vmatpush1.bf16.msra.mxu1 %v1978_v40  ;;  %v2658_v40 = vmul.bf16 %v2642_v63, %v4400_v24  ;;  %v2678_v26 = vrot.slane %v4772_v53, %v3722_v14  ;;  %v2671_v24 = vrot.slane %v4785_v44, %v3722_v14 }
 0x2c7   : > { %2586 = vmatprep.subr.bf16.mxu1 %v2019_v31  ;;  %v2660_v30 = vmul.bf16 %v2656_v43, %v4408_v33  ;;  %v2692_v31 = vrot.slane %v4779_v46, %v3722_v14  ;;  %v2657_v57 = vmul.bf16 %v2635_v15, %v4387_v27  ;;  %v2659_v10 = vmul.bf16 %v2649_v20, %v4404_v59 }
 0x2c8   : > { %v2685_v33 = vrot.slane %v4788_v42, %v3722_v14  ;;  %v2694_v22 = vmul.bf16 %v2678_v26, %v4434_v35  ;;  %v2693_v59 = vmul.bf16 %v2671_v24, %v4423_v50  ;;  %v2704_v63 = vrot.slane %v4761_v21, %v3779_v48 }
 0x2c9   : > { %2544 = vmatpush1.bf16.msra.mxu0 %v2016_v39  ;;  %v2708_v39 = vrot.slane %v4759_v34, %v3779_v48  ;;  %v2696_v27 = vmul.bf16 %v2692_v31, %v4442_v45  ;;  %v2720_v50 = vmul.bf16 %v2716_v1, %v4470_v61  ;;  %v2736_v43 = vrot.slane %v4788_v42, %v3779_v48  ;;  %v5006_v31 = vld [vmem:[#allocation9_spill] sm:$0xff] }
 0x2ca   : > { %2545 = vmatprep.subr.bf16.mxu0 %v2079_v6  ;;  %2587 = vmatpush1.bf16.msra.mxu1 %v2018_v8  ;;  %v2695_v35 = vmul.bf16 %v2685_v33, %v4438_v11  ;;  %v2712_v8 = vrot.slane %v4774_v47, %v3779_v48  ;;  %v2740_v6 = vrot.slane %v4779_v46, %v3779_v48 }
 0x2cb   : > { %2588 = vmatprep.subr.bf16.mxu1 %v2081_v38  ;;  %v2718_v45 = vmul.bf16 %v2708_v39, %v4462_v56  ;;  %v2717_v11 = vmul.bf16 %v2704_v63, %v4451_v62  ;;  %v2728_v38 = vrot.slane %v4785_v44, %v3779_v48  ;;  %v2742_v15 = vmul.bf16 %v2732_v0, %v4490_v41  ;;  %v5008_v39 = vld [vmem:[#allocation10_spill] sm:$0xff] }
 0x2cc   : > { %v2719_v56 = vmul.bf16 %v2712_v8, %v4466_v49  ;;  %v2756_v61 = vrot.slane %v4759_v34, %v3866_v52  ;;  %v2744_v20 = vmul.bf16 %v2740_v6, %v4498_v13  ;;  %v2764_v62 = vrot.slane %v4763_v7, %v3866_v52  ;;  %v5009_v8 = vld [vmem:[#allocation6_spill] sm:$0xff] }
 0x2cd   : > { %2546 = vmatpush1.bf16.msra.mxu0 %v2078_v25  ;;  %v2741_v25 = vmul.bf16 %v2728_v38, %v4479_v2  ;;  %v2752_v49 = vrot.slane %v4761_v21, %v3866_v52  ;;  %v2760_v48 = vrot.slane %v4774_v47, %v3866_v52  ;;  %v2743_v41 = vmul.bf16 %v2736_v43, %v4494_v55  ;;  %v5005_v2 = vld [vmem:[#allocation12_spill] sm:$0xff] }
 0x2ce   : > { %2589 = vmatpush1.bf16.msra.mxu1 %v2080_v4  ;;  %2942 = vmatprep.subr.bf16.mxu0 %v2658_v40  ;;  %v2766_v4 = vmul.bf16 %v2756_v61, %v4288_v5  ;;  %v2780_v13 = vrot.slane %v4772_v53, %v3866_v52  ;;  %v3279_v40 = vld [vmem:[%s4964_s1 + $0x50] sm:$0x11]  ;;  %v2788_v26 = vrot.slane %v4779_v46, %v3866_v52  ;;  %v3041_v61 = vpop.permute.xlu1 %3040 }
 0x2cf   : > { %2985 = vmatprep.subr.bf16.mxu1 %v2660_v30  ;;  %v3280_v30 = vld [vmem:[%s4964_s1 + $0x58] sm:$0x11]  ;;  %v2776_v5 = vrot.slane %v4785_v44, %v3866_v52  ;;  %v2765_v55 = vmul.bf16 %v2752_v49, %v4290_v60  ;;  %v2784_v24 = vrot.slane %v4788_v42, %v3866_v52  ;;  %v2804_v33 = vrot.slane %v4759_v34, %v3900_v12 }
 0x2d0   : > { %2562 = vmatmul.mubr.bf16.vlgmr.msra.gmra.mrb[4].mxu0 %v3459_v23  ;;  %v2812_v1 = vrot.slane %v4763_v7, %v3900_v12  ;;  %v2800_v60 = vrot.slane %v4761_v21, %v3900_v12  ;;  %v2808_v63 = vrot.slane %v4774_v47, %v3900_v12  ;;  %v3287_v34 = vcombine.low %v3280_v30, %v3280_v30 }
 0x2d1   : > { %2943 = vmatpush1.bf16.msra.mxu0 %v2657_v57  ;;  %2605 = vmatmul.mubr.bf16.vlgmr.msra.gmra.mrb[4].mxu1 %v3459_v23  ;;  %v2768_v23 = vmul.bf16 %v2764_v62, %v5005_v2  ;;  %v2767_v57 = vmul.bf16 %v2760_v48, %v5006_v31  ;;  %v2789_v52 = vmul.bf16 %v2776_v5, %v4519_v36  ;;  %v3059_v62 = vld [vmem:[%s3628_s13 + $0x18] sm:$0xff] }
 0x2d2   : > { %2944 = vmatprep.subr.bf16.mxu0 %v2694_v22  ;;  %2986 = vmatpush1.bf16.msra.mxu1 %v2659_v10  ;;  %v3286_v22 = vcombine.high %v3279_v40, %v3279_v40  ;;  %v2814_v0 = vmul.bf16 %v2804_v33, %v4553_v17  ;;  %v2828_v7 = vrot.slane %v4772_v53, %v3900_v12  ;;  %v3067_v33 = vunpack.c.h.bf16 %v3059_v62 }
 0x2d3   : > { %2987 = vmatprep.subr.bf16.mxu1 %v2696_v27  ;;  %3293 = vmatprep.mubr.msk.bf16.mxu0 %vm1036_vm0, %v3462_v32  ;;  %v2792_v27 = vmul.bf16 %v2788_v26, %v5008_v39  ;;  %v2816_v21 = vmul.bf16 %v2812_v1, %v4545_v28  ;;  %v2836_v36 = vrot.slane %v4779_v46, %v3900_v12 }
 0x2d4   : > { %3294 = vmatprep.mubr.msk.bf16.mxu1 %vm1036_vm0, %v3462_v32  ;;  %v5007_v32 = vld [vmem:[#allocation7_spill] sm:$0xff]  ;;  %v2813_v47 = vmul.bf16 %v2800_v60, %v4549_v3  ;;  %v2832_v17 = vrot.slane %v4788_v42, %v3900_v12  ;;  %v2815_v53 = vmul.bf16 %v2808_v63, %v4557_v54  ;;  %v2838_v28 = vmul.bf16 %v2828_v7, %v4593_v19 }
 0x2d5   : > { %2945 = vmatpush1.bf16.msra.mxu0 %v2693_v59  ;;  %v2790_v10 = vmul.bf16 %v2780_v13, %v5007_v32  ;;  %v3288_v59 = vcombine.high %v3280_v30, %v3280_v30  ;;  %v2840_v43 = vmul.bf16 %v2836_v36, %v4585_v9 }
 0x2d6   : > { %2946 = vmatprep.subr.bf16.mxu0 %v2718_v45  ;;  %2988 = vmatpush1.bf16.msra.mxu1 %v2695_v35  ;;  %v3285_v35 = vcombine.low %v3279_v40, %v3279_v40  ;;  %v2791_v45 = vmul.bf16 %v2784_v24, %v5009_v8  ;;  %v2839_v54 = vmul.bf16 %v2832_v17, %v4597_v37  ;;  %v3464_v37 = vld [vmem:[%s4966_s3 + $0x20] ss:$8 sps:$4 sm:$0xff]  }
 0x2d7   : > { %2989 = vmatprep.subr.bf16.mxu1 %v2720_v50  ;;  %v2863_v50 = vpack.i.b16 %v3286_v22, %v3286_v22  ;;  %v2877_v6 = vpack.i.b16 %v3288_v59, %v3288_v59 }
 0x2d8   : > { %v2856_v38 = vpack.i.b16 %v3285_v35, %v3285_v35 }
 0x2d9   : > { %2947 = vmatpush1.bf16.msra.mxu0 %v2717_v11  ;;  %v2824_v11 = vrot.slane %v4785_v44, %v3900_v12  ;;  %v2868_v46 = vrot.slane %v2863_v50, %v3722_v14  ;;  %v2882_v3 = vrot.slane %v2877_v6, %v3722_v14 }
 0x2da   : > { %2948 = vmatprep.subr.bf16.mxu0 %v2742_v15  ;;  %2990 = vmatpush1.bf16.msra.mxu1 %v2719_v56  ;;  %v2870_v56 = vpack.i.b16 %v3287_v34, %v3287_v34  ;;  %v2861_v12 = vrot.slane %v2856_v38, %v3722_v14 }
 0x2db   : > { %2991 = vmatprep.subr.bf16.mxu1 %v2744_v20  ;;  %v2837_v44 = vmul.bf16 %v2824_v11, %v4589_v58  ;;  %v2884_v42 = vmul.bf16 %v2868_v46, %v4627_v51  ;;  %v2886_v9 = vmul.bf16 %v2882_v3, %v4615_v18  ;;  %v3057_v51 = vld [vmem:[%s3628_s13 + $0x8] sm:$0xff]  ;;  %v3058_v18 = vld [vmem:[%s3628_s13 + $0x10] sm:$0xff] }
 0x2dc   : > { %v2875_v19 = vrot.slane %v2870_v56, %v3722_v14  ;;  %v2883_v58 = vmul.bf16 %v2861_v12, %v4619_v16  ;;  %v3056_v14 = vld [vmem:[%s3628_s13] sm:$0xff]  ;;  %v3064_v13 = vunpack.c.l.bf16 %v3058_v18  ;;  %v3063_v40 = vunpack.c.h.bf16 %v3057_v51  ;;  %s3192_s13 = sshll.u32 %s242_s16, 5 }
 0x2dd   : > { %2949 = vmatpush1.bf16.msra.mxu0 %v2741_v25  ;;  %v3060_v20 = vunpack.c.l.bf16 %v3056_v14  ;;  %v3046_v25 = vpop.permute.xlu0 %3045  ;;  %v3061_v49 = vunpack.c.h.bf16 %v3056_v14  ;;  %v3065_v5 = vunpack.c.h.bf16 %v3058_v18  ;;  %s244_s17 = scalar_lea.vmem [#allocation3], %s3192_s13 }
 0x2de   : > { %2950 = vmatprep.subr.bf16.mxu0 %v2766_v4  ;;  %2992 = vmatpush1.bf16.msra.mxu1 %v2743_v41  ;;  %v2885_v15 = vmul.bf16 %v2875_v19, %v4631_v29  ;;  %v3062_v29 = vunpack.c.l.bf16 %v3057_v51  ;;  %s3126_s18 = sshll.u32 %s244_s17, 4  ;;  %s4912_s18 = int_to_ptr.vmem [resolvable:$true] %s3126_s18 }
 0x2df   : > { %2993 = vmatprep.subr.bf16.mxu1 %v2768_v23  ;;  %s3465_s26 = scalar_lea.vmem %s4912_s18, 512  ;;  %p3472_p0 = scmp.lt.s32.totalorder %s4912_s18, %s3470_s29 }
 0x2e0   : > { %p3466_p11 = scmp.ne.s32.totalorder %s4912_s18, %s3465_s26  ;;  %p3473_p1 = scmp.lt.s32.totalorder %s3471_s9, %s3465_s26 }
 0x2e1   : > { %2951 = vmatpush1.bf16.msra.mxu0 %v2765_v55  ;;  %v3066_v55 = vunpack.c.l.bf16 %v3059_v62 }
 0x2e2   : > { %2952 = vmatprep.subr.bf16.mxu0 %v2790_v10  ;;  %2994 = vmatpush1.bf16.msra.mxu1 %v2767_v57  ;;  %p3467_p12 = pnand %p3466_p11, %p3613_p5  ;;  %p3474_p2 = por %p3473_p1, %p3472_p0 }
 0x2e3   : > { %2995 = vmatprep.subr.bf16.mxu1 %v2792_v27 }
 0x2e4   : > { %p3468_p13 = pneg %p3467_p12 }
 0x2e5   : > { %2953 = vmatpush1.bf16.msra.mxu0 %v2789_v52 }
 0x2e6   : > { %2954 = vmatprep.subr.bf16.mxu0 %v2814_v0  ;;  %2996 = vmatpush1.bf16.msra.mxu1 %v2791_v45  ;;  %p3475_p3 = pnand %p3474_p2, %p3468_p13 }
 0x2e7   : > { %2997 = vmatprep.subr.bf16.mxu1 %v2816_v21 }
 0x2e9   : > { %2955 = vmatpush1.bf16.msra.mxu0 %v2813_v47 }
 0x2ea   : > { %2956 = vmatprep.subr.bf16.mxu0 %v2838_v28  ;;  %2998 = vmatpush1.bf16.msra.mxu1 %v2815_v53 }
 0x2eb   : > { %2999 = vmatprep.subr.bf16.mxu1 %v2840_v43 }
 0x2ed   : > { %2957 = vmatpush1.bf16.msra.mxu0 %v2837_v44 }
 0x2ee   : > { %2958 = vmatprep.subr.bf16.mxu0 %v2884_v42  ;;  %3000 = vmatpush1.bf16.msra.mxu1 %v2839_v54 }
 0x2ef   : > { %3001 = vmatprep.subr.bf16.mxu1 %v2886_v9 }
 0x2f1   : > { %2959 = vmatpush1.bf16.msra.mxu0 %v2883_v58 }
 0x2f2   : > { %3002 = vmatpush1.bf16.msra.mxu1 %v2885_v15 }
 0x2f4   : > { %2975 = vmatmul.mubr.bf16.vlgmr.msra.gmra.mrb[4].mxu0 %v3464_v37 }
 0x2f5   : > { %3018 = vmatmul.mubr.bf16.vlgmr.msra.gmra.mrb[4].mxu1 %v3464_v37 }
 0x3c7   : > { %v2976_v16 = vpop.f32.mrb[4].mxu0 }
 0x3c8   : > { %v3048_v48 = vadd.f32 %v3041_v61, %v2976_v16  ;;  %v2978_v41 = vpop.f32.mrb[5].mxu0  ;;  %v3019_v4 = vpop.f32.mrb[4].mxu1 }
 0x3c9   : > { %v3049_v2 = vadd.f32 %v3041_v61, %v2978_v41  ;;  %v3050_v23 = vadd.f32 %v3041_v61, %v3019_v4  ;;  %v2980_v26 = vpop.f32.mrb[6].mxu0  ;;  %v3021_v30 = vpop.f32.mrb[5].mxu1 }
 0x3ca   : > { %v3068_v31 = vadd.f32 %v3060_v20, %v3048_v48  ;;  %v3052_v57 = vadd.f32 %v3046_v25, %v2980_v26  ;;  %v3051_v24 = vadd.f32 %v3041_v61, %v3021_v30  ;;  %v2982_v32 = vpop.f32.mrb[7].mxu0  ;;  %v3023_v10 = vpop.f32.mrb[6].mxu1 }
 0x3cb   : > { %v3069_v22 = vadd.f32 %v3061_v49, %v3049_v2  ;;  %v3070_v39 = vadd.f32 %v3062_v29, %v3050_v23  ;;  %v3053_v27 = vadd.f32 %v3046_v25, %v2982_v32  ;;  %v3054_v1 = vadd.f32 %v3046_v25, %v3023_v10  ;;  %v3025_v59 = vpop.f32.mrb[7].mxu1 }
 0x3cc   : > { %v3076_v60 = vmax.f32 %v3068_v31, 0.0  ;;  %v3072_v52 = vadd.f32 %v3064_v13, %v3052_v57  ;;  %v3071_v63 = vadd.f32 %v3063_v40, %v3051_v24  ;;  %v3055_v35 = vadd.f32 %v3046_v25, %v3025_v59 }
 0x3cd   : > { %v3077_v34 = vmax.f32 %v3069_v22, 0.0  ;;  %v3078_v8 = vmax.f32 %v3070_v39, 0.0  ;;  %v3073_v45 = vadd.f32 %v3065_v5, %v3053_v27  ;;  %v3074_v0 = vadd.f32 %v3066_v55, %v3054_v1 }
 0x3ce   : > { %v3080_v7 = vmax.f32 %v3072_v52, 0.0  ;;  %v3079_v50 = vmax.f32 %v3071_v63, 0.0  ;;  %v3075_v21 = vadd.f32 %v3067_v33, %v3055_v35 }
 0x3cf   : > { %v3305_v36 = vpack.c.bf16 %v3077_v34, %v3076_v60  ;;  %v3081_v6 = vmax.f32 %v3073_v45, 0.0  ;;  %v3082_v47 = vmax.f32 %v3074_v0, 0.0 }
 0x3d0   : > { %v3306_v11 = vpack.c.bf16 %v3079_v50, %v3078_v8  ;;  %v3083_v17 = vmax.f32 %v3075_v21, 0.0 }
 0x3d1   : > { %3108 = vst [vmem:[%s244_s17] sm:$0xff] %v3305_v36  ;;  %v3307_v38 = vpack.c.bf16 %v3081_v6, %v3080_v7 }
 0x3d2   : > { %3109 = vst [vmem:[%s244_s17 + $0x8] sm:$0xff] %v3306_v11  ;;  %v3308_v53 = vpack.c.bf16 %v3083_v17, %v3082_v47 }
 0x3d3   : > { %3110 = vst [vmem:[%s244_s17 + $0x10] sm:$0xff] %v3307_v38 }
 0x3d4   : > { %3111 = vst [vmem:[%s244_s17 + $0x18] sm:$0xff] %v3308_v53 }
 0x3d5   : > { %3478 = shalt.err (!%p3475_p3)
}
 0x3d6   : > { %s3479_s10 = scalar_lea.hbm %s4917_s12, 512  ;;  %s3483_s13 = scalar_lea.hbm %s4969_s6, 1024 }
 0x3d7   : > { %p3480_p4 = scmp.ne.s32.totalorder %s4917_s12, %s3479_s10  ;;  %p3484_p9 = scmp.lt.u32.totalorder %s4917_s12, %s4969_s6 }
 0x3d8   : > { %p3485_p10 = scmp.lt.u32.totalorder %s3483_s13, %s3479_s10  ;;  %p3487_p12 = scmp.lt.u32.totalorder %s3479_s10, %s4917_s12 }
 0x3d9   : > { %p3481_p7 = pnand %p3480_p4, %p3613_p5 }
 0x3da   : > { %p3486_p11 = por %p3485_p10, %p3484_p9 }
 0x3db   : > { %p3482_p8 = pneg %p3481_p7 }
 0x3dc   : > { %p3488_p13 = por %p3487_p12, %p3486_p11 }
 0x3de   : > { %p3489_p0 = pnand %p3488_p13, %p3482_p8 }
 0x3e0   : > { %3492 = shalt.err (!%p3489_p0)
}
 0x3e1   : > { %s3539_s20 = smov 256  }
 0x3e2   : > { %3342 = dma.vmem_to_hbm [thread:$0]  (%p3613_p5), %s4912_s18, 512, %s4917_s12, %s4921_s25, %s3539_s20, %s3539_s20, %s3530_s15  }
 0x3e3 PF: > { %p3348_p1 = scmp.ge.s32.totalorder %s3527_s24, 2  ;;  %s3141_s11 = sand.u32 1, %s3515_s21  }
 0x3e4   : > { %s3142_s26 = scalar_lea.sflag [#allocation4], %s3141_s11 }
 0x3e5   : > { %p3345_p2 = pnand %p3348_p1, %p3617_p6 }
 0x3e7   : > { %3510 = dma.done.wait (!%p3345_p2), %s3142_s26, 512  }
 0x3e8   : > { %3512 = vsyncadd (!%p3345_p2), %s3142_s26, 4294966784  ;;  %p16_p3 = scmp.ge.s32.totalorder %s3600_s27, 4   ;;  %s5010_s21 = smov %s3519_s22 }
 0x3e9   : > { %s5011_s22 = smov %s3523_s23  ;;  %s5012_s23 = smov %s3611_s30 }
 0x3ea   : > { %s5013_s24 = smov %s3600_s27  ;;  %18 = sbr.rel (!%p16_p3) target bundleno = 3 (0x3), region = 85 }
 0x3f1   :  { %3147 = vsyncpa [#allocation4], 1 }
 0x3f2   :  { %3149 = vsyncpa [#allocation4 + $0x1], 1 }

</bundles_post_ra>
